<compile_context>
chip_gen: v6e
topology: v6e:2x2x1
jax: 0.10.0
libtpu: 0.0.40
codegen_flags: <defaults>
</compile_context>

<pallas_src>
import jax
import jax.numpy as jnp
from jax import lax
from jax.experimental import pallas as pl
from jax.experimental.pallas import tpu as pltpu

# Full-f32 matmuls everywhere (wrapper weight-fold, reference, kernel) so the
# kernel's exact-algebra refactoring checks out to tight tolerance.
jax.config.update("jax_default_matmul_precision", "highest")


def _lstm_kernel(pm25_last_ref, feat_ref,
                 w_x_ref, w_fh_ref, b_ref, w_out_ref, b_out_ref,
                 out_ref, xin_ref):
    H = w_out_ref.shape[-1]          # hidden size
    F = feat_ref.shape[-1]           # feature size
    rows = xin_ref.shape[0]          # row tile of batch*num_nodes
    pred_len = out_ref.shape[0]

    # Hoist the constant weights out of the recurrence (read once per tile).
    w_x = w_x_ref[...]               # (1, 4H)   columns for the scalar xn channel
    w_fh = w_fh_ref[...]             # (F+H, 4H) stacked [feat | hidden] gate weight
    b = b_ref[...]                   # (1, 4H)   b_in@w_x2h + b_x2h + b_h2h
    w_out = w_out_ref[...]           # (1, H)    fc_out weight row
    b_out = b_out_ref[...]           # (1, 1)

    def step(i, carry):
        hn, cn, xn = carry
        # Stage [feat_i | hn] into the fused-matmul input buffer.
        xin_ref[:, :F] = feat_ref[i]
        xin_ref[:, F:] = hn
        # Gates (fc_in folded in): ONE MXU matmul + rank-1 xn term + one bias add.
        gates = (jnp.dot(xin_ref[...], w_fh, preferred_element_type=jnp.float32)
                 + xn * w_x + b)                              # (rows, 4H)
        # Gate order is [i | f | o | g] (columns reordered offline).
        sig = jax.nn.sigmoid(gates[:, :3 * H])
        i_g = sig[:, 0:H]
        f_g = sig[:, H:2 * H]
        o_g = sig[:, 2 * H:3 * H]
        g_g = jnp.tanh(gates[:, 3 * H:])
        cy = cn * f_g + i_g * g_g
        hy = o_g * jnp.tanh(cy)
        # fc_out: VPU multiply + lane reduction (no 1-column MXU pass).
        pred = jnp.sum(hy * w_out, axis=-1, keepdims=True) + b_out   # (rows, 1)
        out_ref[i] = pred
        return hy, cy, pred

    hn0 = jnp.zeros((rows, H), jnp.float32)
    cn0 = jnp.zeros((rows, H), jnp.float32)
    xn0 = pm25_last_ref[...]                                  # (rows, 1)
    lax.fori_loop(0, pred_len, step, (hn0, cn0, xn0), unroll=True)


def lstm_forward_pallas(pm25_hist, feature, params, *, hist_len, pred_len,
                        row_block=None):
    batch, _, num_nodes, _ = pm25_hist.shape
    BN = batch * num_nodes
    F = feature.shape[-1]
    hid = params["w_in"].shape[1]
    H4 = 4 * hid

    # Optional row tiling (v7x: two TensorCores; rows are independent).
    if row_block is None:
        row_block = BN
    assert BN % row_block == 0
    assert row_block == BN or row_block % 8 == 0
    n_row = BN // row_block

    pm25_last = pm25_hist[:, -1].reshape(BN, 1)                       # (BN, 1)
    feat_fut = jnp.transpose(feature[:, hist_len:hist_len + pred_len],
                             (1, 0, 2, 3)).reshape(pred_len, BN, F)   # (T, BN, F)

    # --- offline weight folding (exact algebra) -------------------------------
    hi = lax.Precision.HIGHEST
    w_comb = jnp.dot(params["w_in"], params["w_x2h"], precision=hi)   # (1+F, 4H)
    b_total = (jnp.dot(params["b_in"], params["w_x2h"], precision=hi)
               + params["b_x2h"] + params["b_h2h"])                   # (1, 4H)
    w_x_row = w_comb[0:1]                                             # (1, 4H)
    w_stacked = jnp.concatenate([w_comb[1:], params["w_h2h"]], axis=0)  # (F+H, 4H)

    # Reorder gate columns [i|f|g|o] -> [i|f|o|g] so activations are two slices.
    perm = jnp.concatenate([jnp.arange(0, 2 * hid),
                            jnp.arange(3 * hid, 4 * hid),
                            jnp.arange(2 * hid, 3 * hid)])
    w_x_row = w_x_row[:, perm]
    w_stacked = w_stacked[:, perm]
    b_total = b_total[:, perm]

    w_out_row = params["w_out"].T                                     # (1, hid)
    b_out = params["b_out"]                                           # (1, 1)

    out = pl.pallas_call(
        _lstm_kernel,
        out_shape=jax.ShapeDtypeStruct((pred_len, BN, 1), jnp.float32),
        grid=(n_row,),
        in_specs=[
            pl.BlockSpec((row_block, 1), lambda r: (r, 0)),            # pm25_last
            pl.BlockSpec((pred_len, row_block, F), lambda r: (0, r, 0)),  # feat_fut
            pl.BlockSpec((1, H4), lambda r: (0, 0)),                   # w_x_row
            pl.BlockSpec((F + hid, H4), lambda r: (0, 0)),             # w_stacked
            pl.BlockSpec((1, H4), lambda r: (0, 0)),                   # b_total
            pl.BlockSpec((1, hid), lambda r: (0, 0)),                  # w_out_row
            pl.BlockSpec((1, 1), lambda r: (0, 0)),                    # b_out
        ],
        out_specs=pl.BlockSpec((pred_len, row_block, 1), lambda r: (0, r, 0)),
        scratch_shapes=[pltpu.VMEM((row_block, F + hid), jnp.float32)],  # [feat|hn]
        compiler_params=pltpu.CompilerParams(
            dimension_semantics=("parallel",)),
    )(pm25_last, feat_fut, w_x_row, w_stacked, b_total, w_out_row, b_out)

    # (pred_len, BN, 1) -> (batch, pred_len, num_nodes, 1)  (matches torch.stack(dim=1))
    out = out.reshape(pred_len, batch, num_nodes, 1)
    return jnp.transpose(out, (1, 0, 2, 3))


def lstm_forward_ref(pm25_hist, feature, params, *, hist_len, pred_len):
    """Pure-JAX reference mirroring the PyTorch forward exactly."""
    batch, _, num_nodes, _ = pm25_hist.shape
    BN = batch * num_nodes
    hid = params["w_in"].shape[1]
    H = hid

    hn = jnp.zeros((BN, hid), jnp.float32)
    cn = jnp.zeros((BN, hid), jnp.float32)
    xn = pm25_hist[:, -1]                                   # (batch, nodes, 1)
    preds = []
    for i in range(pred_len):
        x = jnp.concatenate([xn, feature[:, hist_len + i]], axis=-1)
        x = x @ params["w_in"] + params["b_in"][0]          # fc_in
        x = x.reshape(BN, hid)
        gates = x @ params["w_x2h"] + params["b_x2h"][0] \
              + hn @ params["w_h2h"] + params["b_h2h"][0]
        i_g = jax.nn.sigmoid(gates[:, 0:H])
        f_g = jax.nn.sigmoid(gates[:, H:2 * H])
        g_g = jnp.tanh(gates[:, 2 * H:3 * H])
        o_g = jax.nn.sigmoid(gates[:, 3 * H:4 * H])
        cn = cn * f_g + i_g * g_g
        hn = o_g * jnp.tanh(cn)
        xn = hn.reshape(batch, num_nodes, hid) @ params["w_out"] + params["b_out"][0]
        preds.append(xn)
    return jnp.stack(preds, axis=1)


def init_params(key, in_dim, hid_dim, out_dim):
    """Deterministic synthetic init (uniform, matching the PyTorch shapes;
    weights stored pre-transposed as (in, out))."""
    ks = jax.random.split(key, 10)
    u = lambda k, shape, s: jax.random.uniform(k, shape, jnp.float32, -s, s)
    s_in = 1.0 / jnp.sqrt(in_dim)
    s_h = 1.0 / jnp.sqrt(hid_dim)
    return {
        "w_in":  u(ks[0], (in_dim, hid_dim), s_in),
        "b_in":  u(ks[1], (1, hid_dim), s_in),
        "w_x2h": u(ks[2], (hid_dim, 4 * hid_dim), s_h),
        "b_x2h": u(ks[3], (1, 4 * hid_dim), s_h),
        "w_h2h": u(ks[4], (hid_dim, 4 * hid_dim), s_h),
        "b_h2h": u(ks[5], (1, 4 * hid_dim), s_h),
        "w_out": u(ks[6], (hid_dim, out_dim), s_h),
        "b_out": u(ks[7], (1, out_dim), s_h),
    }


if __name__ == "__main__":
    batch = 2
    num_nodes = 16
    hist_len = 4
    pred_len = 8
    feat_dim = 8
    in_dim = 1 + feat_dim          # cat([pm25 (1), feature (feat_dim)], -1)
    hid_dim = 32
    out_dim = 1

    key = jax.random.PRNGKey(0)
    k_p, k_h, k_f = jax.random.split(key, 3)
    params = init_params(k_p, in_dim, hid_dim, out_dim)

    pm25_hist = jax.random.normal(k_h, (batch, hist_len, num_nodes, 1), jnp.float32)
    feature = jax.random.normal(
        k_f, (batch, hist_len + pred_len, num_nodes, feat_dim), jnp.float32)

    out = lstm_forward_pallas(pm25_hist, feature, params,
                              hist_len=hist_len, pred_len=pred_len)
    out = jax.block_until_ready(out)

    ref = lstm_forward_ref(pm25_hist, feature, params,
                           hist_len=hist_len, pred_len=pred_len)
    assert out.shape == (batch, pred_len, num_nodes, 1), out.shape
    # Tolerance allows f32 re-association from the exact offline weight folding.
    assert jnp.allclose(out, ref, atol=1e-4, rtol=1e-4), \
        float(jnp.max(jnp.abs(out - ref)))

    print("KERNEL_OK")
</pallas_src>

<mosaic_0001>
module attributes {stable_mosaic.version = 11 : i64} {
  func.func @_lstm_kernel(%arg0: i32, %arg1: memref<32x1xf32, #tpu.memory_space<vmem>>, %arg2: memref<8x32x8xf32, #tpu.memory_space<vmem>>, %arg3: memref<1x128xf32, #tpu.memory_space<vmem>>, %arg4: memref<40x128xf32, #tpu.memory_space<vmem>>, %arg5: memref<1x128xf32, #tpu.memory_space<vmem>>, %arg6: memref<1x32xf32, #tpu.memory_space<vmem>>, %arg7: memref<1x1xf32, #tpu.memory_space<vmem>>, %arg8: memref<8x32x1xf32, #tpu.memory_space<vmem>>, %arg9: memref<32x40xf32, #tpu.memory_space<vmem>>) attributes {dimension_semantics = [#tpu.dimension_semantics<parallel>], iteration_bounds = array<i64: 1>, scalar_prefetch = 0 : i64, scratch_operands = 1 : i64, tpu.core_type = #tpu.core_type<tc>, window_params = [{transform_indices = @transform_0, window_bounds = array<i64: 32, 1>}, {transform_indices = @transform_1, window_bounds = array<i64: 8, 32, 8>}, {pipeline_mode = #tpu.pipeline_mode<synchronous>, transform_indices = @transform_2, window_bounds = array<i64: 1, 128>}, {pipeline_mode = #tpu.pipeline_mode<synchronous>, transform_indices = @transform_3, window_bounds = array<i64: 40, 128>}, {pipeline_mode = #tpu.pipeline_mode<synchronous>, transform_indices = @transform_4, window_bounds = array<i64: 1, 128>}, {pipeline_mode = #tpu.pipeline_mode<synchronous>, transform_indices = @transform_5, window_bounds = array<i64: 1, 32>}, {pipeline_mode = #tpu.pipeline_mode<synchronous>, transform_indices = @transform_6, window_bounds = array<i64: 1, 1>}, {transform_indices = @transform_7, window_bounds = array<i64: 8, 32, 1>}]} {
    %c0 = arith.constant 0 : index
    %c0_0 = arith.constant 0 : index
    %0 = vector.load %arg3[%c0, %c0_0] : memref<1x128xf32, #tpu.memory_space<vmem>>, vector<1x128xf32>
    %c0_1 = arith.constant 0 : index
    %c0_2 = arith.constant 0 : index
    %1 = vector.load %arg4[%c0_1, %c0_2] : memref<40x128xf32, #tpu.memory_space<vmem>>, vector<40x128xf32>
    %c0_3 = arith.constant 0 : index
    %c0_4 = arith.constant 0 : index
    %2 = vector.load %arg5[%c0_3, %c0_4] : memref<1x128xf32, #tpu.memory_space<vmem>>, vector<1x128xf32>
    %c0_5 = arith.constant 0 : index
    %c0_6 = arith.constant 0 : index
    %3 = vector.load %arg6[%c0_5, %c0_6] : memref<1x32xf32, #tpu.memory_space<vmem>>, vector<1x32xf32>
    %c0_7 = arith.constant 0 : index
    %c0_8 = arith.constant 0 : index
    %4 = vector.load %arg7[%c0_7, %c0_8] : memref<1x1xf32, #tpu.memory_space<vmem>>, vector<1x1xf32>
    %cst = arith.constant 0.000000e+00 : f32
    %5 = vector.broadcast %cst : f32 to vector<32x32xf32>
    %cst_9 = arith.constant 0.000000e+00 : f32
    %6 = vector.broadcast %cst_9 : f32 to vector<32x32xf32>
    %c0_10 = arith.constant 0 : index
    %c0_11 = arith.constant 0 : index
    %7 = vector.load %arg1[%c0_10, %c0_11] : memref<32x1xf32, #tpu.memory_space<vmem>>, vector<32x1xf32>
    %c0_i32 = arith.constant 0 : i32
    %8 = arith.index_cast %c0_i32 : i32 to index
    %c0_12 = arith.constant 0 : index
    %c0_13 = arith.constant 0 : index
    %9 = vector.load %arg2[%8, %c0_12, %c0_13] : memref<8x32x8xf32, #tpu.memory_space<vmem>>, vector<1x32x8xf32>
    %10 = vector.shape_cast %9 : vector<1x32x8xf32> to vector<32x8xf32>
    %c0_14 = arith.constant 0 : index
    %c0_15 = arith.constant 0 : index
    %11 = vector.load %arg9[%c0_14, %c0_15] : memref<32x40xf32, #tpu.memory_space<vmem>>, vector<32x8xf32>
    tpu.vector_store %arg9[%c0_14, %c0_15], %10 {strides = array<i32>} : memref<32x40xf32, #tpu.memory_space<vmem>>, vector<32x8xf32>,
    %c0_16 = arith.constant 0 : index
    %c8 = arith.constant 8 : index
    %12 = vector.load %arg9[%c0_16, %c8] : memref<32x40xf32, #tpu.memory_space<vmem>>, vector<32x32xf32>
    tpu.vector_store %arg9[%c0_16, %c8], %5 {strides = array<i32>} : memref<32x40xf32, #tpu.memory_space<vmem>>, vector<32x32xf32>,
    %c0_17 = arith.constant 0 : index
    %c0_18 = arith.constant 0 : index
    %13 = vector.load %arg9[%c0_17, %c0_18] : memref<32x40xf32, #tpu.memory_space<vmem>>, vector<32x40xf32>
    %cst_19 = arith.constant dense<0.000000e+00> : vector<32x128xf32>
    %14 = tpu.matmul %13, %1, %cst_19 {dimension_numbers = #tpu.dot_dimension_numbers<[1], [0], [0], [1], [0, 0, 1, 1], [], []>, precision = #tpu.contract_precision<fp32>} : vector<32x40xf32>, vector<40x128xf32>, vector<32x128xf32> -> vector<32x128xf32>
    %15 = vector.broadcast %7 : vector<32x1xf32> to vector<32x128xf32>
    %16 = vector.broadcast %0 : vector<1x128xf32> to vector<32x128xf32>
    %17 = arith.mulf %15, %16 : vector<32x128xf32>
    %18 = arith.addf %14, %17 : vector<32x128xf32>
    %19 = vector.broadcast %2 : vector<1x128xf32> to vector<32x128xf32>
    %20 = arith.addf %18, %19 : vector<32x128xf32>
    %21 = vector.extract_strided_slice %20 {offsets = [0, 0], sizes = [32, 96], strides = [1, 1]} : vector<32x128xf32> to vector<32x96xf32>
    %22 = arith.negf %21 : vector<32x96xf32>
    %23 = math.exp %22 : vector<32x96xf32>
    %cst_20 = arith.constant 1.000000e+00 : f32
    %24 = vector.broadcast %cst_20 : f32 to vector<32x96xf32>
    %25 = arith.addf %24, %23 : vector<32x96xf32>
    %26 = arith.divf %24, %25 : vector<32x96xf32>
    %27 = vector.extract_strided_slice %26 {offsets = [0, 0], sizes = [32, 32], strides = [1, 1]} : vector<32x96xf32> to vector<32x32xf32>
    %28 = vector.extract_strided_slice %26 {offsets = [0, 32], sizes = [32, 32], strides = [1, 1]} : vector<32x96xf32> to vector<32x32xf32>
    %29 = vector.extract_strided_slice %26 {offsets = [0, 64], sizes = [32, 32], strides = [1, 1]} : vector<32x96xf32> to vector<32x32xf32>
    %30 = vector.extract_strided_slice %20 {offsets = [0, 96], sizes = [32, 32], strides = [1, 1]} : vector<32x128xf32> to vector<32x32xf32>
    %31 = math.tanh %30 : vector<32x32xf32>
    %32 = arith.mulf %6, %28 : vector<32x32xf32>
    %33 = arith.mulf %27, %31 : vector<32x32xf32>
    %34 = arith.addf %32, %33 : vector<32x32xf32>
    %35 = math.tanh %34 : vector<32x32xf32>
    %36 = arith.mulf %29, %35 : vector<32x32xf32>
    %37 = vector.broadcast %3 : vector<1x32xf32> to vector<32x32xf32>
    %38 = arith.mulf %36, %37 : vector<32x32xf32>
    %cst_21 = arith.constant dense<0.000000e+00> : vector<32xf32>
    %39 = vector.multi_reduction <add>, %38, %cst_21 [1] : vector<32x32xf32> to vector<32xf32>
    %40 = vector.shape_cast %39 : vector<32xf32> to vector<32x1xf32>
    %41 = vector.broadcast %4 : vector<1x1xf32> to vector<32x1xf32>
    %42 = arith.addf %40, %41 : vector<32x1xf32>
    %43 = arith.index_cast %c0_i32 : i32 to index
    %c0_22 = arith.constant 0 : index
    %c0_23 = arith.constant 0 : index
    %44 = vector.load %arg8[%43, %c0_22, %c0_23] : memref<8x32x1xf32, #tpu.memory_space<vmem>>, vector<1x32x1xf32>
    %45 = vector.shape_cast %44 : vector<1x32x1xf32> to vector<32x1xf32>
    %46 = vector.shape_cast %42 : vector<32x1xf32> to vector<1x32x1xf32>
    tpu.vector_store %arg8[%43, %c0_22, %c0_23], %46 {strides = array<i32>} : memref<8x32x1xf32, #tpu.memory_space<vmem>>, vector<1x32x1xf32>,
    %c1_i32 = arith.constant 1 : i32
    %47 = arith.index_cast %c1_i32 : i32 to index
    %c0_24 = arith.constant 0 : index
    %c0_25 = arith.constant 0 : index
    %48 = vector.load %arg2[%47, %c0_24, %c0_25] : memref<8x32x8xf32, #tpu.memory_space<vmem>>, vector<1x32x8xf32>
    %49 = vector.shape_cast %48 : vector<1x32x8xf32> to vector<32x8xf32>
    %c0_26 = arith.constant 0 : index
    %c0_27 = arith.constant 0 : index
    %50 = vector.load %arg9[%c0_26, %c0_27] : memref<32x40xf32, #tpu.memory_space<vmem>>, vector<32x8xf32>
    tpu.vector_store %arg9[%c0_26, %c0_27], %49 {strides = array<i32>} : memref<32x40xf32, #tpu.memory_space<vmem>>, vector<32x8xf32>,
    %c0_28 = arith.constant 0 : index
    %c8_29 = arith.constant 8 : index
    %51 = vector.load %arg9[%c0_28, %c8_29] : memref<32x40xf32, #tpu.memory_space<vmem>>, vector<32x32xf32>
    tpu.vector_store %arg9[%c0_28, %c8_29], %36 {strides = array<i32>} : memref<32x40xf32, #tpu.memory_space<vmem>>, vector<32x32xf32>,
    %c0_30 = arith.constant 0 : index
    %c0_31 = arith.constant 0 : index
    %52 = vector.load %arg9[%c0_30, %c0_31] : memref<32x40xf32, #tpu.memory_space<vmem>>, vector<32x40xf32>
    %cst_32 = arith.constant dense<0.000000e+00> : vector<32x128xf32>
    %53 = tpu.matmul %52, %1, %cst_32 {dimension_numbers = #tpu.dot_dimension_numbers<[1], [0], [0], [1], [0, 0, 1, 1], [], []>, precision = #tpu.contract_precision<fp32>} : vector<32x40xf32>, vector<40x128xf32>, vector<32x128xf32> -> vector<32x128xf32>
    %54 = vector.broadcast %42 : vector<32x1xf32> to vector<32x128xf32>
    %55 = vector.broadcast %0 : vector<1x128xf32> to vector<32x128xf32>
    %56 = arith.mulf %54, %55 : vector<32x128xf32>
    %57 = arith.addf %53, %56 : vector<32x128xf32>
    %58 = vector.broadcast %2 : vector<1x128xf32> to vector<32x128xf32>
    %59 = arith.addf %57, %58 : vector<32x128xf32>
    %60 = vector.extract_strided_slice %59 {offsets = [0, 0], sizes = [32, 96], strides = [1, 1]} : vector<32x128xf32> to vector<32x96xf32>
    %61 = arith.negf %60 : vector<32x96xf32>
    %62 = math.exp %61 : vector<32x96xf32>
    %cst_33 = arith.constant 1.000000e+00 : f32
    %63 = vector.broadcast %cst_33 : f32 to vector<32x96xf32>
    %64 = arith.addf %63, %62 : vector<32x96xf32>
    %65 = arith.divf %63, %64 : vector<32x96xf32>
    %66 = vector.extract_strided_slice %65 {offsets = [0, 0], sizes = [32, 32], strides = [1, 1]} : vector<32x96xf32> to vector<32x32xf32>
    %67 = vector.extract_strided_slice %65 {offsets = [0, 32], sizes = [32, 32], strides = [1, 1]} : vector<32x96xf32> to vector<32x32xf32>
    %68 = vector.extract_strided_slice %65 {offsets = [0, 64], sizes = [32, 32], strides = [1, 1]} : vector<32x96xf32> to vector<32x32xf32>
    %69 = vector.extract_strided_slice %59 {offsets = [0, 96], sizes = [32, 32], strides = [1, 1]} : vector<32x128xf32> to vector<32x32xf32>
    %70 = math.tanh %69 : vector<32x32xf32>
    %71 = arith.mulf %34, %67 : vector<32x32xf32>
    %72 = arith.mulf %66, %70 : vector<32x32xf32>
    %73 = arith.addf %71, %72 : vector<32x32xf32>
    %74 = math.tanh %73 : vector<32x32xf32>
    %75 = arith.mulf %68, %74 : vector<32x32xf32>
    %76 = vector.broadcast %3 : vector<1x32xf32> to vector<32x32xf32>
    %77 = arith.mulf %75, %76 : vector<32x32xf32>
    %cst_34 = arith.constant dense<0.000000e+00> : vector<32xf32>
    %78 = vector.multi_reduction <add>, %77, %cst_34 [1] : vector<32x32xf32> to vector<32xf32>
    %79 = vector.shape_cast %78 : vector<32xf32> to vector<32x1xf32>
    %80 = vector.broadcast %4 : vector<1x1xf32> to vector<32x1xf32>
    %81 = arith.addf %79, %80 : vector<32x1xf32>
    %82 = arith.index_cast %c1_i32 : i32 to index
    %c0_35 = arith.constant 0 : index
    %c0_36 = arith.constant 0 : index
    %83 = vector.load %arg8[%82, %c0_35, %c0_36] : memref<8x32x1xf32, #tpu.memory_space<vmem>>, vector<1x32x1xf32>
    %84 = vector.shape_cast %83 : vector<1x32x1xf32> to vector<32x1xf32>
    %85 = vector.shape_cast %81 : vector<32x1xf32> to vector<1x32x1xf32>
    tpu.vector_store %arg8[%82, %c0_35, %c0_36], %85 {strides = array<i32>} : memref<8x32x1xf32, #tpu.memory_space<vmem>>, vector<1x32x1xf32>,
    %c2_i32 = arith.constant 2 : i32
    %86 = arith.index_cast %c2_i32 : i32 to index
    %c0_37 = arith.constant 0 : index
    %c0_38 = arith.constant 0 : index
    %87 = vector.load %arg2[%86, %c0_37, %c0_38] : memref<8x32x8xf32, #tpu.memory_space<vmem>>, vector<1x32x8xf32>
    %88 = vector.shape_cast %87 : vector<1x32x8xf32> to vector<32x8xf32>
    %c0_39 = arith.constant 0 : index
    %c0_40 = arith.constant 0 : index
    %89 = vector.load %arg9[%c0_39, %c0_40] : memref<32x40xf32, #tpu.memory_space<vmem>>, vector<32x8xf32>
    tpu.vector_store %arg9[%c0_39, %c0_40], %88 {strides = array<i32>} : memref<32x40xf32, #tpu.memory_space<vmem>>, vector<32x8xf32>,
    %c0_41 = arith.constant 0 : index
    %c8_42 = arith.constant 8 : index
    %90 = vector.load %arg9[%c0_41, %c8_42] : memref<32x40xf32, #tpu.memory_space<vmem>>, vector<32x32xf32>
    tpu.vector_store %arg9[%c0_41, %c8_42], %75 {strides = array<i32>} : memref<32x40xf32, #tpu.memory_space<vmem>>, vector<32x32xf32>,
    %c0_43 = arith.constant 0 : index
    %c0_44 = arith.constant 0 : index
    %91 = vector.load %arg9[%c0_43, %c0_44] : memref<32x40xf32, #tpu.memory_space<vmem>>, vector<32x40xf32>
    %cst_45 = arith.constant dense<0.000000e+00> : vector<32x128xf32>
    %92 = tpu.matmul %91, %1, %cst_45 {dimension_numbers = #tpu.dot_dimension_numbers<[1], [0], [0], [1], [0, 0, 1, 1], [], []>, precision = #tpu.contract_precision<fp32>} : vector<32x40xf32>, vector<40x128xf32>, vector<32x128xf32> -> vector<32x128xf32>
    %93 = vector.broadcast %81 : vector<32x1xf32> to vector<32x128xf32>
    %94 = vector.broadcast %0 : vector<1x128xf32> to vector<32x128xf32>
    %95 = arith.mulf %93, %94 : vector<32x128xf32>
    %96 = arith.addf %92, %95 : vector<32x128xf32>
    %97 = vector.broadcast %2 : vector<1x128xf32> to vector<32x128xf32>
    %98 = arith.addf %96, %97 : vector<32x128xf32>
    %99 = vector.extract_strided_slice %98 {offsets = [0, 0], sizes = [32, 96], strides = [1, 1]} : vector<32x128xf32> to vector<32x96xf32>
    %100 = arith.negf %99 : vector<32x96xf32>
    %101 = math.exp %100 : vector<32x96xf32>
    %cst_46 = arith.constant 1.000000e+00 : f32
    %102 = vector.broadcast %cst_46 : f32 to vector<32x96xf32>
    %103 = arith.addf %102, %101 : vector<32x96xf32>
    %104 = arith.divf %102, %103 : vector<32x96xf32>
    %105 = vector.extract_strided_slice %104 {offsets = [0, 0], sizes = [32, 32], strides = [1, 1]} : vector<32x96xf32> to vector<32x32xf32>
    %106 = vector.extract_strided_slice %104 {offsets = [0, 32], sizes = [32, 32], strides = [1, 1]} : vector<32x96xf32> to vector<32x32xf32>
    %107 = vector.extract_strided_slice %104 {offsets = [0, 64], sizes = [32, 32], strides = [1, 1]} : vector<32x96xf32> to vector<32x32xf32>
    %108 = vector.extract_strided_slice %98 {offsets = [0, 96], sizes = [32, 32], strides = [1, 1]} : vector<32x128xf32> to vector<32x32xf32>
    %109 = math.tanh %108 : vector<32x32xf32>
    %110 = arith.mulf %73, %106 : vector<32x32xf32>
    %111 = arith.mulf %105, %109 : vector<32x32xf32>
    %112 = arith.addf %110, %111 : vector<32x32xf32>
    %113 = math.tanh %112 : vector<32x32xf32>
    %114 = arith.mulf %107, %113 : vector<32x32xf32>
    %115 = vector.broadcast %3 : vector<1x32xf32> to vector<32x32xf32>
    %116 = arith.mulf %114, %115 : vector<32x32xf32>
    %cst_47 = arith.constant dense<0.000000e+00> : vector<32xf32>
    %117 = vector.multi_reduction <add>, %116, %cst_47 [1] : vector<32x32xf32> to vector<32xf32>
    %118 = vector.shape_cast %117 : vector<32xf32> to vector<32x1xf32>
    %119 = vector.broadcast %4 : vector<1x1xf32> to vector<32x1xf32>
    %120 = arith.addf %118, %119 : vector<32x1xf32>
    %121 = arith.index_cast %c2_i32 : i32 to index
    %c0_48 = arith.constant 0 : index
    %c0_49 = arith.constant 0 : index
    %122 = vector.load %arg8[%121, %c0_48, %c0_49] : memref<8x32x1xf32, #tpu.memory_space<vmem>>, vector<1x32x1xf32>
    %123 = vector.shape_cast %122 : vector<1x32x1xf32> to vector<32x1xf32>
    %124 = vector.shape_cast %120 : vector<32x1xf32> to vector<1x32x1xf32>
    tpu.vector_store %arg8[%121, %c0_48, %c0_49], %124 {strides = array<i32>} : memref<8x32x1xf32, #tpu.memory_space<vmem>>, vector<1x32x1xf32>,
    %c3_i32 = arith.constant 3 : i32
    %125 = arith.index_cast %c3_i32 : i32 to index
    %c0_50 = arith.constant 0 : index
    %c0_51 = arith.constant 0 : index
    %126 = vector.load %arg2[%125, %c0_50, %c0_51] : memref<8x32x8xf32, #tpu.memory_space<vmem>>, vector<1x32x8xf32>
    %127 = vector.shape_cast %126 : vector<1x32x8xf32> to vector<32x8xf32>
    %c0_52 = arith.constant 0 : index
    %c0_53 = arith.constant 0 : index
    %128 = vector.load %arg9[%c0_52, %c0_53] : memref<32x40xf32, #tpu.memory_space<vmem>>, vector<32x8xf32>
    tpu.vector_store %arg9[%c0_52, %c0_53], %127 {strides = array<i32>} : memref<32x40xf32, #tpu.memory_space<vmem>>, vector<32x8xf32>,
    %c0_54 = arith.constant 0 : index
    %c8_55 = arith.constant 8 : index
    %129 = vector.load %arg9[%c0_54, %c8_55] : memref<32x40xf32, #tpu.memory_space<vmem>>, vector<32x32xf32>
    tpu.vector_store %arg9[%c0_54, %c8_55], %114 {strides = array<i32>} : memref<32x40xf32, #tpu.memory_space<vmem>>, vector<32x32xf32>,
    %c0_56 = arith.constant 0 : index
    %c0_57 = arith.constant 0 : index
    %130 = vector.load %arg9[%c0_56, %c0_57] : memref<32x40xf32, #tpu.memory_space<vmem>>, vector<32x40xf32>
    %cst_58 = arith.constant dense<0.000000e+00> : vector<32x128xf32>
    %131 = tpu.matmul %130, %1, %cst_58 {dimension_numbers = #tpu.dot_dimension_numbers<[1], [0], [0], [1], [0, 0, 1, 1], [], []>, precision = #tpu.contract_precision<fp32>} : vector<32x40xf32>, vector<40x128xf32>, vector<32x128xf32> -> vector<32x128xf32>
    %132 = vector.broadcast %120 : vector<32x1xf32> to vector<32x128xf32>
    %133 = vector.broadcast %0 : vector<1x128xf32> to vector<32x128xf32>
    %134 = arith.mulf %132, %133 : vector<32x128xf32>
    %135 = arith.addf %131, %134 : vector<32x128xf32>
    %136 = vector.broadcast %2 : vector<1x128xf32> to vector<32x128xf32>
    %137 = arith.addf %135, %136 : vector<32x128xf32>
    %138 = vector.extract_strided_slice %137 {offsets = [0, 0], sizes = [32, 96], strides = [1, 1]} : vector<32x128xf32> to vector<32x96xf32>
    %139 = arith.negf %138 : vector<32x96xf32>
    %140 = math.exp %139 : vector<32x96xf32>
    %cst_59 = arith.constant 1.000000e+00 : f32
    %141 = vector.broadcast %cst_59 : f32 to vector<32x96xf32>
    %142 = arith.addf %141, %140 : vector<32x96xf32>
    %143 = arith.divf %141, %142 : vector<32x96xf32>
    %144 = vector.extract_strided_slice %143 {offsets = [0, 0], sizes = [32, 32], strides = [1, 1]} : vector<32x96xf32> to vector<32x32xf32>
    %145 = vector.extract_strided_slice %143 {offsets = [0, 32], sizes = [32, 32], strides = [1, 1]} : vector<32x96xf32> to vector<32x32xf32>
    %146 = vector.extract_strided_slice %143 {offsets = [0, 64], sizes = [32, 32], strides = [1, 1]} : vector<32x96xf32> to vector<32x32xf32>
    %147 = vector.extract_strided_slice %137 {offsets = [0, 96], sizes = [32, 32], strides = [1, 1]} : vector<32x128xf32> to vector<32x32xf32>
    %148 = math.tanh %147 : vector<32x32xf32>
    %149 = arith.mulf %112, %145 : vector<32x32xf32>
    %150 = arith.mulf %144, %148 : vector<32x32xf32>
    %151 = arith.addf %149, %150 : vector<32x32xf32>
    %152 = math.tanh %151 : vector<32x32xf32>
    %153 = arith.mulf %146, %152 : vector<32x32xf32>
    %154 = vector.broadcast %3 : vector<1x32xf32> to vector<32x32xf32>
    %155 = arith.mulf %153, %154 : vector<32x32xf32>
    %cst_60 = arith.constant dense<0.000000e+00> : vector<32xf32>
    %156 = vector.multi_reduction <add>, %155, %cst_60 [1] : vector<32x32xf32> to vector<32xf32>
    %157 = vector.shape_cast %156 : vector<32xf32> to vector<32x1xf32>
    %158 = vector.broadcast %4 : vector<1x1xf32> to vector<32x1xf32>
    %159 = arith.addf %157, %158 : vector<32x1xf32>
    %160 = arith.index_cast %c3_i32 : i32 to index
    %c0_61 = arith.constant 0 : index
    %c0_62 = arith.constant 0 : index
    %161 = vector.load %arg8[%160, %c0_61, %c0_62] : memref<8x32x1xf32, #tpu.memory_space<vmem>>, vector<1x32x1xf32>
    %162 = vector.shape_cast %161 : vector<1x32x1xf32> to vector<32x1xf32>
    %163 = vector.shape_cast %159 : vector<32x1xf32> to vector<1x32x1xf32>
    tpu.vector_store %arg8[%160, %c0_61, %c0_62], %163 {strides = array<i32>} : memref<8x32x1xf32, #tpu.memory_space<vmem>>, vector<1x32x1xf32>,
    %c4_i32 = arith.constant 4 : i32
    %164 = arith.index_cast %c4_i32 : i32 to index
    %c0_63 = arith.constant 0 : index
    %c0_64 = arith.constant 0 : index
    %165 = vector.load %arg2[%164, %c0_63, %c0_64] : memref<8x32x8xf32, #tpu.memory_space<vmem>>, vector<1x32x8xf32>
    %166 = vector.shape_cast %165 : vector<1x32x8xf32> to vector<32x8xf32>
    %c0_65 = arith.constant 0 : index
    %c0_66 = arith.constant 0 : index
    %167 = vector.load %arg9[%c0_65, %c0_66] : memref<32x40xf32, #tpu.memory_space<vmem>>, vector<32x8xf32>
    tpu.vector_store %arg9[%c0_65, %c0_66], %166 {strides = array<i32>} : memref<32x40xf32, #tpu.memory_space<vmem>>, vector<32x8xf32>,
    %c0_67 = arith.constant 0 : index
    %c8_68 = arith.constant 8 : index
    %168 = vector.load %arg9[%c0_67, %c8_68] : memref<32x40xf32, #tpu.memory_space<vmem>>, vector<32x32xf32>
    tpu.vector_store %arg9[%c0_67, %c8_68], %153 {strides = array<i32>} : memref<32x40xf32, #tpu.memory_space<vmem>>, vector<32x32xf32>,
    %c0_69 = arith.constant 0 : index
    %c0_70 = arith.constant 0 : index
    %169 = vector.load %arg9[%c0_69, %c0_70] : memref<32x40xf32, #tpu.memory_space<vmem>>, vector<32x40xf32>
    %cst_71 = arith.constant dense<0.000000e+00> : vector<32x128xf32>
    %170 = tpu.matmul %169, %1, %cst_71 {dimension_numbers = #tpu.dot_dimension_numbers<[1], [0], [0], [1], [0, 0, 1, 1], [], []>, precision = #tpu.contract_precision<fp32>} : vector<32x40xf32>, vector<40x128xf32>, vector<32x128xf32> -> vector<32x128xf32>
    %171 = vector.broadcast %159 : vector<32x1xf32> to vector<32x128xf32>
    %172 = vector.broadcast %0 : vector<1x128xf32> to vector<32x128xf32>
    %173 = arith.mulf %171, %172 : vector<32x128xf32>
    %174 = arith.addf %170, %173 : vector<32x128xf32>
    %175 = vector.broadcast %2 : vector<1x128xf32> to vector<32x128xf32>
    %176 = arith.addf %174, %175 : vector<32x128xf32>
    %177 = vector.extract_strided_slice %176 {offsets = [0, 0], sizes = [32, 96], strides = [1, 1]} : vector<32x128xf32> to vector<32x96xf32>
    %178 = arith.negf %177 : vector<32x96xf32>
    %179 = math.exp %178 : vector<32x96xf32>
    %cst_72 = arith.constant 1.000000e+00 : f32
    %180 = vector.broadcast %cst_72 : f32 to vector<32x96xf32>
    %181 = arith.addf %180, %179 : vector<32x96xf32>
    %182 = arith.divf %180, %181 : vector<32x96xf32>
    %183 = vector.extract_strided_slice %182 {offsets = [0, 0], sizes = [32, 32], strides = [1, 1]} : vector<32x96xf32> to vector<32x32xf32>
    %184 = vector.extract_strided_slice %182 {offsets = [0, 32], sizes = [32, 32], strides = [1, 1]} : vector<32x96xf32> to vector<32x32xf32>
    %185 = vector.extract_strided_slice %182 {offsets = [0, 64], sizes = [32, 32], strides = [1, 1]} : vector<32x96xf32> to vector<32x32xf32>
    %186 = vector.extract_strided_slice %176 {offsets = [0, 96], sizes = [32, 32], strides = [1, 1]} : vector<32x128xf32> to vector<32x32xf32>
    %187 = math.tanh %186 : vector<32x32xf32>
    %188 = arith.mulf %151, %184 : vector<32x32xf32>
    %189 = arith.mulf %183, %187 : vector<32x32xf32>
    %190 = arith.addf %188, %189 : vector<32x32xf32>
    %191 = math.tanh %190 : vector<32x32xf32>
    %192 = arith.mulf %185, %191 : vector<32x32xf32>
    %193 = vector.broadcast %3 : vector<1x32xf32> to vector<32x32xf32>
    %194 = arith.mulf %192, %193 : vector<32x32xf32>
    %cst_73 = arith.constant dense<0.000000e+00> : vector<32xf32>
    %195 = vector.multi_reduction <add>, %194, %cst_73 [1] : vector<32x32xf32> to vector<32xf32>
    %196 = vector.shape_cast %195 : vector<32xf32> to vector<32x1xf32>
    %197 = vector.broadcast %4 : vector<1x1xf32> to vector<32x1xf32>
    %198 = arith.addf %196, %197 : vector<32x1xf32>
    %199 = arith.index_cast %c4_i32 : i32 to index
    %c0_74 = arith.constant 0 : index
    %c0_75 = arith.constant 0 : index
    %200 = vector.load %arg8[%199, %c0_74, %c0_75] : memref<8x32x1xf32, #tpu.memory_space<vmem>>, vector<1x32x1xf32>
    %201 = vector.shape_cast %200 : vector<1x32x1xf32> to vector<32x1xf32>
    %202 = vector.shape_cast %198 : vector<32x1xf32> to vector<1x32x1xf32>
    tpu.vector_store %arg8[%199, %c0_74, %c0_75], %202 {strides = array<i32>} : memref<8x32x1xf32, #tpu.memory_space<vmem>>, vector<1x32x1xf32>,
    %c5_i32 = arith.constant 5 : i32
    %203 = arith.index_cast %c5_i32 : i32 to index
    %c0_76 = arith.constant 0 : index
    %c0_77 = arith.constant 0 : index
    %204 = vector.load %arg2[%203, %c0_76, %c0_77] : memref<8x32x8xf32, #tpu.memory_space<vmem>>, vector<1x32x8xf32>
    %205 = vector.shape_cast %204 : vector<1x32x8xf32> to vector<32x8xf32>
    %c0_78 = arith.constant 0 : index
    %c0_79 = arith.constant 0 : index
    %206 = vector.load %arg9[%c0_78, %c0_79] : memref<32x40xf32, #tpu.memory_space<vmem>>, vector<32x8xf32>
    tpu.vector_store %arg9[%c0_78, %c0_79], %205 {strides = array<i32>} : memref<32x40xf32, #tpu.memory_space<vmem>>, vector<32x8xf32>,
    %c0_80 = arith.constant 0 : index
    %c8_81 = arith.constant 8 : index
    %207 = vector.load %arg9[%c0_80, %c8_81] : memref<32x40xf32, #tpu.memory_space<vmem>>, vector<32x32xf32>
    tpu.vector_store %arg9[%c0_80, %c8_81], %192 {strides = array<i32>} : memref<32x40xf32, #tpu.memory_space<vmem>>, vector<32x32xf32>,
    %c0_82 = arith.constant 0 : index
    %c0_83 = arith.constant 0 : index
    %208 = vector.load %arg9[%c0_82, %c0_83] : memref<32x40xf32, #tpu.memory_space<vmem>>, vector<32x40xf32>
    %cst_84 = arith.constant dense<0.000000e+00> : vector<32x128xf32>
    %209 = tpu.matmul %208, %1, %cst_84 {dimension_numbers = #tpu.dot_dimension_numbers<[1], [0], [0], [1], [0, 0, 1, 1], [], []>, precision = #tpu.contract_precision<fp32>} : vector<32x40xf32>, vector<40x128xf32>, vector<32x128xf32> -> vector<32x128xf32>
    %210 = vector.broadcast %198 : vector<32x1xf32> to vector<32x128xf32>
    %211 = vector.broadcast %0 : vector<1x128xf32> to vector<32x128xf32>
    %212 = arith.mulf %210, %211 : vector<32x128xf32>
    %213 = arith.addf %209, %212 : vector<32x128xf32>
    %214 = vector.broadcast %2 : vector<1x128xf32> to vector<32x128xf32>
    %215 = arith.addf %213, %214 : vector<32x128xf32>
    %216 = vector.extract_strided_slice %215 {offsets = [0, 0], sizes = [32, 96], strides = [1, 1]} : vector<32x128xf32> to vector<32x96xf32>
    %217 = arith.negf %216 : vector<32x96xf32>
    %218 = math.exp %217 : vector<32x96xf32>
    %cst_85 = arith.constant 1.000000e+00 : f32
    %219 = vector.broadcast %cst_85 : f32 to vector<32x96xf32>
    %220 = arith.addf %219, %218 : vector<32x96xf32>
    %221 = arith.divf %219, %220 : vector<32x96xf32>
    %222 = vector.extract_strided_slice %221 {offsets = [0, 0], sizes = [32, 32], strides = [1, 1]} : vector<32x96xf32> to vector<32x32xf32>
    %223 = vector.extract_strided_slice %221 {offsets = [0, 32], sizes = [32, 32], strides = [1, 1]} : vector<32x96xf32> to vector<32x32xf32>
    %224 = vector.extract_strided_slice %221 {offsets = [0, 64], sizes = [32, 32], strides = [1, 1]} : vector<32x96xf32> to vector<32x32xf32>
    %225 = vector.extract_strided_slice %215 {offsets = [0, 96], sizes = [32, 32], strides = [1, 1]} : vector<32x128xf32> to vector<32x32xf32>
    %226 = math.tanh %225 : vector<32x32xf32>
    %227 = arith.mulf %190, %223 : vector<32x32xf32>
    %228 = arith.mulf %222, %226 : vector<32x32xf32>
    %229 = arith.addf %227, %228 : vector<32x32xf32>
    %230 = math.tanh %229 : vector<32x32xf32>
    %231 = arith.mulf %224, %230 : vector<32x32xf32>
    %232 = vector.broadcast %3 : vector<1x32xf32> to vector<32x32xf32>
    %233 = arith.mulf %231, %232 : vector<32x32xf32>
    %cst_86 = arith.constant dense<0.000000e+00> : vector<32xf32>
    %234 = vector.multi_reduction <add>, %233, %cst_86 [1] : vector<32x32xf32> to vector<32xf32>
    %235 = vector.shape_cast %234 : vector<32xf32> to vector<32x1xf32>
    %236 = vector.broadcast %4 : vector<1x1xf32> to vector<32x1xf32>
    %237 = arith.addf %235, %236 : vector<32x1xf32>
    %238 = arith.index_cast %c5_i32 : i32 to index
    %c0_87 = arith.constant 0 : index
    %c0_88 = arith.constant 0 : index
    %239 = vector.load %arg8[%238, %c0_87, %c0_88] : memref<8x32x1xf32, #tpu.memory_space<vmem>>, vector<1x32x1xf32>
    %240 = vector.shape_cast %239 : vector<1x32x1xf32> to vector<32x1xf32>
    %241 = vector.shape_cast %237 : vector<32x1xf32> to vector<1x32x1xf32>
    tpu.vector_store %arg8[%238, %c0_87, %c0_88], %241 {strides = array<i32>} : memref<8x32x1xf32, #tpu.memory_space<vmem>>, vector<1x32x1xf32>,
    %c6_i32 = arith.constant 6 : i32
    %242 = arith.index_cast %c6_i32 : i32 to index
    %c0_89 = arith.constant 0 : index
    %c0_90 = arith.constant 0 : index
    %243 = vector.load %arg2[%242, %c0_89, %c0_90] : memref<8x32x8xf32, #tpu.memory_space<vmem>>, vector<1x32x8xf32>
    %244 = vector.shape_cast %243 : vector<1x32x8xf32> to vector<32x8xf32>
    %c0_91 = arith.constant 0 : index
    %c0_92 = arith.constant 0 : index
    %245 = vector.load %arg9[%c0_91, %c0_92] : memref<32x40xf32, #tpu.memory_space<vmem>>, vector<32x8xf32>
    tpu.vector_store %arg9[%c0_91, %c0_92], %244 {strides = array<i32>} : memref<32x40xf32, #tpu.memory_space<vmem>>, vector<32x8xf32>,
    %c0_93 = arith.constant 0 : index
    %c8_94 = arith.constant 8 : index
    %246 = vector.load %arg9[%c0_93, %c8_94] : memref<32x40xf32, #tpu.memory_space<vmem>>, vector<32x32xf32>
    tpu.vector_store %arg9[%c0_93, %c8_94], %231 {strides = array<i32>} : memref<32x40xf32, #tpu.memory_space<vmem>>, vector<32x32xf32>,
    %c0_95 = arith.constant 0 : index
    %c0_96 = arith.constant 0 : index
    %247 = vector.load %arg9[%c0_95, %c0_96] : memref<32x40xf32, #tpu.memory_space<vmem>>, vector<32x40xf32>
    %cst_97 = arith.constant dense<0.000000e+00> : vector<32x128xf32>
    %248 = tpu.matmul %247, %1, %cst_97 {dimension_numbers = #tpu.dot_dimension_numbers<[1], [0], [0], [1], [0, 0, 1, 1], [], []>, precision = #tpu.contract_precision<fp32>} : vector<32x40xf32>, vector<40x128xf32>, vector<32x128xf32> -> vector<32x128xf32>
    %249 = vector.broadcast %237 : vector<32x1xf32> to vector<32x128xf32>
    %250 = vector.broadcast %0 : vector<1x128xf32> to vector<32x128xf32>
    %251 = arith.mulf %249, %250 : vector<32x128xf32>
    %252 = arith.addf %248, %251 : vector<32x128xf32>
    %253 = vector.broadcast %2 : vector<1x128xf32> to vector<32x128xf32>
    %254 = arith.addf %252, %253 : vector<32x128xf32>
    %255 = vector.extract_strided_slice %254 {offsets = [0, 0], sizes = [32, 96], strides = [1, 1]} : vector<32x128xf32> to vector<32x96xf32>
    %256 = arith.negf %255 : vector<32x96xf32>
    %257 = math.exp %256 : vector<32x96xf32>
    %cst_98 = arith.constant 1.000000e+00 : f32
    %258 = vector.broadcast %cst_98 : f32 to vector<32x96xf32>
    %259 = arith.addf %258, %257 : vector<32x96xf32>
    %260 = arith.divf %258, %259 : vector<32x96xf32>
    %261 = vector.extract_strided_slice %260 {offsets = [0, 0], sizes = [32, 32], strides = [1, 1]} : vector<32x96xf32> to vector<32x32xf32>
    %262 = vector.extract_strided_slice %260 {offsets = [0, 32], sizes = [32, 32], strides = [1, 1]} : vector<32x96xf32> to vector<32x32xf32>
    %263 = vector.extract_strided_slice %260 {offsets = [0, 64], sizes = [32, 32], strides = [1, 1]} : vector<32x96xf32> to vector<32x32xf32>
    %264 = vector.extract_strided_slice %254 {offsets = [0, 96], sizes = [32, 32], strides = [1, 1]} : vector<32x128xf32> to vector<32x32xf32>
    %265 = math.tanh %264 : vector<32x32xf32>
    %266 = arith.mulf %229, %262 : vector<32x32xf32>
    %267 = arith.mulf %261, %265 : vector<32x32xf32>
    %268 = arith.addf %266, %267 : vector<32x32xf32>
    %269 = math.tanh %268 : vector<32x32xf32>
    %270 = arith.mulf %263, %269 : vector<32x32xf32>
    %271 = vector.broadcast %3 : vector<1x32xf32> to vector<32x32xf32>
    %272 = arith.mulf %270, %271 : vector<32x32xf32>
    %cst_99 = arith.constant dense<0.000000e+00> : vector<32xf32>
    %273 = vector.multi_reduction <add>, %272, %cst_99 [1] : vector<32x32xf32> to vector<32xf32>
    %274 = vector.shape_cast %273 : vector<32xf32> to vector<32x1xf32>
    %275 = vector.broadcast %4 : vector<1x1xf32> to vector<32x1xf32>
    %276 = arith.addf %274, %275 : vector<32x1xf32>
    %277 = arith.index_cast %c6_i32 : i32 to index
    %c0_100 = arith.constant 0 : index
    %c0_101 = arith.constant 0 : index
    %278 = vector.load %arg8[%277, %c0_100, %c0_101] : memref<8x32x1xf32, #tpu.memory_space<vmem>>, vector<1x32x1xf32>
    %279 = vector.shape_cast %278 : vector<1x32x1xf32> to vector<32x1xf32>
    %280 = vector.shape_cast %276 : vector<32x1xf32> to vector<1x32x1xf32>
    tpu.vector_store %arg8[%277, %c0_100, %c0_101], %280 {strides = array<i32>} : memref<8x32x1xf32, #tpu.memory_space<vmem>>, vector<1x32x1xf32>,
    %c7_i32 = arith.constant 7 : i32
    %281 = arith.index_cast %c7_i32 : i32 to index
    %c0_102 = arith.constant 0 : index
    %c0_103 = arith.constant 0 : index
    %282 = vector.load %arg2[%281, %c0_102, %c0_103] : memref<8x32x8xf32, #tpu.memory_space<vmem>>, vector<1x32x8xf32>
    %283 = vector.shape_cast %282 : vector<1x32x8xf32> to vector<32x8xf32>
    %c0_104 = arith.constant 0 : index
    %c0_105 = arith.constant 0 : index
    %284 = vector.load %arg9[%c0_104, %c0_105] : memref<32x40xf32, #tpu.memory_space<vmem>>, vector<32x8xf32>
    tpu.vector_store %arg9[%c0_104, %c0_105], %283 {strides = array<i32>} : memref<32x40xf32, #tpu.memory_space<vmem>>, vector<32x8xf32>,
    %c0_106 = arith.constant 0 : index
    %c8_107 = arith.constant 8 : index
    %285 = vector.load %arg9[%c0_106, %c8_107] : memref<32x40xf32, #tpu.memory_space<vmem>>, vector<32x32xf32>
    tpu.vector_store %arg9[%c0_106, %c8_107], %270 {strides = array<i32>} : memref<32x40xf32, #tpu.memory_space<vmem>>, vector<32x32xf32>,
    %c0_108 = arith.constant 0 : index
    %c0_109 = arith.constant 0 : index
    %286 = vector.load %arg9[%c0_108, %c0_109] : memref<32x40xf32, #tpu.memory_space<vmem>>, vector<32x40xf32>
    %cst_110 = arith.constant dense<0.000000e+00> : vector<32x128xf32>
    %287 = tpu.matmul %286, %1, %cst_110 {dimension_numbers = #tpu.dot_dimension_numbers<[1], [0], [0], [1], [0, 0, 1, 1], [], []>, precision = #tpu.contract_precision<fp32>} : vector<32x40xf32>, vector<40x128xf32>, vector<32x128xf32> -> vector<32x128xf32>
    %288 = vector.broadcast %276 : vector<32x1xf32> to vector<32x128xf32>
    %289 = vector.broadcast %0 : vector<1x128xf32> to vector<32x128xf32>
    %290 = arith.mulf %288, %289 : vector<32x128xf32>
    %291 = arith.addf %287, %290 : vector<32x128xf32>
    %292 = vector.broadcast %2 : vector<1x128xf32> to vector<32x128xf32>
    %293 = arith.addf %291, %292 : vector<32x128xf32>
    %294 = vector.extract_strided_slice %293 {offsets = [0, 0], sizes = [32, 96], strides = [1, 1]} : vector<32x128xf32> to vector<32x96xf32>
    %295 = arith.negf %294 : vector<32x96xf32>
    %296 = math.exp %295 : vector<32x96xf32>
    %cst_111 = arith.constant 1.000000e+00 : f32
    %297 = vector.broadcast %cst_111 : f32 to vector<32x96xf32>
    %298 = arith.addf %297, %296 : vector<32x96xf32>
    %299 = arith.divf %297, %298 : vector<32x96xf32>
    %300 = vector.extract_strided_slice %299 {offsets = [0, 0], sizes = [32, 32], strides = [1, 1]} : vector<32x96xf32> to vector<32x32xf32>
    %301 = vector.extract_strided_slice %299 {offsets = [0, 32], sizes = [32, 32], strides = [1, 1]} : vector<32x96xf32> to vector<32x32xf32>
    %302 = vector.extract_strided_slice %299 {offsets = [0, 64], sizes = [32, 32], strides = [1, 1]} : vector<32x96xf32> to vector<32x32xf32>
    %303 = vector.extract_strided_slice %293 {offsets = [0, 96], sizes = [32, 32], strides = [1, 1]} : vector<32x128xf32> to vector<32x32xf32>
    %304 = math.tanh %303 : vector<32x32xf32>
    %305 = arith.mulf %268, %301 : vector<32x32xf32>
    %306 = arith.mulf %300, %304 : vector<32x32xf32>
    %307 = arith.addf %305, %306 : vector<32x32xf32>
    %308 = math.tanh %307 : vector<32x32xf32>
    %309 = arith.mulf %302, %308 : vector<32x32xf32>
    %310 = vector.broadcast %3 : vector<1x32xf32> to vector<32x32xf32>
    %311 = arith.mulf %309, %310 : vector<32x32xf32>
    %cst_112 = arith.constant dense<0.000000e+00> : vector<32xf32>
    %312 = vector.multi_reduction <add>, %311, %cst_112 [1] : vector<32x32xf32> to vector<32xf32>
    %313 = vector.shape_cast %312 : vector<32xf32> to vector<32x1xf32>
    %314 = vector.broadcast %4 : vector<1x1xf32> to vector<32x1xf32>
    %315 = arith.addf %313, %314 : vector<32x1xf32>
    %316 = arith.index_cast %c7_i32 : i32 to index
    %c0_113 = arith.constant 0 : index
    %c0_114 = arith.constant 0 : index
    %317 = vector.load %arg8[%316, %c0_113, %c0_114] : memref<8x32x1xf32, #tpu.memory_space<vmem>>, vector<1x32x1xf32>
    %318 = vector.shape_cast %317 : vector<1x32x1xf32> to vector<32x1xf32>
    %319 = vector.shape_cast %315 : vector<32x1xf32> to vector<1x32x1xf32>
    tpu.vector_store %arg8[%316, %c0_113, %c0_114], %319 {strides = array<i32>} : memref<8x32x1xf32, #tpu.memory_space<vmem>>, vector<1x32x1xf32>,
    %c8_i32 = arith.constant 8 : i32
    return
  }
  func.func @transform_0(%arg0: i32) -> (i32, i32) {
    %c0_i32 = arith.constant 0 : i32
    %c0_i32_0 = arith.constant 0 : i32
    return %arg0, %c0_i32 : i32, i32
  }
  func.func @transform_1(%arg0: i32) -> (i32, i32, i32) {
    %c0_i32 = arith.constant 0 : i32
    %c0_i32_0 = arith.constant 0 : i32
    %c0_i32_1 = arith.constant 0 : i32
    return %c0_i32, %arg0, %c0_i32_0 : i32, i32, i32
  }
  func.func @transform_2(%arg0: i32) -> (i32, i32) {
    %c0_i32 = arith.constant 0 : i32
    %c0_i32_0 = arith.constant 0 : i32
    %c0_i32_1 = arith.constant 0 : i32
    return %c0_i32, %c0_i32_0 : i32, i32
  }
  func.func @transform_3(%arg0: i32) -> (i32, i32) {
    %c0_i32 = arith.constant 0 : i32
    %c0_i32_0 = arith.constant 0 : i32
    %c0_i32_1 = arith.constant 0 : i32
    return %c0_i32, %c0_i32_0 : i32, i32
  }
  func.func @transform_4(%arg0: i32) -> (i32, i32) {
    %c0_i32 = arith.constant 0 : i32
    %c0_i32_0 = arith.constant 0 : i32
    %c0_i32_1 = arith.constant 0 : i32
    return %c0_i32, %c0_i32_0 : i32, i32
  }
  func.func @transform_5(%arg0: i32) -> (i32, i32) {
    %c0_i32 = arith.constant 0 : i32
    %c0_i32_0 = arith.constant 0 : i32
    %c0_i32_1 = arith.constant 0 : i32
    return %c0_i32, %c0_i32_0 : i32, i32
  }
  func.func @transform_6(%arg0: i32) -> (i32, i32) {
    %c0_i32 = arith.constant 0 : i32
    %c0_i32_0 = arith.constant 0 : i32
    %c0_i32_1 = arith.constant 0 : i32
    return %c0_i32, %c0_i32_0 : i32, i32
  }
  func.func @transform_7(%arg0: i32) -> (i32, i32, i32) {
    %c0_i32 = arith.constant 0 : i32
    %c0_i32_0 = arith.constant 0 : i32
    %c0_i32_1 = arith.constant 0 : i32
    return %c0_i32, %arg0, %c0_i32_0 : i32, i32, i32
  }
}

</mosaic_0001>

<bundles_post_ra>
// kernel: tpu_custom_call.1
= control target key start
LH: loop header
LB: loop body
LE: loop exit
PB: predicated region body
PF: predicated region fallthrough
CT: control target
= control target key end

     0   :  { %vm45_vm0 = vcmask 64512   ;;  %vm50_vm1 = vcmask 326720   ;;  %v8318_v9 = vmov 0   ;;  %v8319_v18 = vmov 0.0   ;;  %s8320_s29 = smov 32   ;;  %s8321_s15 = smov 72   ;;  %s9967_s3 = inlined_call_operand.vmem [shape: f32[40,128], index: 3, kind: input, shape index: {}]   ;;  %s9968_s1 = inlined_call_operand.vmem [shape: f32[8,32,8], index: 1, kind: input, shape index: {}]   ;;  %s9969_s0 = inlined_call_operand.vmem [shape: f32[32,1], index: 0, kind: input, shape index: {}]   ;;  %s9970_s2 = inlined_call_operand.vmem [shape: f32[1,128], index: 2, kind: input, shape index: {}]   ;;  %s9971_s4 = inlined_call_operand.vmem [shape: f32[1,128], index: 4, kind: input, shape index: {}]   ;;  %s9972_s5 = inlined_call_operand.vmem [shape: f32[1,32], index: 5, kind: input, shape index: {}]   ;;  %s9973_s6 = inlined_call_operand.<no memory space> [shape: f32[1,1], index: 6, kind: input, shape index: {}]   ;;  %s9974_s7 = inlined_call_operand.vmem [shape: f32[8,32,1], index: 7, kind: output, shape index: {}]  }
   0x1   :  { %v33_v0 = vld [vmem:[%s9967_s3 + $0x20] sm:$0xff]  ;;  %v32_v1 = vld [vmem:[%s9967_s3 + $0x18] sm:$0xff]  ;;  %v31_v2 = vld [vmem:[%s9967_s3 + $0x10] sm:$0xff]  ;;  %8051 = vset.pattern.permute.xlu0 %v8318_v9  ;;  %8052 = vset.pattern.permute.xlu1 %v8318_v9  ;;  %vm89_vm2 = vcmask 326656   ;;  %s8322_s17 = smov 64   ;;  %vm863_vm3 = vcmask 261120  }
   0x2   :  { %v8372_v3 = vand.u32 4294901760, %v33_v0  ;;  %v8374_v4 = vand.u32 4294901760, %v32_v1  ;;  %v8376_v5 = vand.u32 4294901760, %v31_v2  ;;  %v30_v6 = vld [vmem:[%s9967_s3 + $0x8] sm:$0xff]  ;;  %v29_v7 = vld [vmem:[%s9967_s3] sm:$0xff]  ;;  %v43_v13 = vld [vmem:[%s9968_s1 + $0x10] sm:$0xff] }
   0x3   :  { %v41_v8 = vld [vmem:[%s9968_s1] sm:$0xff]  ;;  %v8387_v10 = vand.u32 4294901760, %v30_v6  ;;  %v8389_v11 = vand.u32 4294901760, %v29_v7  ;;  %v42_v12 = vld [vmem:[%s9968_s1 + $0x8] sm:$0xff]  ;;  %v44_v14 = vld [vmem:[%s9968_s1 + $0x18] sm:$0xff]  ;;  %48 = vst.msk [vmem:[#allocation2 + $0x10] sm:$0xff] %vm45_vm0, %v43_v13 }
   0x4   :  { %46 = vst.msk [vmem:[#allocation2] sm:$0xff] %vm45_vm0, %v41_v8  ;;  %7278 = vmatprep.subr.mxu0 %v8372_v3  ;;  %v8403_v15 = vsub.f32 %v33_v0, %v8372_v3  ;;  %v8406_v16 = vsub.f32 %v32_v1, %v8374_v4  ;;  %v8409_v17 = vsub.f32 %v31_v2, %v8376_v5  ;;  %47 = vst.msk [vmem:[#allocation2 + $0x8] sm:$0xff] %vm45_vm0, %v42_v12  ;;  %v37_v19 = vld [vmem:[%s9969_s0] sm:$0xff]  ;;  %v39_v20 = vld [vmem:[%s9969_s0 + $0x10] sm:$0xff]  ;;  %vm886_vm4 = vcmask 7168  }
   0x5   :  { %51 = vst.msk [vmem:[#allocation2] sm:$0xff] %vm50_vm1, %v8319_v18  ;;  %7279 = vmatpush3.msra.mxu0 %v8372_v3  ;;  %v8423_v21 = vsub.f32 %v30_v6, %v8387_v10  ;;  %v8426_v22 = vsub.f32 %v29_v7, %v8389_v11  ;;  %52 = vst.msk [vmem:[#allocation2 + $0x8] sm:$0xff] %vm50_vm1, %v8319_v18  ;;  %61 = vperm.xlu0 %8051, %v37_v19   ;;  %v38_v26 = vld [vmem:[%s9969_s0 + $0x8] sm:$0xff]  ;;  %v40_v28 = vld [vmem:[%s9969_s0 + $0x18] sm:$0xff] }
   0x6   :  { %49 = vst.msk [vmem:[#allocation2 + $0x18] sm:$0xff] %vm45_vm0, %v44_v14  ;;  %v8432_v23 = vand.u32 4294901760, %v8403_v15  ;;  %7280 = vmatprep.subr.mxu0 %v8374_v4  ;;  %v8436_v24 = vand.u32 4294901760, %v8406_v16  ;;  %v8439_v25 = vand.u32 4294901760, %v8409_v17  ;;  %71 = vperm.xlu1 %8052, %v39_v20   ;;  %v8588_v20 = vld [vmem:[%s9970_s2] ss:$0 sm:$0xff] }
   0x7   :  { %53 = vst.msk [vmem:[#allocation2 + $0x10] sm:$0xff] %vm50_vm1, %v8319_v18  ;;  %54 = vst.msk [vmem:[#allocation2 + $0x18] sm:$0xff] %vm50_vm1, %v8319_v18  ;;  %7281 = vmatpush3.msra.mxu0 %v8374_v4  ;;  %v8446_v27 = vand.u32 4294901760, %v8423_v21  ;;  %v8459_v32 = vand.u32 4294901760, %v8426_v22 }
   0x8   :  { %v238_v29 = vsub.f32 %v8403_v15, %v8432_v23  ;;  %v245_v30 = vsub.f32 %v8406_v16, %v8436_v24  ;;  %7282 = vmatprep.subr.mxu0 %v8376_v5  ;;  %v252_v31 = vsub.f32 %v8409_v17, %v8439_v25 }
   0x9   :  { %7283 = vmatpush3.msra.mxu0 %v8376_v5  ;;  %66 = vperm.xlu0 %8051, %v38_v26   ;;  %v259_v35 = vsub.f32 %v8423_v21, %v8446_v27  ;;  %v266_v38 = vsub.f32 %v8426_v22, %v8459_v32 }
   0xa   :  { %v8462_v33 = vand.u32 4294901760, %v238_v29  ;;  %v8464_v34 = vand.u32 4294901760, %v245_v30  ;;  %7284 = vmatprep.subr.mxu0 %v8387_v10  ;;  %76 = vperm.xlu1 %8052, %v40_v28   ;;  %v8471_v37 = vand.u32 4294901760, %v252_v31 }
   0xb   :  { %7285 = vmatpush3.msra.mxu0 %v8387_v10  ;;  %v8485_v47 = vand.u32 4294901760, %v259_v35  ;;  %v8498_v52 = vand.u32 4294901760, %v266_v38 }
   0xc   :  { %v55_v36 = vld [vmem:[#allocation2] sm:$0xff]  ;;  %7294 = vmatprep.subr.mxu1 %v8462_v33  ;;  %7286 = vmatprep.subr.mxu0 %v8389_v11  ;;  %v56_v40 = vld [vmem:[#allocation2 + $0x8] sm:$0xff] }
   0xd   :  { %v91_v39 = vsel %vm89_vm2, %v55_v36, 0  ;;  %7295 = vmatpush3.msra.mxu1 %v8462_v33  ;;  %7287 = vmatpush3.msra.mxu0 %v8389_v11  ;;  %v94_v44 = vsel %vm89_vm2, %v56_v40, 0  ;;  %9985 = vst [vmem:[#allocation4_spill] sm:$0xff] %v8498_v52 }
   0xe   :  { %v57_v41 = vld [vmem:[#allocation2 + $0x10] sm:$0xff]  ;;  %v58_v42 = vld [vmem:[#allocation2 + $0x18] sm:$0xff]  ;;  %v8479_v43 = vand.u32 4294901760, %v91_v39  ;;  %7296 = vmatprep.subr.mxu1 %v8464_v34  ;;  %7310 = vmatprep.subr.mxu0 %v8403_v15  ;;  %v8488_v48 = vand.u32 4294901760, %v94_v44 }
   0xf   :  { %v97_v45 = vsel %vm89_vm2, %v57_v41, 0  ;;  %v100_v46 = vsel %vm89_vm2, %v58_v42, 0  ;;  %7297 = vmatpush3.msra.mxu1 %v8464_v34 }
  0x10   :  { %v8490_v49 = vand.u32 4294901760, %v97_v45  ;;  %v8492_v50 = vand.u32 4294901760, %v100_v46  ;;  %v173_v51 = vsub.f32 %v91_v39, %v8479_v43  ;;  %7304 = vmatprep.mubr.f32.mxu1 %v8479_v43  ;;  %7298 = vmatprep.subr.mxu1 %v8471_v37  ;;  %v183_v53 = vsub.f32 %v94_v44, %v8488_v48 }
  0x11   :  { %7299 = vmatpush3.msra.mxu1 %v8471_v37 }
  0x12   :  { %v193_v54 = vsub.f32 %v97_v45, %v8490_v49  ;;  %v8503_v55 = vsub.f32 %v100_v46, %v8492_v50  ;;  %v174_v56 = vand.u32 4294901760, %v173_v51  ;;  %7300 = vmatprep.subr.mxu1 %v8485_v47  ;;  %v184_v57 = vand.u32 4294901760, %v183_v53 }
  0x13   :  { %7301 = vmatpush3.msra.mxu1 %v8485_v47 }
  0x14   :  { %v194_v58 = vand.u32 4294901760, %v193_v54  ;;  %v204_v59 = vand.u32 4294901760, %v8503_v55  ;;  %v175_v60 = vsub.f32 %v173_v51, %v174_v56  ;;  %7302 = vmatprep.subr.mxu1 %v8498_v52  ;;  %v185_v61 = vsub.f32 %v183_v53, %v184_v57 }
  0x15   :  { %7303 = vmatpush3.msra.mxu1 %v8498_v52 }
  0x16   :  { %v195_v62 = vsub.f32 %v193_v54, %v194_v58  ;;  %v205_v63 = vsub.f32 %v8503_v55, %v204_v59  ;;  %v176_v0 = vand.u32 4294901760, %v175_v60  ;;  %7326 = vmatprep.subr.mxu1 %v8372_v3  ;;  %v186_v1 = vand.u32 4294901760, %v185_v61  ;;  %7305 = vmatmul.mubr.f32.vlgmr.msra.gmra.mxu1 %v8488_v48 }
  0x17   :  { %7327 = vmatpush3.msra.mxu1 %v8372_v3  ;;  %7307 = vmatprep.mubr.f32.mxu1 %v8490_v49 }
  0x18   :  { %v196_v2 = vand.u32 4294901760, %v195_v62  ;;  %7288 = vmatprep.mubr.f32.mxu0 %v176_v0  ;;  %7328 = vmatprep.subr.mxu1 %v8374_v4  ;;  %v206_v6 = vand.u32 4294901760, %v205_v63 }
  0x19   :  { %7289 = vmatmul.mubr.f32.vlgmr.msra.gmra.mxu0 %v186_v1  ;;  %7329 = vmatpush3.msra.mxu1 %v8374_v4 }
  0x1a   :  { %7311 = vmatpush3.msra.mxu0 %v8403_v15  ;;  %7291 = vmatprep.mubr.f32.mxu0 %v196_v2  ;;  %v8597_v2 = vld [vmem:[%s9971_s4] ss:$0 sm:$0xff] }
  0x1b   :  { %7312 = vmatprep.subr.mxu0 %v8406_v16  ;;  %7330 = vmatprep.subr.mxu1 %v8376_v5 }
  0x1c   :  { %7313 = vmatpush3.msra.mxu0 %v8406_v16  ;;  %7331 = vmatpush3.msra.mxu1 %v8376_v5 }
  0x1d   :  { %7314 = vmatprep.subr.mxu0 %v8409_v17  ;;  %7292 = vmatmul.mubr.f32.gmra.mxu0 %v206_v6 }
  0x1e   :  { %7315 = vmatpush3.msra.mxu0 %v8409_v17  ;;  %7332 = vmatprep.subr.mxu1 %v8387_v10 }
  0x1f   :  { %7316 = vmatprep.subr.mxu0 %v8423_v21  ;;  %7308 = vmatmul.mubr.f32.gmra.mxu1 %v8492_v50 }
  0x20   :  { %7317 = vmatpush3.msra.mxu0 %v8423_v21  ;;  %7333 = vmatpush3.msra.mxu1 %v8387_v10 }
  0x21   :  { %7318 = vmatprep.subr.mxu0 %v8426_v22  ;;  %7334 = vmatprep.subr.mxu1 %v8389_v11 }
  0x22   :  { %7319 = vmatpush3.msra.mxu0 %v8426_v22  ;;  %7320 = vmatprep.mubr.f32.mxu0 %v173_v51 }
  0x23   :  { %7335 = vmatpush3.msra.mxu1 %v8389_v11  ;;  %7321 = vmatmul.mubr.f32.vlgmr.msra.gmra.mxu0 %v183_v53 }
  0x24   :  { %7336 = vmatprep.mubr.f32.mxu1 %v174_v56  ;;  %7342 = vmatprep.subr.mxu0 %v8432_v23 }
  0x25   :  { %7358 = vmatprep.subr.mxu1 %v8372_v3  ;;  %7337 = vmatmul.mubr.f32.vlgmr.msra.gmra.mxu1 %v184_v57 }
  0x26   :  { %7343 = vmatpush3.msra.mxu0 %v8432_v23  ;;  %7359 = vmatpush3.msra.mxu1 %v8372_v3 }
  0x27   :  { %7344 = vmatprep.subr.mxu0 %v8436_v24  ;;  %7360 = vmatprep.subr.mxu1 %v8374_v4 }
  0x28   :  { %7323 = vmatprep.mubr.f32.mxu0 %v193_v54  ;;  %7345 = vmatpush3.msra.mxu0 %v8436_v24 }
  0x29   :  { %7361 = vmatpush3.msra.mxu1 %v8374_v4  ;;  %7324 = vmatmul.mubr.f32.gmra.mxu0 %v8503_v55 }
  0x2a   :  { %7346 = vmatprep.subr.mxu0 %v8439_v25  ;;  %7362 = vmatprep.subr.mxu1 %v8376_v5 }
  0x2b   :  { %7339 = vmatprep.mubr.f32.mxu1 %v194_v58  ;;  %7347 = vmatpush3.msra.mxu0 %v8439_v25 }
  0x2c   :  { %7363 = vmatpush3.msra.mxu1 %v8376_v5  ;;  %7348 = vmatprep.subr.mxu0 %v8446_v27 }
  0x2d   :  { %7340 = vmatmul.mubr.f32.gmra.mxu1 %v204_v59  ;;  %7364 = vmatprep.subr.mxu1 %v8387_v10 }
  0x2e   :  { %7349 = vmatpush3.msra.mxu0 %v8446_v27  ;;  %7365 = vmatpush3.msra.mxu1 %v8387_v10 }
  0x2f   :  { %7350 = vmatprep.subr.mxu0 %v8459_v32  ;;  %7366 = vmatprep.subr.mxu1 %v8389_v11 }
  0x30   :  { %7351 = vmatpush3.msra.mxu0 %v8459_v32  ;;  %7352 = vmatprep.mubr.f32.mxu0 %v8479_v43 }
  0x31   :  { %7367 = vmatpush3.msra.mxu1 %v8389_v11  ;;  %7368 = vmatprep.mubr.f32.mxu1 %v8479_v43 }
  0x32   :  { %7353 = vmatmul.mubr.f32.vlgmr.msra.gmra.mxu0 %v8488_v48  ;;  %7369 = vmatmul.mubr.f32.vlgmr.msra.gmra.mxu1 %v8488_v48 }
  0x33   :  { %7355 = vmatprep.mubr.f32.mxu0 %v8490_v49  ;;  %7371 = vmatprep.mubr.f32.mxu1 %v8490_v49 }
  0x34   :  { %7390 = vmatprep.subr.mxu1 %v8462_v33  ;;  %7374 = vmatprep.subr.mxu0 %v8372_v3 }
  0x35   :  { %7391 = vmatpush3.msra.mxu1 %v8462_v33  ;;  %7375 = vmatpush3.msra.mxu0 %v8372_v3 }
  0x36   :  { %7356 = vmatmul.mubr.f32.gmra.mxu0 %v8492_v50  ;;  %7372 = vmatmul.mubr.f32.gmra.mxu1 %v8492_v50 }
  0x37   :  { %7392 = vmatprep.subr.mxu1 %v8464_v34  ;;  %7376 = vmatprep.subr.mxu0 %v8374_v4 }
  0x38   :  { %7393 = vmatpush3.msra.mxu1 %v8464_v34  ;;  %7377 = vmatpush3.msra.mxu0 %v8374_v4 }
  0x39   :  { %7394 = vmatprep.subr.mxu1 %v8471_v37  ;;  %7378 = vmatprep.subr.mxu0 %v8376_v5 }
  0x3a   :  { %7395 = vmatpush3.msra.mxu1 %v8471_v37  ;;  %7379 = vmatpush3.msra.mxu0 %v8376_v5 }
  0x3b   :  { %7396 = vmatprep.subr.mxu1 %v8485_v47  ;;  %7380 = vmatprep.subr.mxu0 %v8387_v10 }
  0x3c   :  { %7397 = vmatpush3.msra.mxu1 %v8485_v47  ;;  %7381 = vmatpush3.msra.mxu0 %v8387_v10 }
  0x3d   :  { %7398 = vmatprep.subr.mxu1 %v8498_v52  ;;  %7382 = vmatprep.subr.mxu0 %v8389_v11 }
  0x3e   :  { %7399 = vmatpush3.msra.mxu1 %v8498_v52  ;;  %7383 = vmatpush3.msra.mxu0 %v8389_v11 }
  0x3f   :  { %7422 = vmatprep.subr.mxu1 %v8372_v3  ;;  %7406 = vmatprep.subr.mxu0 %v8403_v15 }
  0x80   :  { %v62_v9 = vpop.permute.xlu0 %61 }
  0x81   :  { %v72_v18 = vpop.permute.xlu1 %71  ;;  %v85_v36 = vmul.f32 %v8588_v20, %v62_v9 }
  0x82   :  { %v87_v44 = vmul.f32 %v8588_v20, %v72_v18 }
  0x84   :  { %v67_v26 = vpop.permute.xlu0 %66 }
  0x85   :  { %v86_v30 = vmul.f32 %v8588_v20, %v67_v26  ;;  %v77_v31 = vpop.permute.xlu1 %76 }
  0x86   :  { %v88_v40 = vmul.f32 %v8588_v20, %v77_v31 }
  0xd6   :  { %v7306_v8 = vpop.f32.mrf.mxu1 }
  0xd8   :  { %v304_v14 = vpop.f32.mrf.mxu1 }
  0xd9   :  { %v7290_v7 = vpop.f32.mrf.mxu0 }
  0xda   :  { %v189_v39 = vadd.f32 %v7290_v7, %v86_v30 }
  0xdb   :  { %v178_v12 = vpop.f32.mrf.mxu0 }
  0xdc   :  { %v179_v42 = vadd.f32 %v178_v12, %v85_v36  ;;  %v311_v45 = vadd.f32 %v7306_v8, %v189_v39 }
  0xdd   :  { %v7293_v13 = vpop.f32.mrf.mxu0 }
  0xde   :  { %v209_v46 = vadd.f32 %v7293_v13, %v88_v40  ;;  %v305_v49 = vadd.f32 %v304_v14, %v179_v42 }
  0xdf   :  { %v7309_v19 = vpop.f32.mrf.mxu1  ;;  %v198_v28 = vpop.f32.mrf.mxu0 }
  0xe0   :  { %v199_v53 = vadd.f32 %v198_v28, %v87_v44  ;;  %v323_v54 = vadd.f32 %v7309_v19, %v209_v46 }
  0xe1   :  { %v316_v29 = vpop.f32.mrf.mxu1 }
  0xe2   :  { %v317_v60 = vadd.f32 %v316_v29, %v199_v53 }
  0xe3   :  { %v7322_v35 = vpop.f32.mrf.mxu0 }
  0xe4   :  { %v412_v50 = vadd.f32 %v7322_v35, %v311_v45 }
  0xe5   :  { %v7338_v38 = vpop.f32.mrf.mxu1  ;;  %v404_v41 = vpop.f32.mrf.mxu0 }
  0xe6   :  { %v405_v55 = vadd.f32 %v404_v41, %v305_v49  ;;  %v512_v58 = vadd.f32 %v7338_v38, %v412_v50 }
  0xe7   :  { %v503_v43 = vpop.f32.mrf.mxu1 }
  0xe8   :  { %v504_v63 = vadd.f32 %v503_v43, %v405_v55 }
  0xe9   :  { %v7325_v48 = vpop.f32.mrf.mxu0 }
  0xea   :  { %v426_v59 = vadd.f32 %v7325_v48, %v323_v54 }
  0xeb   :  { %v418_v57 = vpop.f32.mrf.mxu0 }
  0xec   :  { %v419_v1 = vadd.f32 %v418_v57, %v317_v60 }
  0xed   :  { %v7341_v51 = vpop.f32.mrf.mxu1 }
  0xee   :  { %v528_v8 = vadd.f32 %v7341_v51, %v426_v59 }
  0xef   :  { %v519_v56 = vpop.f32.mrf.mxu1 }
  0xf0   :  { %v520_v28 = vadd.f32 %v519_v56, %v419_v1 }
  0xf2   :  { %v7354_v61 = vpop.f32.mrf.mxu0  ;;  %v7370_v62 = vpop.f32.mrf.mxu1 }
  0xf3   :  { %v620_v0 = vadd.f32 %v7354_v61, %v512_v58 }
  0xf4   :  { %v613_v6 = vpop.f32.mrf.mxu0  ;;  %v707_v7 = vpop.f32.mrf.mxu1 }
  0xf5   :  { %v714_v9 = vadd.f32 %v7370_v62, %v620_v0  ;;  %v614_v12 = vadd.f32 %v613_v6, %v504_v63 }
  0xf6   :  { %v7357_v13 = vpop.f32.mrf.mxu0  ;;  %v7373_v26 = vpop.f32.mrf.mxu1 }
  0xf7   :  { %v736_v14 = vadd.f32 %v8597_v2, %v714_v9  ;;  %v708_v18 = vadd.f32 %v707_v7, %v614_v12  ;;  %v632_v19 = vadd.f32 %v7357_v13, %v528_v8 }
  0xf8   :  { %v625_v29 = vpop.f32.mrf.mxu0  ;;  %v719_v38 = vpop.f32.mrf.mxu1 }
  0xf9   :  { %8053 = vtanh.f32 %v736_v14  ;;  %v735_v30 = vadd.f32 %v8597_v2, %v708_v18  ;;  %v726_v31 = vadd.f32 %v7373_v26, %v632_v19  ;;  %v626_v35 = vadd.f32 %v625_v29, %v520_v28 }
  0xfa   :  { %v6757_v45 = vmul.f32 -1.442695, %v736_v14 }
  0xfb   :  { %v738_v36 = vadd.f32 %v8597_v2, %v726_v31  ;;  %8055 = vtanh.f32 %v735_v30  ;;  %v720_v39 = vadd.f32 %v719_v38, %v626_v35  ;;  %v6756_v46 = vmul.f32 -1.442695, %v735_v30 }
  0xfd   :  { %8057 = vtanh.f32 %v738_v36  ;;  %v737_v40 = vadd.f32 %v8597_v2, %v720_v39  ;;  %v6759_v48 = vmul.f32 -1.442695, %v738_v36 }
  0xff   :  { %8059 = vtanh.f32 %v737_v40  ;;  %v6758_v49 = vmul.f32 -1.442695, %v737_v40  ;;  %v6763_v40 = vld [vmem:[%s9968_s1 + $0x28] sm:$0xff] }
 0x100   :  { %8061 = vpow2.f32 %v6757_v45  ;;  %897 = vst.msk [vmem:[#allocation2 + $0x8] sm:$0xff] %vm45_vm0, %v6763_v40  ;;  %v6765_v45 = vld [vmem:[%s9968_s1 + $0x38] sm:$0xff] }
 0x101   :  { %8063 = vpow2.f32 %v6756_v46  ;;  %899 = vst.msk [vmem:[#allocation2 + $0x18] sm:$0xff] %vm45_vm0, %v6765_v45  ;;  %v6764_v46 = vld [vmem:[%s9968_s1 + $0x30] sm:$0xff] }
 0x102   :  { %8065 = vpow2.f32 %v6759_v48  ;;  %898 = vst.msk [vmem:[#allocation2 + $0x10] sm:$0xff] %vm45_vm0, %v6764_v46 }
 0x103   :  { %8067 = vpow2.f32 %v6758_v49 }
 0x106   :  { %v8054_v41 = vpop.eup %8053 }
 0x107   :  { %777 = vrot.lane.b32.xlu1 %v8054_v41, %s8320_s29 }
 0x108   :  { %v8056_v42 = vpop.eup %8055 }
 0x109   :  { %775 = vrot.lane.b32.xlu0 %v8056_v42, %s8320_s29 }
 0x10a   :  { %v8058_v43 = vpop.eup %8057 }
 0x10b   :  { %781 = vrot.lane.b32.xlu1 %v8058_v43, %s8320_s29 }
 0x10c   :  { %v8060_v44 = vpop.eup %8059 }
 0x10d   :  { %779 = vrot.lane.b32.xlu0 %v8060_v44, %s8320_s29  ;;  %v8062_v50 = vpop.eup %8061  ;;  %v6762_v44 = vld [vmem:[%s9968_s1 + $0x20] sm:$0xff] }
 0x10e   :  { %v8064_v51 = vpop.eup %8063  ;;  %v752_v53 = vadd.f32 1.0, %v8062_v50  ;;  %896 = vst.msk [vmem:[#allocation2] sm:$0xff] %vm45_vm0, %v6762_v44 }
 0x10f   :  { %v8066_v54 = vpop.eup %8065  ;;  %v751_v55 = vadd.f32 1.0, %v8064_v51 }
 0x110   :  { %v8068_v56 = vpop.eup %8067  ;;  %8069 = vrcp.f32 %v752_v53  ;;  %v754_v57 = vadd.f32 1.0, %v8066_v54 }
 0x111   :  { %8071 = vrcp.f32 %v751_v55  ;;  %v753_v58 = vadd.f32 1.0, %v8068_v56 }
 0x112   :  { %8073 = vrcp.f32 %v754_v57  ;;  %v6760_v57 = vld [vmem:[%s9972_s5] ss:$0 sm:$0xff] }
 0x113   :  { %8075 = vrcp.f32 %v753_v58 }
 0x11d   :  { %v8070_v59 = vpop.eup %8069 }
 0x11e   :  { %v8072_v62 = vpop.eup %8071  ;;  %v768_v13 = vmul.f32 0.0, %v8070_v59 }
 0x11f   :  { %v8074_v1 = vpop.eup %8073  ;;  %v767_v19 = vmul.f32 0.0, %v8072_v62 }
 0x120   :  { %v8076_v8 = vpop.eup %8075  ;;  %v770_v29 = vmul.f32 0.0, %v8074_v1 }
 0x121   :  { %v769_v35 = vmul.f32 0.0, %v8076_v8 }
 0x179   :  { %v778_v60 = vpop.permute.xlu1 %777 }
 0x17a   :  { %v788_v61 = vmul.f32 %v8070_v59, %v778_v60 }
 0x17b   :  { %v776_v63 = vpop.permute.xlu0 %775 }
 0x17c   :  { %797 = vrot.lane.b32.xlu1 %v788_v61, %s8320_s29  ;;  %v787_v0 = vmul.f32 %v8072_v62, %v776_v63 }
 0x17d   :  { %v782_v6 = vpop.permute.xlu1 %781 }
 0x17e   :  { %v790_v7 = vmul.f32 %v8074_v1, %v782_v6  ;;  %795 = vrot.lane.b32.xlu0 %v787_v0, %s8320_s29 }
 0x17f   :  { %v780_v9 = vpop.permute.xlu0 %779 }
 0x180   :  { %v789_v12 = vmul.f32 %v8076_v8, %v780_v9  ;;  %801 = vrot.lane.b32.xlu1 %v790_v7, %s8320_s29 }
 0x182   :  { %799 = vrot.lane.b32.xlu0 %v789_v12, %s8320_s29 }
 0x1ee   :  { %v798_v14 = vpop.permute.xlu1 %797 }
 0x1ef   :  { %v8611_v18 = vadd.f32 %v798_v14, %v768_v13 }
 0x1f0   :  { %v796_v26 = vpop.permute.xlu0 %795 }
 0x1f1   :  { %8077 = vtanh.f32 %v8611_v18  ;;  %v8614_v28 = vadd.f32 %v796_v26, %v767_v19 }
 0x1f2   :  { %v802_v30 = vpop.permute.xlu1 %801 }
 0x1f3   :  { %8079 = vtanh.f32 %v8614_v28  ;;  %v8617_v31 = vadd.f32 %v802_v30, %v770_v29 }
 0x1f4   :  { %v800_v36 = vpop.permute.xlu0 %799 }
 0x1f5   :  { %8081 = vtanh.f32 %v8617_v31  ;;  %v8620_v38 = vadd.f32 %v800_v36, %v769_v35 }
 0x1f7   :  { %8083 = vtanh.f32 %v8620_v38 }
 0x1fe   :  { %v8078_v39 = vpop.eup %8077 }
 0x1ff   :  { %821 = vrot.lane.b32.xlu1 %v8078_v39, %s8320_s29 }
 0x200   :  { %v8080_v41 = vpop.eup %8079 }
 0x201   :  { %819 = vrot.lane.b32.xlu0 %v8080_v41, %s8320_s29 }
 0x202   :  { %v8082_v42 = vpop.eup %8081 }
 0x203   :  { %825 = vrot.lane.b32.xlu1 %v8082_v42, %s8320_s29 }
 0x204   :  { %v8084_v43 = vpop.eup %8083 }
 0x205   :  { %823 = vrot.lane.b32.xlu0 %v8084_v43, %s8320_s29 }
 0x271   :  { %v822_v48 = vpop.permute.xlu1 %821 }
 0x272   :  { %v832_v49 = vmul.f32 %v8070_v59, %v822_v48 }
 0x273   :  { %v820_v50 = vpop.permute.xlu0 %819 }
 0x274   :  { %906 = vrot.lane.b32.xlu1 %v832_v49, %s8321_s15  ;;  %v831_v51 = vmul.f32 %v8072_v62, %v820_v50 }
 0x275   :  { %v826_v53 = vpop.permute.xlu1 %825 }
 0x276   :  { %v834_v54 = vmul.f32 %v8074_v1, %v826_v53  ;;  %904 = vrot.lane.b32.xlu0 %v831_v51, %s8321_s15 }
 0x277   :  { %v824_v55 = vpop.permute.xlu0 %823 }
 0x278   :  { %v833_v56 = vmul.f32 %v8076_v8, %v824_v55  ;;  %910 = vrot.lane.b32.xlu1 %v834_v54, %s8321_s15 }
 0x27a   :  { %908 = vrot.lane.b32.xlu0 %v833_v56, %s8321_s15 }
 0x27e   :  { %840 = vrot.lane.b32.xlu0 %v6760_v57, %s8322_s17  ;;  %v12_v57 = vstv %s9973_s6 }
 0x27f   :  { %13 = vst [vmem:[#allocation3] sm:$0x1] %v12_v57 }
 0x2e6   :  { %v907_v58 = vpop.permute.xlu1 %906 }
 0x2e7   :  { %917 = vst.msk [vmem:[#allocation2 + $0x8] sm:$0xff] %vm50_vm1, %v907_v58 }
 0x2e8   :  { %v905_v59 = vpop.permute.xlu0 %904 }
 0x2e9   :  { %916 = vst.msk [vmem:[#allocation2] sm:$0xff] %vm50_vm1, %v905_v59 }
 0x2ea   :  { %v911_v60 = vpop.permute.xlu1 %910 }
 0x2eb   :  { %919 = vst.msk [vmem:[#allocation2 + $0x18] sm:$0xff] %vm50_vm1, %v911_v60 }
 0x2ec   :  { %v909_v61 = vpop.permute.xlu0 %908 }
 0x2ed   :  { %918 = vst.msk [vmem:[#allocation2 + $0x10] sm:$0xff] %vm50_vm1, %v909_v61 }
 0x2ee   :  { %v921_v62 = vld [vmem:[#allocation2 + $0x8] sm:$0xff] }
 0x2ef   :  { %v952_v63 = vsel %vm89_vm2, %v921_v62, 0 }
 0x2f0   :  { %v8656_v0 = vand.u32 4294901760, %v952_v63  ;;  %v8658_v1 = vpop.permute.xlu0 %840  ;;  %v920_v6 = vld [vmem:[#allocation2] sm:$0xff] }
 0x2f1   :  { %v844_v7 = vmul.f32 %v8658_v1, %v832_v49  ;;  %v843_v8 = vmul.f32 %v8658_v1, %v831_v51  ;;  %v949_v9 = vsel %vm89_vm2, %v920_v6, 0  ;;  %v846_v36 = vmul.f32 %v8658_v1, %v834_v54 }
 0x2f2   :  { %v8664_v12 = vsub.f32 %v952_v63, %v8656_v0  ;;  %v8666_v13 = vand.u32 4294901760, %v949_v9  ;;  %v923_v14 = vld [vmem:[#allocation2 + $0x18] sm:$0xff]  ;;  %v845_v40 = vmul.f32 %v8658_v1, %v833_v56 }
 0x2f3   :  { %853 = vrot.lane.b32.xlu0 %v844_v7, %s8322_s17  ;;  %851 = vrot.lane.b32.xlu1 %v843_v8, %s8322_s17  ;;  %v958_v19 = vsel %vm89_vm2, %v923_v14, 0  ;;  %v8765_v7 = vld [vmem:[#allocation3] ss:$0 sm:$0xff] }
 0x2f4   :  { %v1042_v26 = vand.u32 4294901760, %v8664_v12  ;;  %7400 = vmatprep.mubr.f32.mxu1 %v8666_v13  ;;  %v922_v29 = vld [vmem:[#allocation2 + $0x10] sm:$0xff]  ;;  %v8673_v30 = vand.u32 4294901760, %v958_v19  ;;  %v1031_v35 = vsub.f32 %v949_v9, %v8666_v13  ;;  %9986 = vst [vmem:[#allocation5_spill] sm:$0xff] %v8765_v7 }
 0x2f5   :  { %7401 = vmatmul.mubr.f32.vlgmr.msra.gmra.mxu1 %v8656_v0  ;;  %v955_v39 = vsel %vm89_vm2, %v922_v29, 0 }
 0x2f6   :  { %7423 = vmatpush3.msra.mxu1 %v8372_v3  ;;  %v8681_v41 = vand.u32 4294901760, %v955_v39  ;;  %v1032_v42 = vand.u32 4294901760, %v1031_v35  ;;  %v1061_v43 = vsub.f32 %v958_v19, %v8673_v30  ;;  %v1043_v44 = vsub.f32 %v8664_v12, %v1042_v26 }
 0x2f7   :  { %7424 = vmatprep.subr.mxu1 %v8374_v4  ;;  %857 = vrot.lane.b32.xlu0 %v846_v36, %s8322_s17 }
 0x2f8   :  { %7425 = vmatpush3.msra.mxu1 %v8374_v4  ;;  %855 = vrot.lane.b32.xlu1 %v845_v40, %s8322_s17  ;;  %v1033_v45 = vsub.f32 %v1031_v35, %v1032_v42  ;;  %v1051_v46 = vsub.f32 %v955_v39, %v8681_v41  ;;  %v1062_v50 = vand.u32 4294901760, %v1061_v43  ;;  %v1044_v51 = vand.u32 4294901760, %v1043_v44 }
 0x2f9   :  { %7403 = vmatprep.mubr.f32.mxu1 %v8681_v41  ;;  %7426 = vmatprep.subr.mxu1 %v8376_v5 }
 0x2fa   :  { %7404 = vmatmul.mubr.f32.gmra.mxu1 %v8673_v30  ;;  %v1034_v48 = vand.u32 4294901760, %v1033_v45  ;;  %v1052_v49 = vand.u32 4294901760, %v1051_v46  ;;  %v1063_v55 = vsub.f32 %v1061_v43, %v1062_v50 }
 0x2fb   :  { %7427 = vmatpush3.msra.mxu1 %v8376_v5  ;;  %7432 = vmatprep.mubr.f32.mxu1 %v1032_v42 }
 0x2fc   :  { %7428 = vmatprep.subr.mxu1 %v8387_v10  ;;  %7384 = vmatprep.mubr.f32.mxu0 %v1034_v48  ;;  %v1053_v53 = vsub.f32 %v1051_v46, %v1052_v49  ;;  %v1064_v56 = vand.u32 4294901760, %v1063_v55 }
 0x2fd   :  { %7429 = vmatpush3.msra.mxu1 %v8387_v10  ;;  %7385 = vmatmul.mubr.f32.vlgmr.msra.gmra.mxu0 %v1044_v51 }
 0x2fe   :  { %7430 = vmatprep.subr.mxu1 %v8389_v11  ;;  %7407 = vmatpush3.msra.mxu0 %v8403_v15  ;;  %v1054_v54 = vand.u32 4294901760, %v1053_v53 }
 0x2ff   :  { %7431 = vmatpush3.msra.mxu1 %v8389_v11  ;;  %7408 = vmatprep.subr.mxu0 %v8406_v16 }
 0x300   :  { %7433 = vmatmul.mubr.f32.vlgmr.msra.gmra.mxu1 %v1042_v26  ;;  %7454 = vmatprep.subr.mxu1 %v8372_v3 }
 0x301   :  { %7409 = vmatpush3.msra.mxu0 %v8406_v16  ;;  %7435 = vmatprep.mubr.f32.mxu1 %v1052_v49 }
 0x302   :  { %7455 = vmatpush3.msra.mxu1 %v8372_v3  ;;  %7387 = vmatprep.mubr.f32.mxu0 %v1054_v54 }
 0x303   :  { %7410 = vmatprep.subr.mxu0 %v8409_v17  ;;  %7456 = vmatprep.subr.mxu1 %v8374_v4 }
 0x304   :  { %7388 = vmatmul.mubr.f32.gmra.mxu0 %v1064_v56  ;;  %7457 = vmatpush3.msra.mxu1 %v8374_v4 }
 0x305   :  { %7411 = vmatpush3.msra.mxu0 %v8409_v17  ;;  %7416 = vmatprep.mubr.f32.mxu0 %v1031_v35 }
 0x306   :  { %7412 = vmatprep.subr.mxu0 %v8423_v21  ;;  %7436 = vmatmul.mubr.f32.gmra.mxu1 %v1062_v50 }
 0x307   :  { %7458 = vmatprep.subr.mxu1 %v8376_v5  ;;  %7413 = vmatpush3.msra.mxu0 %v8423_v21 }
 0x308   :  { %7459 = vmatpush3.msra.mxu1 %v8376_v5  ;;  %7464 = vmatprep.mubr.f32.mxu1 %v8666_v13 }
 0x309   :  { %7414 = vmatprep.subr.mxu0 %v8426_v22  ;;  %7460 = vmatprep.subr.mxu1 %v8387_v10 }
 0x30a   :  { %7415 = vmatpush3.msra.mxu0 %v8426_v22  ;;  %7461 = vmatpush3.msra.mxu1 %v8387_v10 }
 0x30b   :  { %7417 = vmatmul.mubr.f32.vlgmr.msra.gmra.mxu0 %v8664_v12  ;;  %7438 = vmatprep.subr.mxu0 %v8432_v23 }
 0x30c   :  { %7462 = vmatprep.subr.mxu1 %v8389_v11  ;;  %7419 = vmatprep.mubr.f32.mxu0 %v1051_v46 }
 0x30d   :  { %7439 = vmatpush3.msra.mxu0 %v8432_v23  ;;  %7463 = vmatpush3.msra.mxu1 %v8389_v11 }
 0x30e   :  { %7440 = vmatprep.subr.mxu0 %v8436_v24  ;;  %7465 = vmatmul.mubr.f32.vlgmr.msra.gmra.mxu1 %v8656_v0 }
 0x30f   :  { %7441 = vmatpush3.msra.mxu0 %v8436_v24  ;;  %7467 = vmatprep.mubr.f32.mxu1 %v8681_v41 }
 0x310   :  { %7420 = vmatmul.mubr.f32.gmra.mxu0 %v1061_v43  ;;  %7442 = vmatprep.subr.mxu0 %v8439_v25 }
 0x311   :  { %7443 = vmatpush3.msra.mxu0 %v8439_v25  ;;  %7448 = vmatprep.mubr.f32.mxu0 %v8666_v13 }
 0x312   :  { %7444 = vmatprep.subr.mxu0 %v8446_v27  ;;  %7468 = vmatmul.mubr.f32.gmra.mxu1 %v8673_v30 }
 0x313   :  { %7445 = vmatpush3.msra.mxu0 %v8446_v27  ;;  %7486 = vmatprep.subr.mxu1 %v8462_v33 }
 0x314   :  { %7446 = vmatprep.subr.mxu0 %v8459_v32  ;;  %7487 = vmatpush3.msra.mxu1 %v8462_v33 }
 0x315   :  { %7447 = vmatpush3.msra.mxu0 %v8459_v32  ;;  %7488 = vmatprep.subr.mxu1 %v8464_v34 }
 0x316   :  { %7449 = vmatmul.mubr.f32.vlgmr.msra.gmra.mxu0 %v8656_v0  ;;  %7489 = vmatpush3.msra.mxu1 %v8464_v34 }
 0x317   :  { %7451 = vmatprep.mubr.f32.mxu0 %v8681_v41  ;;  %7490 = vmatprep.subr.mxu1 %v8471_v37 }
 0x318   :  { %7491 = vmatpush3.msra.mxu1 %v8471_v37  ;;  %7470 = vmatprep.subr.mxu0 %v8372_v3 }
 0x319   :  { %7492 = vmatprep.subr.mxu1 %v8485_v47  ;;  %7471 = vmatpush3.msra.mxu0 %v8372_v3 }
 0x31a   :  { %7452 = vmatmul.mubr.f32.gmra.mxu0 %v8673_v30  ;;  %7493 = vmatpush3.msra.mxu1 %v8485_v47 }
 0x31b   :  { %7494 = vmatprep.subr.mxu1 %v8498_v52  ;;  %7472 = vmatprep.subr.mxu0 %v8374_v4 }
 0x31c   :  { %7495 = vmatpush3.msra.mxu1 %v8498_v52  ;;  %7473 = vmatpush3.msra.mxu0 %v8374_v4 }
 0x31d   :  { %7518 = vmatprep.subr.mxu1 %v8372_v3  ;;  %7474 = vmatprep.subr.mxu0 %v8376_v5 }
 0x31e   :  { %7475 = vmatpush3.msra.mxu0 %v8376_v5 }
 0x31f   :  { %7476 = vmatprep.subr.mxu0 %v8387_v10 }
 0x320   :  { %7477 = vmatpush3.msra.mxu0 %v8387_v10 }
 0x321   :  { %7478 = vmatprep.subr.mxu0 %v8389_v11 }
 0x322   :  { %7479 = vmatpush3.msra.mxu0 %v8389_v11 }
 0x323   :  { %7502 = vmatprep.subr.mxu0 %v8403_v15 }
 0x365   :  { %v854_v58 = vpop.permute.xlu0 %853  ;;  %v852_v59 = vpop.permute.xlu1 %851 }
 0x366   :  { %v867_v60 = vsel %vm863_vm3, %v854_v58, 0.0  ;;  %v864_v61 = vsel %vm863_vm3, %v852_v59, 0.0 }
 0x367   :  { %868 = vadd.xlane.f32.xlu0 %v867_v60  ;;  %865 = vadd.xlane.f32.xlu1 %v864_v61 }
 0x369   :  { %v858_v62 = vpop.permute.xlu0 %857 }
 0x36a   :  { %v856_v63 = vpop.permute.xlu1 %855  ;;  %v873_v0 = vsel %vm863_vm3, %v858_v62, 0.0 }
 0x36b   :  { %874 = vadd.xlane.f32.xlu1 %v873_v0  ;;  %v870_v6 = vsel %vm863_vm3, %v856_v63, 0.0 }
 0x36c   :  { %871 = vadd.xlane.f32.xlu0 %v870_v6 }
 0x3b5   :  { %v7402_v35 = vpop.f32.mrf.mxu1 }
 0x3b7   :  { %v1162_v39 = vpop.f32.mrf.mxu1 }
 0x3ba   :  { %v7405_v41 = vpop.f32.mrf.mxu1 }
 0x3bc   :  { %v1174_v43 = vpop.f32.mrf.mxu1 }
 0x3bd   :  { %v7386_v30 = vpop.f32.mrf.mxu0 }
 0x3bf   :  { %v1036_v36 = vpop.f32.mrf.mxu0 }
 0x3c0   :  { %v7434_v45 = vpop.f32.mrf.mxu1 }
 0x3c2   :  { %v1361_v48 = vpop.f32.mrf.mxu1 }
 0x3c4   :  { %v7389_v40 = vpop.f32.mrf.mxu0 }
 0x3c6   :  { %v1056_v42 = vpop.f32.mrf.mxu0  ;;  %v7437_v50 = vpop.f32.mrf.mxu1 }
 0x3c8   :  { %v1377_v57 = vpop.f32.mrf.mxu1 }
 0x3cb   :  { %v7418_v44 = vpop.f32.mrf.mxu0 }
 0x3cd   :  { %v1262_v46 = vpop.f32.mrf.mxu0 }
 0x3ce   :  { %v7466_v62 = vpop.f32.mrf.mxu1 }
 0x3d0   :  { %v7421_v49 = vpop.f32.mrf.mxu0 }
 0x3d2   :  { %v1276_v54 = vpop.f32.mrf.mxu0 }
 0x3d6   :  { %v7450_v58 = vpop.f32.mrf.mxu0 }
 0x3f0   :  { %v869_v8 = vpop.xlane.xlu0 %868  ;;  %v866_v9 = vpop.xlane.xlu1 %865 }
 0x3f1   :  { %v883_v12 = vadd.f32 %v8765_v7, %v869_v8  ;;  %v882_v13 = vadd.f32 %v8765_v7, %v866_v9 }
 0x3f3   :  { %888 = vst.msk [vmem:[%s9974_s7 + $0x8] sm:$0xff] %vm886_vm4, %v883_v12  ;;  %887 = vst.msk [vmem:[%s9974_s7] sm:$0xff] %vm886_vm4, %v882_v13  ;;  %931 = vperm.xlu1 %8052, %v883_v12   ;;  %926 = vperm.xlu0 %8051, %v882_v13   ;;  %v1471_v12 = vpop.f32.mrf.mxu0 }
 0x3f4   :  { %v875_v14 = vpop.xlane.xlu1 %874 }
 0x3f5   :  { %v872_v19 = vpop.xlane.xlu0 %871  ;;  %v885_v26 = vadd.f32 %v8765_v7, %v875_v14 }
 0x3f6   :  { %v884_v29 = vadd.f32 %v8765_v7, %v872_v19 }
 0x3f7   :  { %890 = vst.msk [vmem:[%s9974_s7 + $0x18] sm:$0xff] %vm886_vm4, %v885_v26  ;;  %941 = vperm.xlu0 %8051, %v885_v26  }
 0x3f8   :  { %889 = vst.msk [vmem:[%s9974_s7 + $0x10] sm:$0xff] %vm886_vm4, %v884_v29  ;;  %936 = vperm.xlu1 %8052, %v884_v29   ;;  %v1565_v29 = vpop.f32.mrf.mxu1 }
 0x46e   :  { %v927_v51 = vpop.permute.xlu0 %926  ;;  %v932_v53 = vpop.permute.xlu1 %931 }
 0x46f   :  { %v944_v55 = vmul.f32 %v8588_v20, %v927_v51  ;;  %v945_v56 = vmul.f32 %v8588_v20, %v932_v53 }
 0x471   :  { %v1037_v59 = vadd.f32 %v1036_v36, %v944_v55  ;;  %v1047_v60 = vadd.f32 %v7386_v30, %v945_v56  ;;  %v7453_v30 = vpop.f32.mrf.mxu0 }
 0x472   :  { %v942_v61 = vpop.permute.xlu0 %941 }
 0x473   :  { %v1163_v63 = vadd.f32 %v1162_v39, %v1037_v59  ;;  %v1169_v0 = vadd.f32 %v7402_v35, %v1047_v60  ;;  %v947_v6 = vmul.f32 %v8588_v20, %v942_v61  ;;  %v937_v8 = vpop.permute.xlu1 %936  ;;  %v7469_v59 = vpop.f32.mrf.mxu1 }
 0x474   :  { %v946_v9 = vmul.f32 %v8588_v20, %v937_v8  ;;  %v1483_v8 = vpop.f32.mrf.mxu0 }
 0x475   :  { %v1263_v13 = vadd.f32 %v1262_v46, %v1163_v63  ;;  %v1270_v14 = vadd.f32 %v7418_v44, %v1169_v0  ;;  %v1067_v19 = vadd.f32 %v7389_v40, %v947_v6 }
 0x476   :  { %v1057_v26 = vadd.f32 %v1056_v42, %v946_v9 }
 0x477   :  { %v1362_v51 = vadd.f32 %v1361_v48, %v1263_v13  ;;  %v1370_v53 = vadd.f32 %v7434_v45, %v1270_v14  ;;  %v1181_v7 = vadd.f32 %v7405_v41, %v1067_v19  ;;  %v1577_v45 = vpop.f32.mrf.mxu1 }
 0x478   :  { %v1175_v36 = vadd.f32 %v1174_v43, %v1057_v26 }
 0x479   :  { %v1472_v55 = vadd.f32 %v1471_v12, %v1362_v51  ;;  %v1478_v56 = vadd.f32 %v7450_v58, %v1370_v53  ;;  %v1284_v39 = vadd.f32 %v7421_v49, %v1181_v7 }
 0x47a   :  { %v1277_v35 = vadd.f32 %v1276_v54, %v1175_v36 }
 0x47b   :  { %v1566_v60 = vadd.f32 %v1565_v29, %v1472_v55  ;;  %v1572_v61 = vadd.f32 %v7466_v62, %v1478_v56  ;;  %v1386_v52 = vadd.f32 %v7437_v50, %v1284_v39 }
 0x47c   :  { %v1378_v20 = vadd.f32 %v1377_v57, %v1277_v35 }
 0x47d   :  { %v1587_v44 = vadd.f32 %v8597_v2, %v1566_v60  ;;  %v1588_v40 = vadd.f32 %v8597_v2, %v1572_v61  ;;  %v1490_v42 = vadd.f32 %v7453_v30, %v1386_v52 }
 0x47e   :  { %v1484_v46 = vadd.f32 %v1483_v8, %v1378_v20 }
 0x47f   :  { %8085 = vtanh.f32 %v1587_v44  ;;  %v1584_v41 = vadd.f32 %v7469_v59, %v1490_v42  ;;  %v6766_v57 = vmul.f32 -1.442695, %v1587_v44  ;;  %v6767_v58 = vmul.f32 -1.442695, %v1588_v40 }
 0x480   :  { %8087 = vtanh.f32 %v1588_v40  ;;  %v1578_v43 = vadd.f32 %v1577_v45, %v1484_v46 }
 0x481   :  { %v1590_v7 = vadd.f32 %v8597_v2, %v1584_v41 }
 0x482   :  { %v1589_v48 = vadd.f32 %v8597_v2, %v1578_v43 }
 0x483   :  { %8089 = vtanh.f32 %v1590_v7  ;;  %v6769_v62 = vmul.f32 -1.442695, %v1590_v7 }
 0x484   :  { %8091 = vtanh.f32 %v1589_v48  ;;  %v6768_v2 = vmul.f32 -1.442695, %v1589_v48 }
 0x485   :  { %8093 = vpow2.f32 %v6766_v57 }
 0x486   :  { %8095 = vpow2.f32 %v6767_v58 }
 0x487   :  { %8097 = vpow2.f32 %v6769_v62 }
 0x488   :  { %8099 = vpow2.f32 %v6768_v2 }
 0x48c   :  { %v8086_v49 = vpop.eup %8085 }
 0x48d   :  { %v8088_v50 = vpop.eup %8087  ;;  %1627 = vrot.lane.b32.xlu1 %v8086_v49, %s8320_s29 }
 0x48e   :  { %1629 = vrot.lane.b32.xlu0 %v8088_v50, %s8320_s29  ;;  %v6774_v50 = vld [vmem:[%s9968_s1 + $0x40] sm:$0xff] }
 0x48f   :  { %1733 = vst.msk [vmem:[#allocation2] sm:$0xff] %vm45_vm0, %v6774_v50 }
 0x490   :  { %v8090_v54 = vpop.eup %8089 }
 0x491   :  { %v8092_v52 = vpop.eup %8091 }
 0x492   :  { %1633 = vrot.lane.b32.xlu0 %v8090_v54, %s8320_s29  ;;  %1631 = vrot.lane.b32.xlu1 %v8092_v52, %s8320_s29  ;;  %v8094_v63 = vpop.eup %8093  ;;  %v6777_v54 = vld [vmem:[%s9968_s1 + $0x58] sm:$0xff]  ;;  %v6776_v52 = vld [vmem:[%s9968_s1 + $0x50] sm:$0xff] }
 0x493   :  { %v8096_v0 = vpop.eup %8095  ;;  %v1603_v6 = vadd.f32 1.0, %v8094_v63  ;;  %1736 = vst.msk [vmem:[#allocation2 + $0x18] sm:$0xff] %vm45_vm0, %v6777_v54  ;;  %1735 = vst.msk [vmem:[#allocation2 + $0x10] sm:$0xff] %vm45_vm0, %v6776_v52 }
 0x494   :  { %v8098_v9 = vpop.eup %8097  ;;  %v1604_v12 = vadd.f32 1.0, %v8096_v0 }
 0x495   :  { %v8100_v13 = vpop.eup %8099  ;;  %8101 = vrcp.f32 %v1603_v6  ;;  %v1606_v14 = vadd.f32 1.0, %v8098_v9 }
 0x496   :  { %8103 = vrcp.f32 %v1604_v12  ;;  %v1605_v19 = vadd.f32 1.0, %v8100_v13 }
 0x497   :  { %8105 = vrcp.f32 %v1606_v14 }
 0x498   :  { %8107 = vrcp.f32 %v1605_v19 }
 0x4a2   :  { %v8102_v26 = vpop.eup %8101 }
 0x4a3   :  { %v8104_v51 = vpop.eup %8103  ;;  %v1619_v61 = vmul.f32 %v8102_v26, %v8614_v28 }
 0x4a4   :  { %v8106_v55 = vpop.eup %8105  ;;  %v1620_v20 = vmul.f32 %v8104_v51, %v8611_v18 }
 0x4a5   :  { %v8108_v56 = vpop.eup %8107  ;;  %v1622_v46 = vmul.f32 %v8106_v55, %v8617_v31  ;;  %v6775_v31 = vld [vmem:[%s9968_s1 + $0x48] sm:$0xff] }
 0x4a6   :  { %v1621_v45 = vmul.f32 %v8108_v56, %v8620_v38  ;;  %1734 = vst.msk [vmem:[#allocation2 + $0x8] sm:$0xff] %vm45_vm0, %v6775_v31 }
 0x4ff   :  { %v1628_v29 = vpop.permute.xlu1 %1627 }
 0x500   :  { %v1630_v53 = vpop.permute.xlu0 %1629  ;;  %v1639_v36 = vmul.f32 %v8102_v26, %v1628_v29 }
 0x501   :  { %v1640_v30 = vmul.f32 %v8104_v51, %v1630_v53 }
 0x502   :  { %1647 = vrot.lane.b32.xlu1 %v1639_v36, %s8320_s29 }
 0x503   :  { %1649 = vrot.lane.b32.xlu0 %v1640_v30, %s8320_s29 }
 0x504   :  { %v1634_v39 = vpop.permute.xlu0 %1633  ;;  %v1632_v35 = vpop.permute.xlu1 %1631 }
 0x505   :  { %v1642_v59 = vmul.f32 %v8106_v55, %v1634_v39  ;;  %v1641_v60 = vmul.f32 %v8108_v56, %v1632_v35 }
 0x507   :  { %1653 = vrot.lane.b32.xlu0 %v1642_v59, %s8320_s29  ;;  %1651 = vrot.lane.b32.xlu1 %v1641_v60, %s8320_s29 }
 0x574   :  { %v1648_v8 = vpop.permute.xlu1 %1647 }
 0x575   :  { %v1650_v44 = vpop.permute.xlu0 %1649  ;;  %v8805_v40 = vadd.f32 %v1648_v8, %v1619_v61 }
 0x576   :  { %v8807_v42 = vadd.f32 %v1650_v44, %v1620_v20 }
 0x577   :  { %8109 = vtanh.f32 %v8805_v40 }
 0x578   :  { %8111 = vtanh.f32 %v8807_v42 }
 0x579   :  { %v1654_v41 = vpop.permute.xlu0 %1653  ;;  %v1652_v43 = vpop.permute.xlu1 %1651 }
 0x57a   :  { %v8813_v7 = vadd.f32 %v1654_v41, %v1622_v46  ;;  %v8815_v28 = vadd.f32 %v1652_v43, %v1621_v45 }
 0x57c   :  { %8113 = vtanh.f32 %v8813_v7 }
 0x57d   :  { %8115 = vtanh.f32 %v8815_v28 }
 0x584   :  { %v8110_v18 = vpop.eup %8109 }
 0x585   :  { %v8112_v48 = vpop.eup %8111  ;;  %1671 = vrot.lane.b32.xlu1 %v8110_v18, %s8320_s29 }
 0x586   :  { %1673 = vrot.lane.b32.xlu0 %v8112_v48, %s8320_s29 }
 0x589   :  { %v8114_v38 = vpop.eup %8113 }
 0x58a   :  { %v8116_v49 = vpop.eup %8115  ;;  %1677 = vrot.lane.b32.xlu0 %v8114_v38, %s8320_s29 }
 0x58b   :  { %1675 = vrot.lane.b32.xlu1 %v8116_v49, %s8320_s29 }
 0x5f7   :  { %v1672_v57 = vpop.permute.xlu1 %1671 }
 0x5f8   :  { %v1674_v58 = vpop.permute.xlu0 %1673  ;;  %v1683_v62 = vmul.f32 %v8102_v26, %v1672_v57 }
 0x5f9   :  { %v1684_v2 = vmul.f32 %v8104_v51, %v1674_v58 }
 0x5fa   :  { %1741 = vrot.lane.b32.xlu1 %v1683_v62, %s8321_s15  ;;  %v1687_v13 = vmul.f32 %v1683_v62, %v8658_v1 }
 0x5fb   :  { %1743 = vrot.lane.b32.xlu0 %v1684_v2, %s8321_s15  ;;  %v1688_v12 = vmul.f32 %v1684_v2, %v8658_v1 }
 0x5fc   :  { %v1678_v63 = vpop.permute.xlu0 %1677 }
 0x5fd   :  { %v1686_v0 = vmul.f32 %v8106_v55, %v1678_v63  ;;  %v1676_v6 = vpop.permute.xlu1 %1675 }
 0x5fe   :  { %v1685_v9 = vmul.f32 %v8108_v56, %v1676_v6 }
 0x5ff   :  { %1747 = vrot.lane.b32.xlu0 %v1686_v0, %s8321_s15  ;;  %v1690_v14 = vmul.f32 %v1686_v0, %v8658_v1 }
 0x600   :  { %1745 = vrot.lane.b32.xlu1 %v1685_v9, %s8321_s15  ;;  %v1689_v19 = vmul.f32 %v1685_v9, %v8658_v1 }
 0x603   :  { %1697 = vrot.lane.b32.xlu0 %v1688_v12, %s8322_s17 }
 0x604   :  { %1695 = vrot.lane.b32.xlu1 %v1687_v13, %s8322_s17 }
 0x607   :  { %1701 = vrot.lane.b32.xlu0 %v1690_v14, %s8322_s17 }
 0x608   :  { %1699 = vrot.lane.b32.xlu1 %v1689_v19, %s8322_s17 }
 0x66c   :  { %v1742_v26 = vpop.permute.xlu1 %1741 }
 0x66d   :  { %v1744_v29 = vpop.permute.xlu0 %1743  ;;  %1753 = vst.msk [vmem:[#allocation2] sm:$0xff] %vm50_vm1, %v1742_v26  ;;  %v9987_v26 = vld [vmem:[#allocation4_spill] sm:$0xff] }
 0x66e   :  { %1754 = vst.msk [vmem:[#allocation2 + $0x8] sm:$0xff] %vm50_vm1, %v1744_v29 }
 0x671   :  { %v1748_v51 = vpop.permute.xlu0 %1747 }
 0x672   :  { %1756 = vst.msk [vmem:[#allocation2 + $0x18] sm:$0xff] %vm50_vm1, %v1748_v51  ;;  %v1746_v53 = vpop.permute.xlu1 %1745  ;;  %v9988_v51 = vld [vmem:[#allocation5_spill] sm:$0xff] }
 0x673   :  { %1755 = vst.msk [vmem:[#allocation2 + $0x10] sm:$0xff] %vm50_vm1, %v1746_v53 }
 0x674   :  { %v1757_v36 = vld [vmem:[#allocation2] sm:$0xff] }
 0x675   :  { %v1698_v30 = vpop.permute.xlu0 %1697  ;;  %v1786_v55 = vsel %vm89_vm2, %v1757_v36, 0  ;;  %v1758_v56 = vld [vmem:[#allocation2 + $0x8] sm:$0xff] }
 0x676   :  { %v1696_v39 = vpop.permute.xlu1 %1695  ;;  %v1710_v35 = vsel %vm863_vm3, %v1698_v30, 0.0  ;;  %v8857_v59 = vand.u32 4294901760, %v1786_v55  ;;  %v1789_v60 = vsel %vm89_vm2, %v1758_v56, 0 }
 0x677   :  { %1711 = vadd.xlane.f32.xlu0 %v1710_v35  ;;  %v1707_v61 = vsel %vm863_vm3, %v1696_v39, 0.0  ;;  %v8861_v20 = vand.u32 4294901760, %v1789_v60 }
 0x678   :  { %1708 = vadd.xlane.f32.xlu1 %v1707_v61  ;;  %7496 = vmatprep.mubr.f32.mxu1 %v8857_v59  ;;  %v1868_v8 = vsub.f32 %v1786_v55, %v8857_v59 }
 0x679   :  { %v1702_v44 = vpop.permute.xlu0 %1701  ;;  %v8866_v46 = vsub.f32 %v1789_v60, %v8861_v20  ;;  %7497 = vmatmul.mubr.f32.vlgmr.msra.gmra.mxu1 %v8861_v20  ;;  %v1760_v45 = vld [vmem:[#allocation2 + $0x18] sm:$0xff] }
 0x67a   :  { %v1700_v41 = vpop.permute.xlu1 %1699  ;;  %7519 = vmatpush3.msra.mxu1 %v8372_v3  ;;  %v1716_v43 = vsel %vm863_vm3, %v1702_v44, 0.0  ;;  %v1759_v18 = vld [vmem:[#allocation2 + $0x10] sm:$0xff]  ;;  %v1795_v48 = vsel %vm89_vm2, %v1760_v45, 0  ;;  %v1869_v31 = vand.u32 4294901760, %v1868_v8 }
 0x67b   :  { %7520 = vmatprep.subr.mxu1 %v8374_v4  ;;  %v1713_v38 = vsel %vm863_vm3, %v1700_v41, 0.0  ;;  %v1792_v49 = vsel %vm89_vm2, %v1759_v18, 0  ;;  %v8875_v50 = vand.u32 4294901760, %v1795_v48  ;;  %v1879_v54 = vand.u32 4294901760, %v8866_v46 }
 0x67c   :  { %1717 = vadd.xlane.f32.xlu1 %v1716_v43  ;;  %1714 = vadd.xlane.f32.xlu0 %v1713_v38  ;;  %v8878_v52 = vand.u32 4294901760, %v1792_v49  ;;  %v1870_v57 = vsub.f32 %v1868_v8, %v1869_v31 }
 0x67d   :  { %7521 = vmatpush3.msra.mxu1 %v8374_v4  ;;  %v1880_v58 = vsub.f32 %v8866_v46, %v1879_v54  ;;  %v1898_v62 = vsub.f32 %v1795_v48, %v8875_v50 }
 0x67e   :  { %7499 = vmatprep.mubr.f32.mxu1 %v8878_v52  ;;  %7522 = vmatprep.subr.mxu1 %v8376_v5  ;;  %v1871_v2 = vand.u32 4294901760, %v1870_v57  ;;  %v1888_v63 = vsub.f32 %v1792_v49, %v8878_v52 }
 0x67f   :  { %7500 = vmatmul.mubr.f32.gmra.mxu1 %v8875_v50  ;;  %v1881_v0 = vand.u32 4294901760, %v1880_v58  ;;  %v1899_v6 = vand.u32 4294901760, %v1898_v62 }
 0x680   :  { %7523 = vmatpush3.msra.mxu1 %v8376_v5  ;;  %7528 = vmatprep.mubr.f32.mxu1 %v1869_v31  ;;  %v1889_v9 = vand.u32 4294901760, %v1888_v63 }
 0x681   :  { %7524 = vmatprep.subr.mxu1 %v8387_v10  ;;  %7480 = vmatprep.mubr.f32.mxu0 %v1871_v2  ;;  %v1900_v12 = vsub.f32 %v1898_v62, %v1899_v6 }
 0x682   :  { %7525 = vmatpush3.msra.mxu1 %v8387_v10  ;;  %7481 = vmatmul.mubr.f32.vlgmr.msra.gmra.mxu0 %v1881_v0  ;;  %v1890_v13 = vsub.f32 %v1888_v63, %v1889_v9 }
 0x683   :  { %7526 = vmatprep.subr.mxu1 %v8389_v11  ;;  %7503 = vmatpush3.msra.mxu0 %v8403_v15  ;;  %v1901_v19 = vand.u32 4294901760, %v1900_v12 }
 0x684   :  { %7527 = vmatpush3.msra.mxu1 %v8389_v11  ;;  %7504 = vmatprep.subr.mxu0 %v8406_v16  ;;  %v1891_v14 = vand.u32 4294901760, %v1890_v13 }
 0x685   :  { %7529 = vmatmul.mubr.f32.vlgmr.msra.gmra.mxu1 %v1879_v54  ;;  %7550 = vmatprep.subr.mxu1 %v8372_v3 }
 0x686   :  { %7505 = vmatpush3.msra.mxu0 %v8406_v16  ;;  %7531 = vmatprep.mubr.f32.mxu1 %v1889_v9 }
 0x687   :  { %7551 = vmatpush3.msra.mxu1 %v8372_v3  ;;  %7483 = vmatprep.mubr.f32.mxu0 %v1891_v14 }
 0x688   :  { %7506 = vmatprep.subr.mxu0 %v8409_v17  ;;  %7552 = vmatprep.subr.mxu1 %v8374_v4 }
 0x689   :  { %7484 = vmatmul.mubr.f32.gmra.mxu0 %v1901_v19  ;;  %7553 = vmatpush3.msra.mxu1 %v8374_v4 }
 0x68a   :  { %7507 = vmatpush3.msra.mxu0 %v8409_v17  ;;  %7512 = vmatprep.mubr.f32.mxu0 %v1868_v8 }
 0x68b   :  { %7508 = vmatprep.subr.mxu0 %v8423_v21  ;;  %7532 = vmatmul.mubr.f32.gmra.mxu1 %v1899_v6 }
 0x68c   :  { %7554 = vmatprep.subr.mxu1 %v8376_v5  ;;  %7509 = vmatpush3.msra.mxu0 %v8423_v21 }
 0x68d   :  { %7555 = vmatpush3.msra.mxu1 %v8376_v5  ;;  %7560 = vmatprep.mubr.f32.mxu1 %v8857_v59 }
 0x68e   :  { %7510 = vmatprep.subr.mxu0 %v8426_v22  ;;  %7556 = vmatprep.subr.mxu1 %v8387_v10 }
 0x68f   :  { %7511 = vmatpush3.msra.mxu0 %v8426_v22  ;;  %7557 = vmatpush3.msra.mxu1 %v8387_v10 }
 0x690   :  { %7513 = vmatmul.mubr.f32.vlgmr.msra.gmra.mxu0 %v8866_v46  ;;  %7534 = vmatprep.subr.mxu0 %v8432_v23 }
 0x691   :  { %7558 = vmatprep.subr.mxu1 %v8389_v11  ;;  %7515 = vmatprep.mubr.f32.mxu0 %v1888_v63 }
 0x692   :  { %7535 = vmatpush3.msra.mxu0 %v8432_v23  ;;  %7559 = vmatpush3.msra.mxu1 %v8389_v11 }
 0x693   :  { %7536 = vmatprep.subr.mxu0 %v8436_v24  ;;  %7561 = vmatmul.mubr.f32.vlgmr.msra.gmra.mxu1 %v8861_v20 }
 0x694   :  { %7537 = vmatpush3.msra.mxu0 %v8436_v24  ;;  %7563 = vmatprep.mubr.f32.mxu1 %v8878_v52 }
 0x695   :  { %7516 = vmatmul.mubr.f32.gmra.mxu0 %v1898_v62  ;;  %7538 = vmatprep.subr.mxu0 %v8439_v25 }
 0x696   :  { %7539 = vmatpush3.msra.mxu0 %v8439_v25  ;;  %7544 = vmatprep.mubr.f32.mxu0 %v8857_v59 }
 0x697   :  { %7540 = vmatprep.subr.mxu0 %v8446_v27  ;;  %7564 = vmatmul.mubr.f32.gmra.mxu1 %v8875_v50 }
 0x698   :  { %7541 = vmatpush3.msra.mxu0 %v8446_v27  ;;  %7582 = vmatprep.subr.mxu1 %v8462_v33 }
 0x699   :  { %7542 = vmatprep.subr.mxu0 %v8459_v32  ;;  %7583 = vmatpush3.msra.mxu1 %v8462_v33 }
 0x69a   :  { %7543 = vmatpush3.msra.mxu0 %v8459_v32  ;;  %7584 = vmatprep.subr.mxu1 %v8464_v34 }
 0x69b   :  { %7545 = vmatmul.mubr.f32.vlgmr.msra.gmra.mxu0 %v8861_v20  ;;  %7585 = vmatpush3.msra.mxu1 %v8464_v34 }
 0x69c   :  { %7547 = vmatprep.mubr.f32.mxu0 %v8878_v52  ;;  %7586 = vmatprep.subr.mxu1 %v8471_v37  ;;  %v8975_v52 = vld [vmem:[%s9970_s2] ss:$0 sm:$0xff] }
 0x69d   :  { %7587 = vmatpush3.msra.mxu1 %v8471_v37  ;;  %7566 = vmatprep.subr.mxu0 %v8372_v3  ;;  %9989 = vst [vmem:[#allocation4_spill] sm:$0xff] %v8975_v52 }
 0x69e   :  { %7588 = vmatprep.subr.mxu1 %v8485_v47  ;;  %7567 = vmatpush3.msra.mxu0 %v8372_v3 }
 0x69f   :  { %7548 = vmatmul.mubr.f32.gmra.mxu0 %v8875_v50  ;;  %7589 = vmatpush3.msra.mxu1 %v8485_v47 }
 0x6a0   :  { %7590 = vmatprep.subr.mxu1 %v9987_v26  ;;  %7568 = vmatprep.subr.mxu0 %v8374_v4 }
 0x6a1   :  { %7591 = vmatpush3.msra.mxu1 %v9987_v26  ;;  %7569 = vmatpush3.msra.mxu0 %v8374_v4 }
 0x6a2   :  { %7614 = vmatprep.subr.mxu1 %v8372_v3  ;;  %7570 = vmatprep.subr.mxu0 %v8376_v5 }
 0x6a3   :  { %7571 = vmatpush3.msra.mxu0 %v8376_v5 }
 0x6a4   :  { %7572 = vmatprep.subr.mxu0 %v8387_v10 }
 0x6a5   :  { %7573 = vmatpush3.msra.mxu0 %v8387_v10 }
 0x6a6   :  { %7574 = vmatprep.subr.mxu0 %v8389_v11 }
 0x6a7   :  { %7575 = vmatpush3.msra.mxu0 %v8389_v11 }
 0x6a8   :  { %7598 = vmatprep.subr.mxu0 %v8403_v15 }
 0x700   :  { %v1712_v29 = vpop.xlane.xlu0 %1711 }
 0x701   :  { %v1720_v53 = vadd.f32 %v9988_v51, %v1712_v29  ;;  %v1709_v36 = vpop.xlane.xlu1 %1708 }
 0x702   :  { %v1719_v30 = vadd.f32 %v9988_v51, %v1709_v36 }
 0x703   :  { %6771 = vst.msk [vmem:[%s9974_s7 + $0x28] sm:$0xff] %vm886_vm4, %v1720_v53  ;;  %1768 = vperm.xlu1 %8052, %v1720_v53  }
 0x704   :  { %6770 = vst.msk [vmem:[%s9974_s7 + $0x20] sm:$0xff] %vm886_vm4, %v1719_v30  ;;  %1763 = vperm.xlu0 %8051, %v1719_v30  }
 0x705   :  { %v1715_v55 = vpop.xlane.xlu0 %1714  ;;  %v1718_v56 = vpop.xlane.xlu1 %1717 }
 0x706   :  { %v1721_v39 = vadd.f32 %v9988_v51, %v1715_v55  ;;  %v1722_v35 = vadd.f32 %v9988_v51, %v1718_v56 }
 0x708   :  { %6772 = vst.msk [vmem:[%s9974_s7 + $0x30] sm:$0xff] %vm886_vm4, %v1721_v39  ;;  %6773 = vst.msk [vmem:[%s9974_s7 + $0x38] sm:$0xff] %vm886_vm4, %v1722_v35  ;;  %1773 = vperm.xlu1 %8052, %v1721_v39   ;;  %1778 = vperm.xlu0 %8051, %v1722_v35  }
 0x739   :  { %v7498_v60 = vpop.f32.mrf.mxu1 }
 0x73b   :  { %v1999_v20 = vpop.f32.mrf.mxu1 }
 0x73f   :  { %v7501_v44 = vpop.f32.mrf.mxu1 }
 0x741   :  { %v2011_v45 = vpop.f32.mrf.mxu1 }
 0x742   :  { %v7482_v59 = vpop.f32.mrf.mxu0 }
 0x744   :  { %v1873_v61 = vpop.f32.mrf.mxu0 }
 0x745   :  { %v7530_v43 = vpop.f32.mrf.mxu1 }
 0x747   :  { %v2198_v48 = vpop.f32.mrf.mxu1 }
 0x749   :  { %v7485_v8 = vpop.f32.mrf.mxu0 }
 0x74b   :  { %v1893_v46 = vpop.f32.mrf.mxu0  ;;  %v7533_v38 = vpop.f32.mrf.mxu1 }
 0x74d   :  { %v2214_v58 = vpop.f32.mrf.mxu1 }
 0x750   :  { %v7514_v41 = vpop.f32.mrf.mxu0 }
 0x752   :  { %v2099_v18 = vpop.f32.mrf.mxu0 }
 0x753   :  { %v7562_v0 = vpop.f32.mrf.mxu1 }
 0x755   :  { %v7517_v31 = vpop.f32.mrf.mxu0  ;;  %v2402_v56 = vpop.f32.mrf.mxu1 }
 0x757   :  { %v2113_v50 = vpop.f32.mrf.mxu0 }
 0x75b   :  { %v7546_v2 = vpop.f32.mrf.mxu0 }
 0x75d   :  { %v2308_v51 = vpop.f32.mrf.mxu0 }
 0x77e   :  { %v1769_v49 = vpop.permute.xlu1 %1768 }
 0x77f   :  { %v1764_v54 = vpop.permute.xlu0 %1763  ;;  %v1782_v57 = vmul.f32 %v8975_v52, %v1769_v49 }
 0x780   :  { %v1781_v62 = vmul.f32 %v8975_v52, %v1764_v54  ;;  %v7549_v54 = vpop.f32.mrf.mxu0 }
 0x781   :  { %v1884_v63 = vadd.f32 %v7482_v59, %v1782_v57 }
 0x782   :  { %v1874_v6 = vadd.f32 %v1873_v61, %v1781_v62 }
 0x783   :  { %v2006_v9 = vadd.f32 %v7498_v60, %v1884_v63  ;;  %v1779_v12 = vpop.permute.xlu0 %1778  ;;  %v1774_v13 = vpop.permute.xlu1 %1773 }
 0x784   :  { %v2000_v14 = vadd.f32 %v1999_v20, %v1874_v6  ;;  %v1784_v19 = vmul.f32 %v8975_v52, %v1779_v12  ;;  %v1783_v29 = vmul.f32 %v8975_v52, %v1774_v13  ;;  %v7565_v20 = vpop.f32.mrf.mxu1  ;;  %v2320_v52 = vpop.f32.mrf.mxu0 }
 0x785   :  { %v2107_v53 = vadd.f32 %v7514_v41, %v2006_v9 }
 0x786   :  { %v2100_v36 = vadd.f32 %v2099_v18, %v2000_v14  ;;  %v1904_v30 = vadd.f32 %v7485_v8, %v1784_v19  ;;  %v1894_v55 = vadd.f32 %v1893_v46, %v1783_v29  ;;  %v8984_v8 = vld [vmem:[%s9971_s4] ss:$0 sm:$0xff] }
 0x787   :  { %v2207_v39 = vadd.f32 %v7530_v43, %v2107_v53  ;;  %v2414_v43 = vpop.f32.mrf.mxu1 }
 0x788   :  { %v2199_v35 = vadd.f32 %v2198_v48, %v2100_v36  ;;  %v2018_v49 = vadd.f32 %v7501_v44, %v1904_v30  ;;  %v2012_v59 = vadd.f32 %v2011_v45, %v1894_v55 }
 0x789   :  { %v2315_v61 = vadd.f32 %v7546_v2, %v2207_v39 }
 0x78a   :  { %v2309_v60 = vadd.f32 %v2308_v51, %v2199_v35  ;;  %v2121_v57 = vadd.f32 %v7517_v31, %v2018_v49  ;;  %v2114_v62 = vadd.f32 %v2113_v50, %v2012_v59 }
 0x78b   :  { %v2409_v63 = vadd.f32 %v7562_v0, %v2315_v61 }
 0x78c   :  { %v2403_v6 = vadd.f32 %v2402_v56, %v2309_v60  ;;  %v2223_v12 = vadd.f32 %v7533_v38, %v2121_v57  ;;  %v2215_v13 = vadd.f32 %v2214_v58, %v2114_v62 }
 0x78d   :  { %v2425_v46 = vadd.f32 %v8984_v8, %v2409_v63 }
 0x78e   :  { %v2424_v44 = vadd.f32 %v8984_v8, %v2403_v6  ;;  %v2327_v45 = vadd.f32 %v7549_v54, %v2223_v12  ;;  %v2321_v41 = vadd.f32 %v2320_v52, %v2215_v13 }
 0x78f   :  { %8117 = vtanh.f32 %v2425_v46  ;;  %v6779_v52 = vmul.f32 -1.442695, %v2425_v46 }
 0x790   :  { %8119 = vtanh.f32 %v2424_v44  ;;  %v2421_v18 = vadd.f32 %v7565_v20, %v2327_v45  ;;  %v2415_v48 = vadd.f32 %v2414_v43, %v2321_v41  ;;  %v6778_v9 = vmul.f32 -1.442695, %v2424_v44 }
 0x792   :  { %v2427_v31 = vadd.f32 %v8984_v8, %v2421_v18  ;;  %v2426_v38 = vadd.f32 %v8984_v8, %v2415_v48 }
 0x794   :  { %8121 = vtanh.f32 %v2427_v31  ;;  %v6781_v14 = vmul.f32 -1.442695, %v2427_v31  ;;  %v6780_v19 = vmul.f32 -1.442695, %v2426_v38 }
 0x795   :  { %8123 = vtanh.f32 %v2426_v38 }
 0x796   :  { %8125 = vpow2.f32 %v6779_v52  ;;  %v6789_v52 = vld [vmem:[%s9968_s1 + $0x78] sm:$0xff] }
 0x797   :  { %8127 = vpow2.f32 %v6778_v9  ;;  %2573 = vst.msk [vmem:[#allocation2 + $0x18] sm:$0xff] %vm45_vm0, %v6789_v52  ;;  %v6788_v9 = vld [vmem:[%s9968_s1 + $0x70] sm:$0xff] }
 0x798   :  { %8129 = vpow2.f32 %v6781_v14  ;;  %2572 = vst.msk [vmem:[#allocation2 + $0x10] sm:$0xff] %vm45_vm0, %v6788_v9 }
 0x799   :  { %8131 = vpow2.f32 %v6780_v19 }
 0x79c   :  { %v8118_v50 = vpop.eup %8117 }
 0x79d   :  { %v8120_v58 = vpop.eup %8119  ;;  %2466 = vrot.lane.b32.xlu0 %v8118_v50, %s8320_s29 }
 0x79e   :  { %2464 = vrot.lane.b32.xlu1 %v8120_v58, %s8320_s29 }
 0x7a1   :  { %v8122_v2 = vpop.eup %8121 }
 0x7a2   :  { %v8124_v0 = vpop.eup %8123  ;;  %2470 = vrot.lane.b32.xlu0 %v8122_v2, %s8320_s29 }
 0x7a3   :  { %2468 = vrot.lane.b32.xlu1 %v8124_v0, %s8320_s29  ;;  %v8126_v29 = vpop.eup %8125  ;;  %v6786_v0 = vld [vmem:[%s9968_s1 + $0x60] sm:$0xff] }
 0x7a4   :  { %v8128_v51 = vpop.eup %8127  ;;  %v2441_v53 = vadd.f32 1.0, %v8126_v29  ;;  %2570 = vst.msk [vmem:[#allocation2] sm:$0xff] %vm45_vm0, %v6786_v0 }
 0x7a5   :  { %v2440_v36 = vadd.f32 1.0, %v8128_v51  ;;  %v8130_v30 = vpop.eup %8129 }
 0x7a6   :  { %v8132_v55 = vpop.eup %8131  ;;  %8133 = vrcp.f32 %v2441_v53  ;;  %v2443_v56 = vadd.f32 1.0, %v8130_v30 }
 0x7a7   :  { %8135 = vrcp.f32 %v2440_v36  ;;  %v2442_v39 = vadd.f32 1.0, %v8132_v55 }
 0x7a8   :  { %8137 = vrcp.f32 %v2443_v56 }
 0x7a9   :  { %8139 = vrcp.f32 %v2442_v39 }
 0x7b3   :  { %v8134_v35 = vpop.eup %8133 }
 0x7b4   :  { %v8136_v59 = vpop.eup %8135  ;;  %v2457_v13 = vmul.f32 %v8134_v35, %v8807_v42 }
 0x7b5   :  { %v8138_v57 = vpop.eup %8137  ;;  %v2456_v44 = vmul.f32 %v8136_v59, %v8805_v40 }
 0x7b6   :  { %v8140_v20 = vpop.eup %8139  ;;  %v2459_v18 = vmul.f32 %v8138_v57, %v8813_v7  ;;  %v6787_v7 = vld [vmem:[%s9968_s1 + $0x68] sm:$0xff] }
 0x7b7   :  { %v2458_v31 = vmul.f32 %v8140_v20, %v8815_v28  ;;  %2571 = vst.msk [vmem:[#allocation2 + $0x8] sm:$0xff] %vm45_vm0, %v6787_v7 }
 0x80f   :  { %v2467_v49 = vpop.permute.xlu0 %2466 }
 0x810   :  { %v2477_v54 = vmul.f32 %v8134_v35, %v2467_v49  ;;  %v2465_v61 = vpop.permute.xlu1 %2464 }
 0x811   :  { %v2476_v60 = vmul.f32 %v8136_v59, %v2465_v61 }
 0x812   :  { %2486 = vrot.lane.b32.xlu0 %v2477_v54, %s8320_s29 }
 0x813   :  { %2484 = vrot.lane.b32.xlu1 %v2476_v60, %s8320_s29 }
 0x814   :  { %v2471_v62 = vpop.permute.xlu0 %2470 }
 0x815   :  { %v2479_v63 = vmul.f32 %v8138_v57, %v2471_v62  ;;  %v2469_v6 = vpop.permute.xlu1 %2468 }
 0x816   :  { %v2478_v12 = vmul.f32 %v8140_v20, %v2469_v6 }
 0x817   :  { %2490 = vrot.lane.b32.xlu0 %v2479_v63, %s8320_s29 }
 0x818   :  { %2488 = vrot.lane.b32.xlu1 %v2478_v12, %s8320_s29 }
 0x884   :  { %v2487_v46 = vpop.permute.xlu0 %2486 }
 0x885   :  { %v9000_v45 = vadd.f32 %v2487_v46, %v2457_v13  ;;  %v2485_v41 = vpop.permute.xlu1 %2484 }
 0x886   :  { %v9002_v43 = vadd.f32 %v2485_v41, %v2456_v44 }
 0x887   :  { %8141 = vtanh.f32 %v9000_v45 }
 0x888   :  { %8143 = vtanh.f32 %v9002_v43 }
 0x889   :  { %v2491_v48 = vpop.permute.xlu0 %2490 }
 0x88a   :  { %v9008_v38 = vadd.f32 %v2491_v48, %v2459_v18  ;;  %v2489_v42 = vpop.permute.xlu1 %2488 }
 0x88b   :  { %v9010_v50 = vadd.f32 %v2489_v42, %v2458_v31 }
 0x88c   :  { %8145 = vtanh.f32 %v9008_v38 }
 0x88d   :  { %8147 = vtanh.f32 %v9010_v50 }
 0x894   :  { %v8142_v40 = vpop.eup %8141 }
 0x895   :  { %v8144_v58 = vpop.eup %8143  ;;  %2510 = vrot.lane.b32.xlu0 %v8142_v40, %s8320_s29 }
 0x896   :  { %2508 = vrot.lane.b32.xlu1 %v8144_v58, %s8320_s29 }
 0x899   :  { %v8146_v28 = vpop.eup %8145 }
 0x89a   :  { %v8148_v2 = vpop.eup %8147  ;;  %2514 = vrot.lane.b32.xlu0 %v8146_v28, %s8320_s29 }
 0x89b   :  { %2512 = vrot.lane.b32.xlu1 %v8148_v2, %s8320_s29 }
 0x907   :  { %v2511_v14 = vpop.permute.xlu0 %2510 }
 0x908   :  { %v2521_v19 = vmul.f32 %v8134_v35, %v2511_v14  ;;  %v2509_v29 = vpop.permute.xlu1 %2508 }
 0x909   :  { %v2520_v51 = vmul.f32 %v8136_v59, %v2509_v29 }
 0x90a   :  { %2580 = vrot.lane.b32.xlu0 %v2521_v19, %s8321_s15  ;;  %v2525_v56 = vmul.f32 %v2521_v19, %v8658_v1 }
 0x90b   :  { %2578 = vrot.lane.b32.xlu1 %v2520_v51, %s8321_s15  ;;  %v2524_v39 = vmul.f32 %v2520_v51, %v8658_v1 }
 0x90c   :  { %v2515_v53 = vpop.permute.xlu0 %2514 }
 0x90d   :  { %v2523_v36 = vmul.f32 %v8138_v57, %v2515_v53  ;;  %v2513_v30 = vpop.permute.xlu1 %2512 }
 0x90e   :  { %v2522_v55 = vmul.f32 %v8140_v20, %v2513_v30 }
 0x90f   :  { %2584 = vrot.lane.b32.xlu0 %v2523_v36, %s8321_s15  ;;  %v2527_v35 = vmul.f32 %v2523_v36, %v8658_v1 }
 0x910   :  { %2582 = vrot.lane.b32.xlu1 %v2522_v55, %s8321_s15  ;;  %v2526_v49 = vmul.f32 %v2522_v55, %v8658_v1 }
 0x913   :  { %2534 = vrot.lane.b32.xlu0 %v2525_v56, %s8322_s17 }
 0x914   :  { %2532 = vrot.lane.b32.xlu1 %v2524_v39, %s8322_s17 }
 0x917   :  { %2538 = vrot.lane.b32.xlu0 %v2527_v35, %s8322_s17 }
 0x918   :  { %2536 = vrot.lane.b32.xlu1 %v2526_v49, %s8322_s17 }
 0x97c   :  { %v2581_v59 = vpop.permute.xlu0 %2580 }
 0x97d   :  { %2591 = vst.msk [vmem:[#allocation2 + $0x8] sm:$0xff] %vm50_vm1, %v2581_v59  ;;  %v2579_v54 = vpop.permute.xlu1 %2578 }
 0x97e   :  { %2590 = vst.msk [vmem:[#allocation2] sm:$0xff] %vm50_vm1, %v2579_v54 }
 0x981   :  { %v2585_v61 = vpop.permute.xlu0 %2584 }
 0x982   :  { %2593 = vst.msk [vmem:[#allocation2 + $0x18] sm:$0xff] %vm50_vm1, %v2585_v61  ;;  %v2583_v60 = vpop.permute.xlu1 %2582 }
 0x983   :  { %2592 = vst.msk [vmem:[#allocation2 + $0x10] sm:$0xff] %vm50_vm1, %v2583_v60  ;;  %v9147_v60 = vld [vmem:[#allocation3] ss:$0 sm:$0xff] }
 0x984   :  { %v2595_v57 = vld [vmem:[#allocation2 + $0x8] sm:$0xff]  ;;  %9990 = vst [vmem:[#allocation5_spill] sm:$0xff] %v9147_v60 }
 0x985   :  { %v2535_v62 = vpop.permute.xlu0 %2534  ;;  %v2594_v20 = vld [vmem:[#allocation2] sm:$0xff]  ;;  %v2626_v63 = vsel %vm89_vm2, %v2595_v57, 0 }
 0x986   :  { %v2533_v6 = vpop.permute.xlu1 %2532  ;;  %v2547_v12 = vsel %vm863_vm3, %v2535_v62, 0.0  ;;  %v2623_v13 = vsel %vm89_vm2, %v2594_v20, 0  ;;  %v9053_v46 = vand.u32 4294901760, %v2626_v63 }
 0x987   :  { %2548 = vadd.xlane.f32.xlu0 %v2547_v12  ;;  %v2544_v44 = vsel %vm863_vm3, %v2533_v6, 0.0  ;;  %v9056_v41 = vand.u32 4294901760, %v2623_v13 }
 0x988   :  { %2545 = vadd.xlane.f32.xlu1 %v2544_v44  ;;  %v9059_v18 = vsub.f32 %v2626_v63, %v9053_v46 }
 0x989   :  { %v2539_v48 = vpop.permute.xlu0 %2538  ;;  %7592 = vmatprep.mubr.f32.mxu1 %v9056_v41  ;;  %v2597_v31 = vld [vmem:[#allocation2 + $0x18] sm:$0xff]  ;;  %v2705_v42 = vsub.f32 %v2623_v13, %v9056_v41 }
 0x98a   :  { %v2537_v40 = vpop.permute.xlu1 %2536  ;;  %7593 = vmatmul.mubr.f32.vlgmr.msra.gmra.mxu1 %v9053_v46  ;;  %v2553_v58 = vsel %vm863_vm3, %v2539_v48, 0.0  ;;  %v2596_v7 = vld [vmem:[#allocation2 + $0x10] sm:$0xff]  ;;  %v2632_v28 = vsel %vm89_vm2, %v2597_v31, 0  ;;  %v2716_v2 = vand.u32 4294901760, %v9059_v18 }
 0x98b   :  { %7615 = vmatpush3.msra.mxu1 %v8372_v3  ;;  %v2550_v0 = vsel %vm863_vm3, %v2537_v40, 0.0  ;;  %v2629_v52 = vsel %vm89_vm2, %v2596_v7, 0  ;;  %v9070_v9 = vand.u32 4294901760, %v2632_v28  ;;  %v2706_v14 = vand.u32 4294901760, %v2705_v42 }
 0x98c   :  { %7616 = vmatprep.subr.mxu1 %v8374_v4  ;;  %2554 = vadd.xlane.f32.xlu1 %v2553_v58  ;;  %v9073_v19 = vand.u32 4294901760, %v2629_v52  ;;  %v2717_v29 = vsub.f32 %v9059_v18, %v2716_v2 }
 0x98d   :  { %2551 = vadd.xlane.f32.xlu0 %v2550_v0  ;;  %7617 = vmatpush3.msra.mxu1 %v8374_v4  ;;  %v2707_v51 = vsub.f32 %v2705_v42, %v2706_v14  ;;  %v2735_v53 = vsub.f32 %v2632_v28, %v9070_v9 }
 0x98e   :  { %7595 = vmatprep.mubr.f32.mxu1 %v9073_v19  ;;  %7618 = vmatprep.subr.mxu1 %v8376_v5  ;;  %v2718_v36 = vand.u32 4294901760, %v2717_v29  ;;  %v2725_v30 = vsub.f32 %v2629_v52, %v9073_v19 }
 0x98f   :  { %7596 = vmatmul.mubr.f32.gmra.mxu1 %v9070_v9  ;;  %v2708_v55 = vand.u32 4294901760, %v2707_v51  ;;  %v2736_v56 = vand.u32 4294901760, %v2735_v53 }
 0x990   :  { %7619 = vmatpush3.msra.mxu1 %v8376_v5  ;;  %7624 = vmatprep.mubr.f32.mxu1 %v2706_v14  ;;  %v2726_v39 = vand.u32 4294901760, %v2725_v30 }
 0x991   :  { %7620 = vmatprep.subr.mxu1 %v8387_v10  ;;  %7576 = vmatprep.mubr.f32.mxu0 %v2708_v55  ;;  %v2737_v35 = vsub.f32 %v2735_v53, %v2736_v56 }
 0x992   :  { %7621 = vmatpush3.msra.mxu1 %v8387_v10  ;;  %7577 = vmatmul.mubr.f32.vlgmr.msra.gmra.mxu0 %v2718_v36  ;;  %v2727_v49 = vsub.f32 %v2725_v30, %v2726_v39 }
 0x993   :  { %7622 = vmatprep.subr.mxu1 %v8389_v11  ;;  %7599 = vmatpush3.msra.mxu0 %v8403_v15  ;;  %v2738_v54 = vand.u32 4294901760, %v2737_v35 }
 0x994   :  { %7623 = vmatpush3.msra.mxu1 %v8389_v11  ;;  %7600 = vmatprep.subr.mxu0 %v8406_v16  ;;  %v2728_v59 = vand.u32 4294901760, %v2727_v49 }
 0x995   :  { %7625 = vmatmul.mubr.f32.vlgmr.msra.gmra.mxu1 %v2716_v2  ;;  %7646 = vmatprep.subr.mxu1 %v8372_v3 }
 0x996   :  { %7601 = vmatpush3.msra.mxu0 %v8406_v16  ;;  %7627 = vmatprep.mubr.f32.mxu1 %v2726_v39 }
 0x997   :  { %7647 = vmatpush3.msra.mxu1 %v8372_v3  ;;  %7579 = vmatprep.mubr.f32.mxu0 %v2728_v59 }
 0x998   :  { %7602 = vmatprep.subr.mxu0 %v8409_v17  ;;  %7648 = vmatprep.subr.mxu1 %v8374_v4 }
 0x999   :  { %7580 = vmatmul.mubr.f32.gmra.mxu0 %v2738_v54  ;;  %7649 = vmatpush3.msra.mxu1 %v8374_v4 }
 0x99a   :  { %7603 = vmatpush3.msra.mxu0 %v8409_v17  ;;  %7608 = vmatprep.mubr.f32.mxu0 %v2705_v42 }
 0x99b   :  { %7604 = vmatprep.subr.mxu0 %v8423_v21  ;;  %7628 = vmatmul.mubr.f32.gmra.mxu1 %v2736_v56 }
 0x99c   :  { %7650 = vmatprep.subr.mxu1 %v8376_v5  ;;  %7605 = vmatpush3.msra.mxu0 %v8423_v21 }
 0x99d   :  { %7651 = vmatpush3.msra.mxu1 %v8376_v5  ;;  %7656 = vmatprep.mubr.f32.mxu1 %v9056_v41 }
 0x99e   :  { %7606 = vmatprep.subr.mxu0 %v8426_v22  ;;  %7652 = vmatprep.subr.mxu1 %v8387_v10 }
 0x99f   :  { %7607 = vmatpush3.msra.mxu0 %v8426_v22  ;;  %7653 = vmatpush3.msra.mxu1 %v8387_v10 }
 0x9a0   :  { %7609 = vmatmul.mubr.f32.vlgmr.msra.gmra.mxu0 %v9059_v18  ;;  %7630 = vmatprep.subr.mxu0 %v8432_v23 }
 0x9a1   :  { %7654 = vmatprep.subr.mxu1 %v8389_v11  ;;  %7611 = vmatprep.mubr.f32.mxu0 %v2725_v30 }
 0x9a2   :  { %7631 = vmatpush3.msra.mxu0 %v8432_v23  ;;  %7655 = vmatpush3.msra.mxu1 %v8389_v11 }
 0x9a3   :  { %7632 = vmatprep.subr.mxu0 %v8436_v24  ;;  %7657 = vmatmul.mubr.f32.vlgmr.msra.gmra.mxu1 %v9053_v46 }
 0x9a4   :  { %7633 = vmatpush3.msra.mxu0 %v8436_v24  ;;  %7659 = vmatprep.mubr.f32.mxu1 %v9073_v19 }
 0x9a5   :  { %7612 = vmatmul.mubr.f32.gmra.mxu0 %v2735_v53  ;;  %7634 = vmatprep.subr.mxu0 %v8439_v25 }
 0x9a6   :  { %7635 = vmatpush3.msra.mxu0 %v8439_v25  ;;  %7640 = vmatprep.mubr.f32.mxu0 %v9056_v41 }
 0x9a7   :  { %7636 = vmatprep.subr.mxu0 %v8446_v27  ;;  %7660 = vmatmul.mubr.f32.gmra.mxu1 %v9070_v9 }
 0x9a8   :  { %7637 = vmatpush3.msra.mxu0 %v8446_v27  ;;  %7678 = vmatprep.subr.mxu1 %v8462_v33 }
 0x9a9   :  { %7638 = vmatprep.subr.mxu0 %v8459_v32  ;;  %7679 = vmatpush3.msra.mxu1 %v8462_v33 }
 0x9aa   :  { %7639 = vmatpush3.msra.mxu0 %v8459_v32  ;;  %7680 = vmatprep.subr.mxu1 %v8464_v34 }
 0x9ab   :  { %7641 = vmatmul.mubr.f32.vlgmr.msra.gmra.mxu0 %v9053_v46  ;;  %7681 = vmatpush3.msra.mxu1 %v8464_v34 }
 0x9ac   :  { %7643 = vmatprep.mubr.f32.mxu0 %v9073_v19  ;;  %7682 = vmatprep.subr.mxu1 %v8471_v37  ;;  %v9991_v19 = vld [vmem:[#allocation4_spill] sm:$0xff] }
 0x9ad   :  { %7683 = vmatpush3.msra.mxu1 %v8471_v37  ;;  %7662 = vmatprep.subr.mxu0 %v8372_v3 }
 0x9ae   :  { %7684 = vmatprep.subr.mxu1 %v8485_v47  ;;  %7663 = vmatpush3.msra.mxu0 %v8372_v3 }
 0x9af   :  { %7644 = vmatmul.mubr.f32.gmra.mxu0 %v9070_v9  ;;  %7685 = vmatpush3.msra.mxu1 %v8485_v47 }
 0x9b0   :  { %7686 = vmatprep.subr.mxu1 %v9987_v26  ;;  %7664 = vmatprep.subr.mxu0 %v8374_v4 }
 0x9b1   :  { %7687 = vmatpush3.msra.mxu1 %v9987_v26  ;;  %7665 = vmatpush3.msra.mxu0 %v8374_v4 }
 0x9b2   :  { %7710 = vmatprep.subr.mxu1 %v8372_v3  ;;  %7666 = vmatprep.subr.mxu0 %v8376_v5 }
 0x9b3   :  { %7667 = vmatpush3.msra.mxu0 %v8376_v5 }
 0x9b4   :  { %7668 = vmatprep.subr.mxu0 %v8387_v10 }
 0x9b5   :  { %7669 = vmatpush3.msra.mxu0 %v8387_v10 }
 0x9b6   :  { %7670 = vmatprep.subr.mxu0 %v8389_v11 }
 0x9b7   :  { %7671 = vmatpush3.msra.mxu0 %v8389_v11 }
 0x9b8   :  { %7694 = vmatprep.subr.mxu0 %v8403_v15 }
 0xa10   :  { %v2549_v61 = vpop.xlane.xlu0 %2548 }
 0xa11   :  { %v2557_v57 = vadd.f32 %v9147_v60, %v2549_v61  ;;  %v2546_v62 = vpop.xlane.xlu1 %2545 }
 0xa12   :  { %v2556_v20 = vadd.f32 %v9147_v60, %v2546_v62 }
 0xa13   :  { %6783 = vst.msk [vmem:[%s9974_s7 + $0x48] sm:$0xff] %vm886_vm4, %v2557_v57  ;;  %2605 = vperm.xlu1 %8052, %v2557_v57  }
 0xa14   :  { %6782 = vst.msk [vmem:[%s9974_s7 + $0x40] sm:$0xff] %vm886_vm4, %v2556_v20  ;;  %2600 = vperm.xlu0 %8051, %v2556_v20  }
 0xa15   :  { %v2555_v63 = vpop.xlane.xlu1 %2554 }
 0xa16   :  { %v2552_v6 = vpop.xlane.xlu0 %2551  ;;  %v2559_v12 = vadd.f32 %v9147_v60, %v2555_v63 }
 0xa17   :  { %v2558_v13 = vadd.f32 %v9147_v60, %v2552_v6 }
 0xa18   :  { %6785 = vst.msk [vmem:[%s9974_s7 + $0x58] sm:$0xff] %vm886_vm4, %v2559_v12  ;;  %2615 = vperm.xlu0 %8051, %v2559_v12  }
 0xa19   :  { %6784 = vst.msk [vmem:[%s9974_s7 + $0x50] sm:$0xff] %vm886_vm4, %v2558_v13  ;;  %2610 = vperm.xlu1 %8052, %v2558_v13  }
 0xa4a   :  { %v7594_v44 = vpop.f32.mrf.mxu1 }
 0xa4c   :  { %v2836_v18 = vpop.f32.mrf.mxu1 }
 0xa4f   :  { %v7597_v31 = vpop.f32.mrf.mxu1 }
 0xa51   :  { %v2848_v40 = vpop.f32.mrf.mxu1 }
 0xa52   :  { %v7578_v46 = vpop.f32.mrf.mxu0 }
 0xa54   :  { %v2710_v41 = vpop.f32.mrf.mxu0 }
 0xa55   :  { %v7626_v7 = vpop.f32.mrf.mxu1 }
 0xa57   :  { %v3035_v2 = vpop.f32.mrf.mxu1 }
 0xa59   :  { %v7581_v48 = vpop.f32.mrf.mxu0 }
 0xa5b   :  { %v2730_v42 = vpop.f32.mrf.mxu0  ;;  %v7629_v52 = vpop.f32.mrf.mxu1 }
 0xa5d   :  { %v3051_v30 = vpop.f32.mrf.mxu1 }
 0xa60   :  { %v7610_v58 = vpop.f32.mrf.mxu0 }
 0xa62   :  { %v2936_v28 = vpop.f32.mrf.mxu0 }
 0xa63   :  { %v7658_v49 = vpop.f32.mrf.mxu1 }
 0xa65   :  { %v7613_v0 = vpop.f32.mrf.mxu0 }
 0xa67   :  { %v2950_v51 = vpop.f32.mrf.mxu0 }
 0xa6b   :  { %v7642_v55 = vpop.f32.mrf.mxu0 }
 0xa6d   :  { %v3145_v20 = vpop.f32.mrf.mxu0 }
 0xa8e   :  { %v2606_v9 = vpop.permute.xlu1 %2605 }
 0xa8f   :  { %v2601_v14 = vpop.permute.xlu0 %2600  ;;  %v2619_v29 = vmul.f32 %v9991_v19, %v2606_v9  ;;  %v3239_v9 = vpop.f32.mrf.mxu1 }
 0xa90   :  { %v2618_v53 = vmul.f32 %v9991_v19, %v2601_v14 }
 0xa91   :  { %v2721_v36 = vadd.f32 %v7578_v46, %v2619_v29 }
 0xa92   :  { %v2711_v56 = vadd.f32 %v2710_v41, %v2618_v53 }
 0xa93   :  { %v2843_v39 = vadd.f32 %v7594_v44, %v2721_v36  ;;  %v2616_v35 = vpop.permute.xlu0 %2615  ;;  %v7645_v44 = vpop.f32.mrf.mxu0 }
 0xa94   :  { %v2837_v59 = vadd.f32 %v2836_v18, %v2711_v56  ;;  %v2621_v54 = vmul.f32 %v9991_v19, %v2616_v35  ;;  %v2611_v61 = vpop.permute.xlu1 %2610  ;;  %v7661_v35 = vpop.f32.mrf.mxu1 }
 0xa95   :  { %v2944_v57 = vadd.f32 %v7610_v58, %v2843_v39  ;;  %v2620_v62 = vmul.f32 %v9991_v19, %v2611_v61 }
 0xa96   :  { %v2937_v63 = vadd.f32 %v2936_v28, %v2837_v59  ;;  %v2741_v6 = vadd.f32 %v7581_v48, %v2621_v54  ;;  %v3157_v28 = vpop.f32.mrf.mxu0 }
 0xa97   :  { %v3044_v12 = vadd.f32 %v7626_v7, %v2944_v57  ;;  %v2731_v13 = vadd.f32 %v2730_v42, %v2620_v62 }
 0xa98   :  { %v3036_v46 = vadd.f32 %v3035_v2, %v2937_v63  ;;  %v2855_v14 = vadd.f32 %v7597_v31, %v2741_v6  ;;  %v3251_v31 = vpop.f32.mrf.mxu1 }
 0xa99   :  { %v3152_v29 = vadd.f32 %v7642_v55, %v3044_v12  ;;  %v2849_v41 = vadd.f32 %v2848_v40, %v2731_v13 }
 0xa9a   :  { %v3146_v53 = vadd.f32 %v3145_v20, %v3036_v46  ;;  %v2958_v36 = vadd.f32 %v7613_v0, %v2855_v14 }
 0xa9b   :  { %v3246_v18 = vadd.f32 %v7658_v49, %v3152_v29  ;;  %v2951_v56 = vadd.f32 %v2950_v51, %v2849_v41 }
 0xa9c   :  { %v3240_v60 = vadd.f32 %v3239_v9, %v3146_v53  ;;  %v3060_v58 = vadd.f32 %v7629_v52, %v2958_v36 }
 0xa9d   :  { %v3262_v19 = vadd.f32 %v8984_v8, %v3246_v18  ;;  %v3052_v39 = vadd.f32 %v3051_v30, %v2951_v56 }
 0xa9e   :  { %v3261_v48 = vadd.f32 %v8984_v8, %v3240_v60  ;;  %v3164_v42 = vadd.f32 %v7645_v44, %v3060_v58 }
 0xa9f   :  { %8149 = vtanh.f32 %v3262_v19  ;;  %v3158_v7 = vadd.f32 %v3157_v28, %v3052_v39  ;;  %v6791_v49 = vmul.f32 -1.442695, %v3262_v19 }
 0xaa0   :  { %8151 = vtanh.f32 %v3261_v48  ;;  %v3258_v40 = vadd.f32 %v7661_v35, %v3164_v42  ;;  %v6790_v59 = vmul.f32 -1.442695, %v3261_v48 }
 0xaa1   :  { %v3252_v2 = vadd.f32 %v3251_v31, %v3158_v7 }
 0xaa2   :  { %v3264_v0 = vadd.f32 %v8984_v8, %v3258_v40 }
 0xaa3   :  { %v3263_v51 = vadd.f32 %v8984_v8, %v3252_v2 }
 0xaa4   :  { %8153 = vtanh.f32 %v3264_v0  ;;  %v6793_v54 = vmul.f32 -1.442695, %v3264_v0 }
 0xaa5   :  { %8155 = vtanh.f32 %v3263_v51  ;;  %v6792_v8 = vmul.f32 -1.442695, %v3263_v51 }
 0xaa6   :  { %8157 = vpow2.f32 %v6791_v49  ;;  %v6800_v49 = vld [vmem:[%s9968_s1 + $0x90] sm:$0xff] }
 0xaa7   :  { %8159 = vpow2.f32 %v6790_v59  ;;  %3409 = vst.msk [vmem:[#allocation2 + $0x10] sm:$0xff] %vm45_vm0, %v6800_v49 }
 0xaa8   :  { %8161 = vpow2.f32 %v6793_v54 }
 0xaa9   :  { %8163 = vpow2.f32 %v6792_v8 }
 0xaac   :  { %v8150_v52 = vpop.eup %8149 }
 0xaad   :  { %v8152_v55 = vpop.eup %8151  ;;  %3303 = vrot.lane.b32.xlu0 %v8150_v52, %s8320_s29 }
 0xaae   :  { %3301 = vrot.lane.b32.xlu1 %v8152_v55, %s8320_s29 }
 0xab1   :  { %v8154_v60 = vpop.eup %8153 }
 0xab2   :  { %v8156_v30 = vpop.eup %8155  ;;  %3307 = vrot.lane.b32.xlu0 %v8154_v60, %s8320_s29  ;;  %v6798_v60 = vld [vmem:[%s9968_s1 + $0x80] sm:$0xff] }
 0xab3   :  { %3305 = vrot.lane.b32.xlu1 %v8156_v30, %s8320_s29  ;;  %v8158_v61 = vpop.eup %8157  ;;  %3407 = vst.msk [vmem:[#allocation2] sm:$0xff] %vm45_vm0, %v6798_v60  ;;  %v6801_v30 = vld [vmem:[%s9968_s1 + $0x98] sm:$0xff] }
 0xab4   :  { %v8160_v57 = vpop.eup %8159  ;;  %v3278_v62 = vadd.f32 1.0, %v8158_v61  ;;  %3410 = vst.msk [vmem:[#allocation2 + $0x18] sm:$0xff] %vm45_vm0, %v6801_v30 }
 0xab5   :  { %v3277_v20 = vadd.f32 1.0, %v8160_v57  ;;  %v8162_v63 = vpop.eup %8161 }
 0xab6   :  { %v8164_v6 = vpop.eup %8163  ;;  %8165 = vrcp.f32 %v3278_v62  ;;  %v3280_v12 = vadd.f32 1.0, %v8162_v63 }
 0xab7   :  { %8167 = vrcp.f32 %v3277_v20  ;;  %v3279_v13 = vadd.f32 1.0, %v8164_v6 }
 0xab8   :  { %8169 = vrcp.f32 %v3280_v12 }
 0xab9   :  { %8171 = vrcp.f32 %v3279_v13 }
 0xac3   :  { %v8166_v9 = vpop.eup %8165 }
 0xac4   :  { %v8168_v14 = vpop.eup %8167  ;;  %v3294_v19 = vmul.f32 %v8166_v9, %v9000_v45 }
 0xac5   :  { %v8170_v53 = vpop.eup %8169  ;;  %v3293_v28 = vmul.f32 %v8168_v14, %v9002_v43 }
 0xac6   :  { %v8172_v18 = vpop.eup %8171  ;;  %v3296_v31 = vmul.f32 %v8170_v53, %v9008_v38  ;;  %v6799_v38 = vld [vmem:[%s9968_s1 + $0x88] sm:$0xff] }
 0xac7   :  { %v3295_v2 = vmul.f32 %v8172_v18, %v9010_v50  ;;  %3408 = vst.msk [vmem:[#allocation2 + $0x8] sm:$0xff] %vm45_vm0, %v6799_v38 }
 0xb1f   :  { %v3304_v46 = vpop.permute.xlu0 %3303 }
 0xb20   :  { %v3314_v29 = vmul.f32 %v8166_v9, %v3304_v46  ;;  %v3302_v41 = vpop.permute.xlu1 %3301 }
 0xb21   :  { %v3313_v44 = vmul.f32 %v8168_v14, %v3302_v41 }
 0xb22   :  { %3323 = vrot.lane.b32.xlu0 %v3314_v29, %s8320_s29 }
 0xb23   :  { %3321 = vrot.lane.b32.xlu1 %v3313_v44, %s8320_s29 }
 0xb24   :  { %v3308_v36 = vpop.permute.xlu0 %3307 }
 0xb25   :  { %v3316_v56 = vmul.f32 %v8170_v53, %v3308_v36  ;;  %v3306_v35 = vpop.permute.xlu1 %3305 }
 0xb26   :  { %v3315_v58 = vmul.f32 %v8172_v18, %v3306_v35 }
 0xb27   :  { %3327 = vrot.lane.b32.xlu0 %v3316_v56, %s8320_s29 }
 0xb28   :  { %3325 = vrot.lane.b32.xlu1 %v3315_v58, %s8320_s29 }
 0xb94   :  { %v3324_v39 = vpop.permute.xlu0 %3323 }
 0xb95   :  { %v9187_v48 = vadd.f32 %v3324_v39, %v3294_v19  ;;  %v3322_v42 = vpop.permute.xlu1 %3321 }
 0xb96   :  { %v9189_v7 = vadd.f32 %v3322_v42, %v3293_v28 }
 0xb97   :  { %8173 = vtanh.f32 %v9187_v48 }
 0xb98   :  { %8175 = vtanh.f32 %v9189_v7 }
 0xb99   :  { %v3328_v40 = vpop.permute.xlu0 %3327 }
 0xb9a   :  { %v9195_v0 = vadd.f32 %v3328_v40, %v3296_v31  ;;  %v3326_v45 = vpop.permute.xlu1 %3325 }
 0xb9b   :  { %v9197_v51 = vadd.f32 %v3326_v45, %v3295_v2 }
 0xb9c   :  { %8177 = vtanh.f32 %v9195_v0 }
 0xb9d   :  { %8179 = vtanh.f32 %v9197_v51 }
 0xba4   :  { %v8174_v43 = vpop.eup %8173 }
 0xba5   :  { %v8176_v52 = vpop.eup %8175  ;;  %3347 = vrot.lane.b32.xlu0 %v8174_v43, %s8320_s29 }
 0xba6   :  { %3345 = vrot.lane.b32.xlu1 %v8176_v52, %s8320_s29 }
 0xba9   :  { %v8178_v50 = vpop.eup %8177 }
 0xbaa   :  { %v8180_v55 = vpop.eup %8179  ;;  %3351 = vrot.lane.b32.xlu0 %v8178_v50, %s8320_s29 }
 0xbab   :  { %3349 = vrot.lane.b32.xlu1 %v8180_v55, %s8320_s29 }
 0xc17   :  { %v3348_v59 = vpop.permute.xlu0 %3347 }
 0xc18   :  { %v3358_v54 = vmul.f32 %v8166_v9, %v3348_v59  ;;  %v3346_v8 = vpop.permute.xlu1 %3345 }
 0xc19   :  { %v3357_v61 = vmul.f32 %v8168_v14, %v3346_v8 }
 0xc1a   :  { %3417 = vrot.lane.b32.xlu0 %v3358_v54, %s8321_s15  ;;  %v3362_v6 = vmul.f32 %v3358_v54, %v8658_v1 }
 0xc1b   :  { %3415 = vrot.lane.b32.xlu1 %v3357_v61, %s8321_s15  ;;  %v3361_v12 = vmul.f32 %v3357_v61, %v8658_v1 }
 0xc1c   :  { %v3352_v57 = vpop.permute.xlu0 %3351 }
 0xc1d   :  { %v3360_v62 = vmul.f32 %v8170_v53, %v3352_v57  ;;  %v3350_v20 = vpop.permute.xlu1 %3349 }
 0xc1e   :  { %v3359_v63 = vmul.f32 %v8172_v18, %v3350_v20 }
 0xc1f   :  { %3421 = vrot.lane.b32.xlu0 %v3360_v62, %s8321_s15  ;;  %v3364_v13 = vmul.f32 %v3360_v62, %v8658_v1 }
 0xc20   :  { %3419 = vrot.lane.b32.xlu1 %v3359_v63, %s8321_s15  ;;  %v3363_v9 = vmul.f32 %v3359_v63, %v8658_v1 }
 0xc23   :  { %3371 = vrot.lane.b32.xlu0 %v3362_v6, %s8322_s17 }
 0xc24   :  { %3369 = vrot.lane.b32.xlu1 %v3361_v12, %s8322_s17 }
 0xc27   :  { %3375 = vrot.lane.b32.xlu0 %v3364_v13, %s8322_s17 }
 0xc28   :  { %3373 = vrot.lane.b32.xlu1 %v3363_v9, %s8322_s17 }
 0xc8c   :  { %v3418_v46 = vpop.permute.xlu0 %3417 }
 0xc8d   :  { %3428 = vst.msk [vmem:[#allocation2 + $0x8] sm:$0xff] %vm50_vm1, %v3418_v46  ;;  %v3416_v14 = vpop.permute.xlu1 %3415 }
 0xc8e   :  { %3427 = vst.msk [vmem:[#allocation2] sm:$0xff] %vm50_vm1, %v3416_v14 }
 0xc91   :  { %v3422_v29 = vpop.permute.xlu0 %3421 }
 0xc92   :  { %3430 = vst.msk [vmem:[#allocation2 + $0x18] sm:$0xff] %vm50_vm1, %v3422_v29  ;;  %v3420_v41 = vpop.permute.xlu1 %3419  ;;  %v9992_v29 = vld [vmem:[#allocation5_spill] sm:$0xff] }
 0xc93   :  { %3429 = vst.msk [vmem:[#allocation2 + $0x10] sm:$0xff] %vm50_vm1, %v3420_v41 }
 0xc94   :  { %v3432_v44 = vld [vmem:[#allocation2 + $0x8] sm:$0xff] }
 0xc95   :  { %v3372_v53 = vpop.permute.xlu0 %3371  ;;  %v3431_v36 = vld [vmem:[#allocation2] sm:$0xff]  ;;  %v3463_v18 = vsel %vm89_vm2, %v3432_v44, 0 }
 0xc96   :  { %v3370_v56 = vpop.permute.xlu1 %3369  ;;  %v3384_v35 = vsel %vm863_vm3, %v3372_v53, 0.0  ;;  %v3460_v58 = vsel %vm89_vm2, %v3431_v36, 0  ;;  %v9240_v19 = vand.u32 4294901760, %v3463_v18 }
 0xc97   :  { %3385 = vadd.xlane.f32.xlu0 %v3384_v35  ;;  %v3381_v39 = vsel %vm863_vm3, %v3370_v56, 0.0  ;;  %v9243_v28 = vand.u32 4294901760, %v3460_v58 }
 0xc98   :  { %3382 = vadd.xlane.f32.xlu1 %v3381_v39  ;;  %v9246_v42 = vsub.f32 %v3463_v18, %v9240_v19 }
 0xc99   :  { %v3376_v31 = vpop.permute.xlu0 %3375  ;;  %7688 = vmatprep.mubr.f32.mxu1 %v9243_v28  ;;  %v3434_v40 = vld [vmem:[#allocation2 + $0x18] sm:$0xff]  ;;  %v3542_v2 = vsub.f32 %v3460_v58, %v9243_v28 }
 0xc9a   :  { %v3374_v45 = vpop.permute.xlu1 %3373  ;;  %7689 = vmatmul.mubr.f32.vlgmr.msra.gmra.mxu1 %v9240_v19  ;;  %v3390_v43 = vsel %vm863_vm3, %v3376_v31, 0.0  ;;  %v3433_v52 = vld [vmem:[#allocation2 + $0x10] sm:$0xff]  ;;  %v3469_v38 = vsel %vm89_vm2, %v3434_v40, 0  ;;  %v3553_v50 = vand.u32 4294901760, %v9246_v42 }
 0xc9b   :  { %7711 = vmatpush3.msra.mxu1 %v8372_v3  ;;  %v3387_v55 = vsel %vm863_vm3, %v3374_v45, 0.0  ;;  %v3466_v60 = vsel %vm89_vm2, %v3433_v52, 0  ;;  %v9257_v30 = vand.u32 4294901760, %v3469_v38  ;;  %v3543_v49 = vand.u32 4294901760, %v3542_v2 }
 0xc9c   :  { %7712 = vmatprep.subr.mxu1 %v8374_v4  ;;  %3391 = vadd.xlane.f32.xlu1 %v3390_v43  ;;  %v9260_v59 = vand.u32 4294901760, %v3466_v60  ;;  %v3554_v54 = vsub.f32 %v9246_v42, %v3553_v50 }
 0xc9d   :  { %3388 = vadd.xlane.f32.xlu0 %v3387_v55  ;;  %7713 = vmatpush3.msra.mxu1 %v8374_v4  ;;  %v3544_v8 = vsub.f32 %v3542_v2, %v3543_v49  ;;  %v3572_v61 = vsub.f32 %v3469_v38, %v9257_v30 }
 0xc9e   :  { %7691 = vmatprep.mubr.f32.mxu1 %v9260_v59  ;;  %7714 = vmatprep.subr.mxu1 %v8376_v5  ;;  %v3555_v57 = vand.u32 4294901760, %v3554_v54  ;;  %v3562_v62 = vsub.f32 %v3466_v60, %v9260_v59 }
 0xc9f   :  { %7692 = vmatmul.mubr.f32.gmra.mxu1 %v9257_v30  ;;  %v3545_v20 = vand.u32 4294901760, %v3544_v8  ;;  %v3573_v63 = vand.u32 4294901760, %v3572_v61 }
 0xca0   :  { %7715 = vmatpush3.msra.mxu1 %v8376_v5  ;;  %7720 = vmatprep.mubr.f32.mxu1 %v3543_v49  ;;  %v3563_v6 = vand.u32 4294901760, %v3562_v62  ;;  %v9357_v49 = vld [vmem:[%s9970_s2] ss:$0 sm:$0xff] }
 0xca1   :  { %7716 = vmatprep.subr.mxu1 %v8387_v10  ;;  %7672 = vmatprep.mubr.f32.mxu0 %v3545_v20  ;;  %v3574_v12 = vsub.f32 %v3572_v61, %v3573_v63 }
 0xca2   :  { %7717 = vmatpush3.msra.mxu1 %v8387_v10  ;;  %7673 = vmatmul.mubr.f32.vlgmr.msra.gmra.mxu0 %v3555_v57  ;;  %v3564_v13 = vsub.f32 %v3562_v62, %v3563_v6 }
 0xca3   :  { %7718 = vmatprep.subr.mxu1 %v8389_v11  ;;  %7695 = vmatpush3.msra.mxu0 %v8403_v15  ;;  %v3575_v46 = vand.u32 4294901760, %v3574_v12 }
 0xca4   :  { %7719 = vmatpush3.msra.mxu1 %v8389_v11  ;;  %7696 = vmatprep.subr.mxu0 %v8406_v16  ;;  %v3565_v9 = vand.u32 4294901760, %v3564_v13 }
 0xca5   :  { %7721 = vmatmul.mubr.f32.vlgmr.msra.gmra.mxu1 %v3553_v50  ;;  %7742 = vmatprep.subr.mxu1 %v8372_v3 }
 0xca6   :  { %7697 = vmatpush3.msra.mxu0 %v8406_v16  ;;  %7723 = vmatprep.mubr.f32.mxu1 %v3563_v6 }
 0xca7   :  { %7743 = vmatpush3.msra.mxu1 %v8372_v3  ;;  %7675 = vmatprep.mubr.f32.mxu0 %v3565_v9 }
 0xca8   :  { %7698 = vmatprep.subr.mxu0 %v8409_v17  ;;  %7744 = vmatprep.subr.mxu1 %v8374_v4 }
 0xca9   :  { %7676 = vmatmul.mubr.f32.gmra.mxu0 %v3575_v46  ;;  %7745 = vmatpush3.msra.mxu1 %v8374_v4 }
 0xcaa   :  { %7699 = vmatpush3.msra.mxu0 %v8409_v17  ;;  %7704 = vmatprep.mubr.f32.mxu0 %v3542_v2 }
 0xcab   :  { %7700 = vmatprep.subr.mxu0 %v8423_v21  ;;  %7724 = vmatmul.mubr.f32.gmra.mxu1 %v3573_v63 }
 0xcac   :  { %7746 = vmatprep.subr.mxu1 %v8376_v5  ;;  %7701 = vmatpush3.msra.mxu0 %v8423_v21 }
 0xcad   :  { %7747 = vmatpush3.msra.mxu1 %v8376_v5  ;;  %7752 = vmatprep.mubr.f32.mxu1 %v9243_v28 }
 0xcae   :  { %7702 = vmatprep.subr.mxu0 %v8426_v22  ;;  %7748 = vmatprep.subr.mxu1 %v8387_v10 }
 0xcaf   :  { %7703 = vmatpush3.msra.mxu0 %v8426_v22  ;;  %7749 = vmatpush3.msra.mxu1 %v8387_v10 }
 0xcb0   :  { %7705 = vmatmul.mubr.f32.vlgmr.msra.gmra.mxu0 %v9246_v42  ;;  %7726 = vmatprep.subr.mxu0 %v8432_v23 }
 0xcb1   :  { %7750 = vmatprep.subr.mxu1 %v8389_v11  ;;  %7707 = vmatprep.mubr.f32.mxu0 %v3562_v62 }
 0xcb2   :  { %7727 = vmatpush3.msra.mxu0 %v8432_v23  ;;  %7751 = vmatpush3.msra.mxu1 %v8389_v11 }
 0xcb3   :  { %7728 = vmatprep.subr.mxu0 %v8436_v24  ;;  %7753 = vmatmul.mubr.f32.vlgmr.msra.gmra.mxu1 %v9240_v19 }
 0xcb4   :  { %7729 = vmatpush3.msra.mxu0 %v8436_v24  ;;  %7755 = vmatprep.mubr.f32.mxu1 %v9260_v59 }
 0xcb5   :  { %7708 = vmatmul.mubr.f32.gmra.mxu0 %v3572_v61  ;;  %7730 = vmatprep.subr.mxu0 %v8439_v25 }
 0xcb6   :  { %7731 = vmatpush3.msra.mxu0 %v8439_v25  ;;  %7736 = vmatprep.mubr.f32.mxu0 %v9243_v28 }
 0xcb7   :  { %7732 = vmatprep.subr.mxu0 %v8446_v27  ;;  %7756 = vmatmul.mubr.f32.gmra.mxu1 %v9257_v30 }
 0xcb8   :  { %7733 = vmatpush3.msra.mxu0 %v8446_v27  ;;  %7774 = vmatprep.subr.mxu1 %v8462_v33 }
 0xcb9   :  { %7734 = vmatprep.subr.mxu0 %v8459_v32  ;;  %7775 = vmatpush3.msra.mxu1 %v8462_v33 }
 0xcba   :  { %7735 = vmatpush3.msra.mxu0 %v8459_v32  ;;  %7776 = vmatprep.subr.mxu1 %v8464_v34 }
 0xcbb   :  { %7737 = vmatmul.mubr.f32.vlgmr.msra.gmra.mxu0 %v9240_v19  ;;  %7777 = vmatpush3.msra.mxu1 %v8464_v34 }
 0xcbc   :  { %7739 = vmatprep.mubr.f32.mxu0 %v9260_v59  ;;  %7778 = vmatprep.subr.mxu1 %v8471_v37 }
 0xcbd   :  { %7779 = vmatpush3.msra.mxu1 %v8471_v37  ;;  %7758 = vmatprep.subr.mxu0 %v8372_v3 }
 0xcbe   :  { %7780 = vmatprep.subr.mxu1 %v8485_v47  ;;  %7759 = vmatpush3.msra.mxu0 %v8372_v3 }
 0xcbf   :  { %7740 = vmatmul.mubr.f32.gmra.mxu0 %v9257_v30  ;;  %7781 = vmatpush3.msra.mxu1 %v8485_v47 }
 0xcc0   :  { %7782 = vmatprep.subr.mxu1 %v9987_v26  ;;  %7760 = vmatprep.subr.mxu0 %v8374_v4 }
 0xcc1   :  { %7783 = vmatpush3.msra.mxu1 %v9987_v26  ;;  %7761 = vmatpush3.msra.mxu0 %v8374_v4 }
 0xcc2   :  { %7806 = vmatprep.subr.mxu1 %v8372_v3  ;;  %7762 = vmatprep.subr.mxu0 %v8376_v5 }
 0xcc3   :  { %7763 = vmatpush3.msra.mxu0 %v8376_v5 }
 0xcc4   :  { %7764 = vmatprep.subr.mxu0 %v8387_v10 }
 0xcc5   :  { %7765 = vmatpush3.msra.mxu0 %v8387_v10 }
 0xcc6   :  { %7766 = vmatprep.subr.mxu0 %v8389_v11 }
 0xcc7   :  { %7767 = vmatpush3.msra.mxu0 %v8389_v11 }
 0xcc8   :  { %7790 = vmatprep.subr.mxu0 %v8403_v15 }
 0xd20   :  { %v3386_v14 = vpop.xlane.xlu0 %3385 }
 0xd21   :  { %v3394_v41 = vadd.f32 %v9992_v29, %v3386_v14  ;;  %v3383_v44 = vpop.xlane.xlu1 %3382 }
 0xd22   :  { %v3393_v53 = vadd.f32 %v9992_v29, %v3383_v44 }
 0xd23   :  { %6795 = vst.msk [vmem:[%s9974_s7 + $0x68] sm:$0xff] %vm886_vm4, %v3394_v41  ;;  %3442 = vperm.xlu1 %8052, %v3394_v41  }
 0xd24   :  { %6794 = vst.msk [vmem:[%s9974_s7 + $0x60] sm:$0xff] %vm886_vm4, %v3393_v53  ;;  %3437 = vperm.xlu0 %8051, %v3393_v53  }
 0xd25   :  { %v3392_v36 = vpop.xlane.xlu1 %3391 }
 0xd26   :  { %v3389_v18 = vpop.xlane.xlu0 %3388  ;;  %v3396_v56 = vadd.f32 %v9992_v29, %v3392_v36 }
 0xd27   :  { %v3395_v35 = vadd.f32 %v9992_v29, %v3389_v18 }
 0xd28   :  { %6797 = vst.msk [vmem:[%s9974_s7 + $0x78] sm:$0xff] %vm886_vm4, %v3396_v56  ;;  %3452 = vperm.xlu0 %8051, %v3396_v56  }
 0xd29   :  { %6796 = vst.msk [vmem:[%s9974_s7 + $0x70] sm:$0xff] %vm886_vm4, %v3395_v35  ;;  %3447 = vperm.xlu1 %8052, %v3395_v35  }
 0xd5a   :  { %v7690_v19 = vpop.f32.mrf.mxu1 }
 0xd5c   :  { %v3673_v28 = vpop.f32.mrf.mxu1 }
 0xd5f   :  { %v7693_v31 = vpop.f32.mrf.mxu1 }
 0xd61   :  { %v3685_v2 = vpop.f32.mrf.mxu1 }
 0xd62   :  { %v7674_v58 = vpop.f32.mrf.mxu0 }
 0xd64   :  { %v3547_v39 = vpop.f32.mrf.mxu0 }
 0xd65   :  { %v7722_v43 = vpop.f32.mrf.mxu1 }
 0xd67   :  { %v3872_v38 = vpop.f32.mrf.mxu1 }
 0xd69   :  { %v7677_v42 = vpop.f32.mrf.mxu0 }
 0xd6b   :  { %v3567_v40 = vpop.f32.mrf.mxu0  ;;  %v7725_v55 = vpop.f32.mrf.mxu1 }
 0xd6d   :  { %v3888_v57 = vpop.f32.mrf.mxu1 }
 0xd70   :  { %v7706_v45 = vpop.f32.mrf.mxu0 }
 0xd72   :  { %v3773_v52 = vpop.f32.mrf.mxu0 }
 0xd73   :  { %v7754_v12 = vpop.f32.mrf.mxu1 }
 0xd75   :  { %v7709_v50 = vpop.f32.mrf.mxu0  ;;  %v4076_v56 = vpop.f32.mrf.mxu1 }
 0xd77   :  { %v3787_v54 = vpop.f32.mrf.mxu0 }
 0xd7b   :  { %v7738_v62 = vpop.f32.mrf.mxu0 }
 0xd7d   :  { %v3982_v41 = vpop.f32.mrf.mxu0 }
 0xd9e   :  { %v3443_v60 = vpop.permute.xlu1 %3442 }
 0xd9f   :  { %v3438_v30 = vpop.permute.xlu0 %3437  ;;  %v3456_v59 = vmul.f32 %v9357_v49, %v3443_v60 }
 0xda0   :  { %v3455_v8 = vmul.f32 %v9357_v49, %v3438_v30 }
 0xda1   :  { %v3558_v61 = vadd.f32 %v7674_v58, %v3456_v59 }
 0xda2   :  { %v3548_v20 = vadd.f32 %v3547_v39, %v3455_v8 }
 0xda3   :  { %v3680_v63 = vadd.f32 %v7690_v19, %v3558_v61  ;;  %v3453_v6 = vpop.permute.xlu0 %3452  ;;  %v7741_v19 = vpop.f32.mrf.mxu0 }
 0xda4   :  { %v3674_v13 = vadd.f32 %v3673_v28, %v3548_v20  ;;  %v3458_v9 = vmul.f32 %v9357_v49, %v3453_v6  ;;  %v3448_v46 = vpop.permute.xlu1 %3447  ;;  %v7757_v61 = vpop.f32.mrf.mxu1 }
 0xda5   :  { %v3781_v14 = vadd.f32 %v7706_v45, %v3680_v63  ;;  %v3457_v29 = vmul.f32 %v9357_v49, %v3448_v46 }
 0xda6   :  { %v3774_v44 = vadd.f32 %v3773_v52, %v3674_v13  ;;  %v3578_v53 = vadd.f32 %v7677_v42, %v3458_v9  ;;  %v9366_v52 = vld [vmem:[%s9971_s4] ss:$0 sm:$0xff] }
 0xda7   :  { %v3881_v36 = vadd.f32 %v7722_v43, %v3781_v14  ;;  %v3568_v18 = vadd.f32 %v3567_v40, %v3457_v29  ;;  %v3994_v43 = vpop.f32.mrf.mxu0 }
 0xda8   :  { %v3873_v35 = vadd.f32 %v3872_v38, %v3774_v44  ;;  %v3692_v58 = vadd.f32 %v7693_v31, %v3578_v53 }
 0xda9   :  { %v3989_v60 = vadd.f32 %v7738_v62, %v3881_v36  ;;  %v3686_v39 = vadd.f32 %v3685_v2, %v3568_v18 }
 0xdaa   :  { %v3983_v30 = vadd.f32 %v3982_v41, %v3873_v35  ;;  %v3795_v59 = vadd.f32 %v7709_v50, %v3692_v58  ;;  %v4088_v50 = vpop.f32.mrf.mxu1 }
 0xdab   :  { %v4083_v28 = vadd.f32 %v7754_v12, %v3989_v60  ;;  %v3788_v8 = vadd.f32 %v3787_v54, %v3686_v39 }
 0xdac   :  { %v4077_v20 = vadd.f32 %v4076_v56, %v3983_v30  ;;  %v3897_v45 = vadd.f32 %v7725_v55, %v3795_v59 }
 0xdad   :  { %v4099_v42 = vadd.f32 %v9366_v52, %v4083_v28  ;;  %v3889_v40 = vadd.f32 %v3888_v57, %v3788_v8 }
 0xdae   :  { %v4098_v31 = vadd.f32 %v9366_v52, %v4077_v20  ;;  %v4001_v2 = vadd.f32 %v7741_v19, %v3897_v45 }
 0xdaf   :  { %8181 = vtanh.f32 %v4099_v42  ;;  %v3995_v38 = vadd.f32 %v3994_v43, %v3889_v40  ;;  %v6803_v9 = vmul.f32 -1.442695, %v4099_v42 }
 0xdb0   :  { %8183 = vtanh.f32 %v4098_v31  ;;  %v4095_v54 = vadd.f32 %v7757_v61, %v4001_v2  ;;  %v6802_v46 = vmul.f32 -1.442695, %v4098_v31 }
 0xdb1   :  { %v4089_v62 = vadd.f32 %v4088_v50, %v3995_v38 }
 0xdb2   :  { %v4101_v55 = vadd.f32 %v9366_v52, %v4095_v54 }
 0xdb3   :  { %v4100_v63 = vadd.f32 %v9366_v52, %v4089_v62 }
 0xdb4   :  { %8185 = vtanh.f32 %v4101_v55  ;;  %v6805_v14 = vmul.f32 -1.442695, %v4101_v55 }
 0xdb5   :  { %8187 = vtanh.f32 %v4100_v63  ;;  %v6804_v29 = vmul.f32 -1.442695, %v4100_v63 }
 0xdb6   :  { %8189 = vpow2.f32 %v6803_v9  ;;  %v6810_v9 = vld [vmem:[%s9968_s1 + $0xa0] sm:$0xff] }
 0xdb7   :  { %8191 = vpow2.f32 %v6802_v46  ;;  %4244 = vst.msk [vmem:[#allocation2] sm:$0xff] %vm45_vm0, %v6810_v9  ;;  %v6813_v46 = vld [vmem:[%s9968_s1 + $0xb8] sm:$0xff] }
 0xdb8   :  { %8193 = vpow2.f32 %v6805_v14  ;;  %4247 = vst.msk [vmem:[#allocation2 + $0x18] sm:$0xff] %vm45_vm0, %v6813_v46  ;;  %v6812_v14 = vld [vmem:[%s9968_s1 + $0xb0] sm:$0xff] }
 0xdb9   :  { %8195 = vpow2.f32 %v6804_v29  ;;  %4246 = vst.msk [vmem:[#allocation2 + $0x10] sm:$0xff] %vm45_vm0, %v6812_v14 }
 0xdbc   :  { %v8182_v6 = vpop.eup %8181 }
 0xdbd   :  { %v8184_v12 = vpop.eup %8183  ;;  %4140 = vrot.lane.b32.xlu0 %v8182_v6, %s8320_s29 }
 0xdbe   :  { %4138 = vrot.lane.b32.xlu1 %v8184_v12, %s8320_s29 }
 0xdc1   :  { %v8186_v57 = vpop.eup %8185 }
 0xdc2   :  { %v8188_v13 = vpop.eup %8187  ;;  %4144 = vrot.lane.b32.xlu0 %v8186_v57, %s8320_s29 }
 0xdc3   :  { %4142 = vrot.lane.b32.xlu1 %v8188_v13, %s8320_s29  ;;  %v8190_v41 = vpop.eup %8189 }
 0xdc4   :  { %v8192_v44 = vpop.eup %8191  ;;  %v4115_v53 = vadd.f32 1.0, %v8190_v41 }
 0xdc5   :  { %v4114_v36 = vadd.f32 1.0, %v8192_v44  ;;  %v8194_v18 = vpop.eup %8193 }
 0xdc6   :  { %v8196_v56 = vpop.eup %8195  ;;  %8197 = vrcp.f32 %v4115_v53  ;;  %v4117_v35 = vadd.f32 1.0, %v8194_v18 }
 0xdc7   :  { %8199 = vrcp.f32 %v4114_v36  ;;  %v4116_v58 = vadd.f32 1.0, %v8196_v56 }
 0xdc8   :  { %8201 = vrcp.f32 %v4117_v35 }
 0xdc9   :  { %8203 = vrcp.f32 %v4116_v58 }
 0xdd3   :  { %v8198_v60 = vpop.eup %8197 }
 0xdd4   :  { %v8200_v19 = vpop.eup %8199  ;;  %v4131_v43 = vmul.f32 %v8198_v60, %v9187_v48 }
 0xdd5   :  { %v8202_v8 = vpop.eup %8201  ;;  %v4130_v2 = vmul.f32 %v8200_v19, %v9189_v7 }
 0xdd6   :  { %v8204_v20 = vpop.eup %8203  ;;  %v4133_v62 = vmul.f32 %v8202_v8, %v9195_v0  ;;  %v6811_v0 = vld [vmem:[%s9968_s1 + $0xa8] sm:$0xff] }
 0xdd7   :  { %v4132_v63 = vmul.f32 %v8204_v20, %v9197_v51  ;;  %4245 = vst.msk [vmem:[#allocation2 + $0x8] sm:$0xff] %vm45_vm0, %v6811_v0 }
 0xe2f   :  { %v4141_v39 = vpop.permute.xlu0 %4140 }
 0xe30   :  { %v4151_v30 = vmul.f32 %v8198_v60, %v4141_v39  ;;  %v4139_v59 = vpop.permute.xlu1 %4138 }
 0xe31   :  { %v4150_v28 = vmul.f32 %v8200_v19, %v4139_v59 }
 0xe32   :  { %4160 = vrot.lane.b32.xlu0 %v4151_v30, %s8320_s29 }
 0xe33   :  { %4158 = vrot.lane.b32.xlu1 %v4150_v28, %s8320_s29 }
 0xe34   :  { %v4145_v61 = vpop.permute.xlu0 %4144 }
 0xe35   :  { %v4153_v45 = vmul.f32 %v8202_v8, %v4145_v61  ;;  %v4143_v42 = vpop.permute.xlu1 %4142 }
 0xe36   :  { %v4152_v40 = vmul.f32 %v8204_v20, %v4143_v42 }
 0xe37   :  { %4164 = vrot.lane.b32.xlu0 %v4153_v45, %s8320_s29 }
 0xe38   :  { %4162 = vrot.lane.b32.xlu1 %v4152_v40, %s8320_s29 }
 0xea4   :  { %v4161_v31 = vpop.permute.xlu0 %4160 }
 0xea5   :  { %v9382_v38 = vadd.f32 %v4161_v31, %v4131_v43  ;;  %v4159_v50 = vpop.permute.xlu1 %4158 }
 0xea6   :  { %v9384_v54 = vadd.f32 %v4159_v50, %v4130_v2 }
 0xea7   :  { %8205 = vtanh.f32 %v9382_v38 }
 0xea8   :  { %8207 = vtanh.f32 %v9384_v54 }
 0xea9   :  { %v4165_v55 = vpop.permute.xlu0 %4164 }
 0xeaa   :  { %v9390_v6 = vadd.f32 %v4165_v55, %v4133_v62  ;;  %v4163_v48 = vpop.permute.xlu1 %4162 }
 0xeab   :  { %v9392_v12 = vadd.f32 %v4163_v48, %v4132_v63 }
 0xeac   :  { %8209 = vtanh.f32 %v9390_v6 }
 0xead   :  { %8211 = vtanh.f32 %v9392_v12 }
 0xeb4   :  { %v8206_v7 = vpop.eup %8205 }
 0xeb5   :  { %v8208_v57 = vpop.eup %8207  ;;  %4184 = vrot.lane.b32.xlu0 %v8206_v7, %s8320_s29 }
 0xeb6   :  { %4182 = vrot.lane.b32.xlu1 %v8208_v57, %s8320_s29 }
 0xeb9   :  { %v8210_v51 = vpop.eup %8209 }
 0xeba   :  { %v8212_v13 = vpop.eup %8211  ;;  %4188 = vrot.lane.b32.xlu0 %v8210_v51, %s8320_s29 }
 0xebb   :  { %4186 = vrot.lane.b32.xlu1 %v8212_v13, %s8320_s29 }
 0xf27   :  { %v4185_v29 = vpop.permute.xlu0 %4184 }
 0xf28   :  { %v4195_v41 = vmul.f32 %v8198_v60, %v4185_v29  ;;  %v4183_v44 = vpop.permute.xlu1 %4182 }
 0xf29   :  { %v4194_v53 = vmul.f32 %v8200_v19, %v4183_v44 }
 0xf2a   :  { %4254 = vrot.lane.b32.xlu0 %v4195_v41, %s8321_s15  ;;  %v4199_v58 = vmul.f32 %v4195_v41, %v8658_v1 }
 0xf2b   :  { %4252 = vrot.lane.b32.xlu1 %v4194_v53, %s8321_s15  ;;  %v4198_v39 = vmul.f32 %v4194_v53, %v8658_v1 }
 0xf2c   :  { %v4189_v36 = vpop.permute.xlu0 %4188 }
 0xf2d   :  { %v4197_v18 = vmul.f32 %v8202_v8, %v4189_v36  ;;  %v4187_v56 = vpop.permute.xlu1 %4186 }
 0xf2e   :  { %v4196_v35 = vmul.f32 %v8204_v20, %v4187_v56 }
 0xf2f   :  { %4258 = vrot.lane.b32.xlu0 %v4197_v18, %s8321_s15  ;;  %v4201_v60 = vmul.f32 %v4197_v18, %v8658_v1 }
 0xf30   :  { %4256 = vrot.lane.b32.xlu1 %v4196_v35, %s8321_s15  ;;  %v4200_v19 = vmul.f32 %v4196_v35, %v8658_v1 }
 0xf33   :  { %4208 = vrot.lane.b32.xlu0 %v4199_v58, %s8322_s17 }
 0xf34   :  { %4206 = vrot.lane.b32.xlu1 %v4198_v39, %s8322_s17 }
 0xf37   :  { %4212 = vrot.lane.b32.xlu0 %v4201_v60, %s8322_s17 }
 0xf38   :  { %4210 = vrot.lane.b32.xlu1 %v4200_v19, %s8322_s17 }
 0xf9c   :  { %v4255_v30 = vpop.permute.xlu0 %4254 }
 0xf9d   :  { %4265 = vst.msk [vmem:[#allocation2 + $0x8] sm:$0xff] %vm50_vm1, %v4255_v30  ;;  %v4253_v59 = vpop.permute.xlu1 %4252 }
 0xf9e   :  { %4264 = vst.msk [vmem:[#allocation2] sm:$0xff] %vm50_vm1, %v4253_v59 }
 0xfa1   :  { %v4259_v28 = vpop.permute.xlu0 %4258 }
 0xfa2   :  { %4267 = vst.msk [vmem:[#allocation2 + $0x18] sm:$0xff] %vm50_vm1, %v4259_v28  ;;  %v4257_v8 = vpop.permute.xlu1 %4256 }
 0xfa3   :  { %4266 = vst.msk [vmem:[#allocation2 + $0x10] sm:$0xff] %vm50_vm1, %v4257_v8 }
 0xfa4   :  { %v4269_v61 = vld [vmem:[#allocation2 + $0x8] sm:$0xff] }
 0xfa5   :  { %v4209_v20 = vpop.permute.xlu0 %4208  ;;  %v4268_v45 = vld [vmem:[#allocation2] sm:$0xff]  ;;  %v4300_v42 = vsel %vm89_vm2, %v4269_v61, 0 }
 0xfa6   :  { %v4221_v40 = vsel %vm863_vm3, %v4209_v20, 0.0  ;;  %v4207_v43 = vpop.permute.xlu1 %4206  ;;  %v4297_v31 = vsel %vm89_vm2, %v4268_v45, 0  ;;  %v9435_v2 = vand.u32 4294901760, %v4300_v42  ;;  %v9529_v61 = vld [vmem:[#allocation3] ss:$0 sm:$0xff] }
 0xfa7   :  { %v4218_v50 = vsel %vm863_vm3, %v4207_v43, 0.0  ;;  %4222 = vadd.xlane.f32.xlu0 %v4221_v40  ;;  %v9438_v62 = vand.u32 4294901760, %v4297_v31  ;;  %9993 = vst [vmem:[#allocation4_spill] sm:$0xff] %v9529_v61 }
 0xfa8   :  { %4219 = vadd.xlane.f32.xlu1 %v4218_v50  ;;  %v9441_v55 = vsub.f32 %v4300_v42, %v9435_v2 }
 0xfa9   :  { %v4213_v63 = vpop.permute.xlu0 %4212  ;;  %7784 = vmatprep.mubr.f32.mxu1 %v9438_v62  ;;  %v4271_v48 = vld [vmem:[#allocation2 + $0x18] sm:$0xff]  ;;  %v4379_v7 = vsub.f32 %v4297_v31, %v9438_v62 }
 0xfaa   :  { %v4227_v57 = vsel %vm863_vm3, %v4213_v63, 0.0  ;;  %v4211_v0 = vpop.permute.xlu1 %4210  ;;  %7785 = vmatmul.mubr.f32.vlgmr.msra.gmra.mxu1 %v9435_v2  ;;  %v4270_v51 = vld [vmem:[#allocation2 + $0x10] sm:$0xff]  ;;  %v4306_v13 = vsel %vm89_vm2, %v4271_v48, 0  ;;  %v4390_v9 = vand.u32 4294901760, %v9441_v55 }
 0xfab   :  { %v4224_v46 = vsel %vm863_vm3, %v4211_v0, 0.0  ;;  %7807 = vmatpush3.msra.mxu1 %v8372_v3  ;;  %v4303_v14 = vsel %vm89_vm2, %v4270_v51, 0  ;;  %v9452_v29 = vand.u32 4294901760, %v4306_v13  ;;  %v4380_v41 = vand.u32 4294901760, %v4379_v7 }
 0xfac   :  { %7808 = vmatprep.subr.mxu1 %v8374_v4  ;;  %4228 = vadd.xlane.f32.xlu1 %v4227_v57  ;;  %v9455_v44 = vand.u32 4294901760, %v4303_v14  ;;  %v4391_v53 = vsub.f32 %v9441_v55, %v4390_v9 }
 0xfad   :  { %4225 = vadd.xlane.f32.xlu0 %v4224_v46  ;;  %7809 = vmatpush3.msra.mxu1 %v8374_v4  ;;  %v4381_v36 = vsub.f32 %v4379_v7, %v4380_v41  ;;  %v4409_v18 = vsub.f32 %v4306_v13, %v9452_v29 }
 0xfae   :  { %7787 = vmatprep.mubr.f32.mxu1 %v9455_v44  ;;  %7810 = vmatprep.subr.mxu1 %v8376_v5  ;;  %v4392_v56 = vand.u32 4294901760, %v4391_v53  ;;  %v4399_v35 = vsub.f32 %v4303_v14, %v9455_v44 }
 0xfaf   :  { %7788 = vmatmul.mubr.f32.gmra.mxu1 %v9452_v29  ;;  %v4382_v58 = vand.u32 4294901760, %v4381_v36  ;;  %v4410_v39 = vand.u32 4294901760, %v4409_v18 }
 0xfb0   :  { %7811 = vmatpush3.msra.mxu1 %v8376_v5  ;;  %7816 = vmatprep.mubr.f32.mxu1 %v4380_v41  ;;  %v4400_v60 = vand.u32 4294901760, %v4399_v35 }
 0xfb1   :  { %7812 = vmatprep.subr.mxu1 %v8387_v10  ;;  %7768 = vmatprep.mubr.f32.mxu0 %v4382_v58  ;;  %v4411_v19 = vsub.f32 %v4409_v18, %v4410_v39 }
 0xfb2   :  { %7813 = vmatpush3.msra.mxu1 %v8387_v10  ;;  %7769 = vmatmul.mubr.f32.vlgmr.msra.gmra.mxu0 %v4392_v56  ;;  %v4401_v30 = vsub.f32 %v4399_v35, %v4400_v60 }
 0xfb3   :  { %7814 = vmatprep.subr.mxu1 %v8389_v11  ;;  %7791 = vmatpush3.msra.mxu0 %v8403_v15  ;;  %v4412_v28 = vand.u32 4294901760, %v4411_v19 }
 0xfb4   :  { %7815 = vmatpush3.msra.mxu1 %v8389_v11  ;;  %7792 = vmatprep.subr.mxu0 %v8406_v16  ;;  %v4402_v59 = vand.u32 4294901760, %v4401_v30 }
 0xfb5   :  { %7817 = vmatmul.mubr.f32.vlgmr.msra.gmra.mxu1 %v4390_v9  ;;  %7838 = vmatprep.subr.mxu1 %v8372_v3 }
 0xfb6   :  { %7793 = vmatpush3.msra.mxu0 %v8406_v16  ;;  %7819 = vmatprep.mubr.f32.mxu1 %v4400_v60 }
 0xfb7   :  { %7839 = vmatpush3.msra.mxu1 %v8372_v3  ;;  %7771 = vmatprep.mubr.f32.mxu0 %v4402_v59 }
 0xfb8   :  { %7794 = vmatprep.subr.mxu0 %v8409_v17  ;;  %7840 = vmatprep.subr.mxu1 %v8374_v4 }
 0xfb9   :  { %7772 = vmatmul.mubr.f32.gmra.mxu0 %v4412_v28  ;;  %7841 = vmatpush3.msra.mxu1 %v8374_v4 }
 0xfba   :  { %7795 = vmatpush3.msra.mxu0 %v8409_v17  ;;  %7800 = vmatprep.mubr.f32.mxu0 %v4379_v7 }
 0xfbb   :  { %7796 = vmatprep.subr.mxu0 %v8423_v21  ;;  %7820 = vmatmul.mubr.f32.gmra.mxu1 %v4410_v39 }
 0xfbc   :  { %7842 = vmatprep.subr.mxu1 %v8376_v5  ;;  %7797 = vmatpush3.msra.mxu0 %v8423_v21 }
 0xfbd   :  { %7843 = vmatpush3.msra.mxu1 %v8376_v5  ;;  %7848 = vmatprep.mubr.f32.mxu1 %v9438_v62 }
 0xfbe   :  { %7798 = vmatprep.subr.mxu0 %v8426_v22  ;;  %7844 = vmatprep.subr.mxu1 %v8387_v10 }
 0xfbf   :  { %7799 = vmatpush3.msra.mxu0 %v8426_v22  ;;  %7845 = vmatpush3.msra.mxu1 %v8387_v10 }
 0xfc0   :  { %7801 = vmatmul.mubr.f32.vlgmr.msra.gmra.mxu0 %v9441_v55  ;;  %7822 = vmatprep.subr.mxu0 %v8432_v23 }
 0xfc1   :  { %7846 = vmatprep.subr.mxu1 %v8389_v11  ;;  %7803 = vmatprep.mubr.f32.mxu0 %v4399_v35 }
 0xfc2   :  { %7823 = vmatpush3.msra.mxu0 %v8432_v23  ;;  %7847 = vmatpush3.msra.mxu1 %v8389_v11 }
 0xfc3   :  { %7824 = vmatprep.subr.mxu0 %v8436_v24  ;;  %7849 = vmatmul.mubr.f32.vlgmr.msra.gmra.mxu1 %v9435_v2 }
 0xfc4   :  { %7825 = vmatpush3.msra.mxu0 %v8436_v24  ;;  %7851 = vmatprep.mubr.f32.mxu1 %v9455_v44 }
 0xfc5   :  { %7804 = vmatmul.mubr.f32.gmra.mxu0 %v4409_v18  ;;  %7826 = vmatprep.subr.mxu0 %v8439_v25 }
 0xfc6   :  { %7827 = vmatpush3.msra.mxu0 %v8439_v25  ;;  %7832 = vmatprep.mubr.f32.mxu0 %v9438_v62 }
 0xfc7   :  { %7828 = vmatprep.subr.mxu0 %v8446_v27  ;;  %7852 = vmatmul.mubr.f32.gmra.mxu1 %v9452_v29 }
 0xfc8   :  { %7829 = vmatpush3.msra.mxu0 %v8446_v27  ;;  %7870 = vmatprep.subr.mxu1 %v8462_v33 }
 0xfc9   :  { %7830 = vmatprep.subr.mxu0 %v8459_v32  ;;  %7871 = vmatpush3.msra.mxu1 %v8462_v33 }
 0xfca   :  { %7831 = vmatpush3.msra.mxu0 %v8459_v32  ;;  %7872 = vmatprep.subr.mxu1 %v8464_v34 }
 0xfcb   :  { %7833 = vmatmul.mubr.f32.vlgmr.msra.gmra.mxu0 %v9435_v2  ;;  %7873 = vmatpush3.msra.mxu1 %v8464_v34 }
 0xfcc   :  { %7835 = vmatprep.mubr.f32.mxu0 %v9455_v44  ;;  %7874 = vmatprep.subr.mxu1 %v8471_v37 }
 0xfcd   :  { %7875 = vmatpush3.msra.mxu1 %v8471_v37  ;;  %7854 = vmatprep.subr.mxu0 %v8372_v3 }
 0xfce   :  { %7876 = vmatprep.subr.mxu1 %v8485_v47  ;;  %7855 = vmatpush3.msra.mxu0 %v8372_v3 }
 0xfcf   :  { %7836 = vmatmul.mubr.f32.gmra.mxu0 %v9452_v29  ;;  %7877 = vmatpush3.msra.mxu1 %v8485_v47 }
 0xfd0   :  { %7878 = vmatprep.subr.mxu1 %v9987_v26  ;;  %7856 = vmatprep.subr.mxu0 %v8374_v4 }
 0xfd1   :  { %7879 = vmatpush3.msra.mxu1 %v9987_v26  ;;  %7857 = vmatpush3.msra.mxu0 %v8374_v4 }
 0xfd2   :  { %7902 = vmatprep.subr.mxu1 %v8372_v3  ;;  %7858 = vmatprep.subr.mxu0 %v8376_v5 }
 0xfd3   :  { %7859 = vmatpush3.msra.mxu0 %v8376_v5 }
 0xfd4   :  { %7860 = vmatprep.subr.mxu0 %v8387_v10 }
 0xfd5   :  { %7861 = vmatpush3.msra.mxu0 %v8387_v10 }
 0xfd6   :  { %7862 = vmatprep.subr.mxu0 %v8389_v11 }
 0xfd7   :  { %7863 = vmatpush3.msra.mxu0 %v8389_v11 }
 0xfd8   :  { %7886 = vmatprep.subr.mxu0 %v8403_v15 }
0x1030   :  { %v4223_v8 = vpop.xlane.xlu0 %4222 }
0x1031   :  { %v4231_v20 = vadd.f32 %v9529_v61, %v4223_v8  ;;  %v4220_v45 = vpop.xlane.xlu1 %4219 }
0x1032   :  { %v4230_v42 = vadd.f32 %v9529_v61, %v4220_v45 }
0x1033   :  { %6807 = vst.msk [vmem:[%s9974_s7 + $0x88] sm:$0xff] %vm886_vm4, %v4231_v20  ;;  %4279 = vperm.xlu1 %8052, %v4231_v20  }
0x1034   :  { %6806 = vst.msk [vmem:[%s9974_s7 + $0x80] sm:$0xff] %vm886_vm4, %v4230_v42  ;;  %4274 = vperm.xlu0 %8051, %v4230_v42  }
0x1035   :  { %v4229_v40 = vpop.xlane.xlu1 %4228 }
0x1036   :  { %v4226_v43 = vpop.xlane.xlu0 %4225  ;;  %v4233_v31 = vadd.f32 %v9529_v61, %v4229_v40 }
0x1037   :  { %v4232_v2 = vadd.f32 %v9529_v61, %v4226_v43 }
0x1038   :  { %6809 = vst.msk [vmem:[%s9974_s7 + $0x98] sm:$0xff] %vm886_vm4, %v4233_v31  ;;  %4289 = vperm.xlu0 %8051, %v4233_v31  }
0x1039   :  { %6808 = vst.msk [vmem:[%s9974_s7 + $0x90] sm:$0xff] %vm886_vm4, %v4232_v2  ;;  %4284 = vperm.xlu1 %8052, %v4232_v2  }
0x106a   :  { %v7786_v62 = vpop.f32.mrf.mxu1 }
0x106c   :  { %v4510_v63 = vpop.f32.mrf.mxu1 }
0x106f   :  { %v7789_v7 = vpop.f32.mrf.mxu1 }
0x1071   :  { %v4522_v0 = vpop.f32.mrf.mxu1 }
0x1072   :  { %v7770_v50 = vpop.f32.mrf.mxu0 }
0x1074   :  { %v4384_v55 = vpop.f32.mrf.mxu0 }
0x1075   :  { %v7818_v13 = vpop.f32.mrf.mxu1 }
0x1077   :  { %v4709_v46 = vpop.f32.mrf.mxu1 }
0x1079   :  { %v7773_v48 = vpop.f32.mrf.mxu0 }
0x107b   :  { %v4404_v57 = vpop.f32.mrf.mxu0  ;;  %v7821_v29 = vpop.f32.mrf.mxu1 }
0x107d   :  { %v4725_v35 = vpop.f32.mrf.mxu1 }
0x1080   :  { %v7802_v51 = vpop.f32.mrf.mxu0 }
0x1082   :  { %v4610_v9 = vpop.f32.mrf.mxu0 }
0x1083   :  { %v7850_v30 = vpop.f32.mrf.mxu1 }
0x1085   :  { %v7805_v14 = vpop.f32.mrf.mxu0 }
0x1087   :  { %v4624_v36 = vpop.f32.mrf.mxu0 }
0x108b   :  { %v7834_v58 = vpop.f32.mrf.mxu0 }
0x108d   :  { %v4819_v42 = vpop.f32.mrf.mxu0 }
0x10ae   :  { %v4280_v41 = vpop.permute.xlu1 %4279 }
0x10af   :  { %v4275_v44 = vpop.permute.xlu0 %4274  ;;  %v4293_v53 = vmul.f32 %v9357_v49, %v4280_v41  ;;  %v4913_v41 = vpop.f32.mrf.mxu1 }
0x10b0   :  { %v4292_v18 = vmul.f32 %v9357_v49, %v4275_v44 }
0x10b1   :  { %v4395_v56 = vadd.f32 %v7770_v50, %v4293_v53 }
0x10b2   :  { %v4385_v39 = vadd.f32 %v4384_v55, %v4292_v18 }
0x10b3   :  { %v4517_v60 = vadd.f32 %v7786_v62, %v4395_v56  ;;  %v4290_v19 = vpop.permute.xlu0 %4289  ;;  %v7837_v62 = vpop.f32.mrf.mxu0 }
0x10b4   :  { %v4511_v59 = vadd.f32 %v4510_v63, %v4385_v39  ;;  %v4295_v28 = vmul.f32 %v9357_v49, %v4290_v19  ;;  %v4285_v8 = vpop.permute.xlu1 %4284  ;;  %v7853_v19 = vpop.f32.mrf.mxu1 }
0x10b5   :  { %v4618_v20 = vadd.f32 %v7802_v51, %v4517_v60  ;;  %v4294_v45 = vmul.f32 %v9357_v49, %v4285_v8 }
0x10b6   :  { %v4611_v40 = vadd.f32 %v4610_v9, %v4511_v59  ;;  %v4415_v43 = vadd.f32 %v7773_v48, %v4295_v28  ;;  %v4831_v9 = vpop.f32.mrf.mxu0 }
0x10b7   :  { %v4718_v31 = vadd.f32 %v7818_v13, %v4618_v20  ;;  %v4405_v2 = vadd.f32 %v4404_v57, %v4294_v45 }
0x10b8   :  { %v4710_v50 = vadd.f32 %v4709_v46, %v4611_v40  ;;  %v4529_v44 = vadd.f32 %v7789_v7, %v4415_v43  ;;  %v4925_v7 = vpop.f32.mrf.mxu1 }
0x10b9   :  { %v4826_v53 = vadd.f32 %v7834_v58, %v4718_v31  ;;  %v4523_v55 = vadd.f32 %v4522_v0, %v4405_v2 }
0x10ba   :  { %v4820_v18 = vadd.f32 %v4819_v42, %v4710_v50  ;;  %v4632_v56 = vadd.f32 %v7805_v14, %v4529_v44 }
0x10bb   :  { %v4920_v63 = vadd.f32 %v7850_v30, %v4826_v53  ;;  %v4625_v39 = vadd.f32 %v4624_v36, %v4523_v55 }
0x10bc   :  { %v4914_v61 = vadd.f32 %v4913_v41, %v4820_v18  ;;  %v4734_v51 = vadd.f32 %v7821_v29, %v4632_v56 }
0x10bd   :  { %v4936_v49 = vadd.f32 %v9366_v52, %v4920_v63  ;;  %v4726_v60 = vadd.f32 %v4725_v35, %v4625_v39 }
0x10be   :  { %v4935_v48 = vadd.f32 %v9366_v52, %v4914_v61  ;;  %v4838_v57 = vadd.f32 %v7837_v62, %v4734_v51 }
0x10bf   :  { %8213 = vtanh.f32 %v4936_v49  ;;  %v4832_v13 = vadd.f32 %v4831_v9, %v4726_v60  ;;  %v6815_v30 = vmul.f32 -1.442695, %v4936_v49 }
0x10c0   :  { %8215 = vtanh.f32 %v4935_v48  ;;  %v4932_v0 = vadd.f32 %v7853_v19, %v4838_v57  ;;  %v6814_v59 = vmul.f32 -1.442695, %v4935_v48 }
0x10c1   :  { %v4926_v46 = vadd.f32 %v4925_v7, %v4832_v13 }
0x10c2   :  { %v4938_v14 = vadd.f32 %v9366_v52, %v4932_v0 }
0x10c3   :  { %v4937_v36 = vadd.f32 %v9366_v52, %v4926_v46 }
0x10c4   :  { %8217 = vtanh.f32 %v4938_v14  ;;  %v6817_v28 = vmul.f32 -1.442695, %v4938_v14 }
0x10c5   :  { %8219 = vtanh.f32 %v4937_v36  ;;  %v6816_v52 = vmul.f32 -1.442695, %v4937_v36 }
0x10c6   :  { %8221 = vpow2.f32 %v6815_v30  ;;  %v6824_v30 = vld [vmem:[%s9968_s1 + $0xd0] sm:$0xff] }
0x10c7   :  { %8223 = vpow2.f32 %v6814_v59  ;;  %5083 = vst.msk [vmem:[#allocation2 + $0x10] sm:$0xff] %vm45_vm0, %v6824_v30 }
0x10c8   :  { %8225 = vpow2.f32 %v6817_v28 }
0x10c9   :  { %8227 = vpow2.f32 %v6816_v52 }
0x10cc   :  { %v8214_v29 = vpop.eup %8213 }
0x10cd   :  { %v8216_v58 = vpop.eup %8215  ;;  %4977 = vrot.lane.b32.xlu0 %v8214_v29, %s8320_s29 }
0x10ce   :  { %4975 = vrot.lane.b32.xlu1 %v8216_v58, %s8320_s29 }
0x10d1   :  { %v8218_v61 = vpop.eup %8217 }
0x10d2   :  { %v8220_v35 = vpop.eup %8219  ;;  %4981 = vrot.lane.b32.xlu0 %v8218_v61, %s8320_s29  ;;  %v6822_v61 = vld [vmem:[%s9968_s1 + $0xc0] sm:$0xff] }
0x10d3   :  { %4979 = vrot.lane.b32.xlu1 %v8220_v35, %s8320_s29  ;;  %v8222_v8 = vpop.eup %8221  ;;  %5081 = vst.msk [vmem:[#allocation2] sm:$0xff] %vm45_vm0, %v6822_v61  ;;  %v6825_v35 = vld [vmem:[%s9968_s1 + $0xd8] sm:$0xff] }
0x10d4   :  { %v8224_v20 = vpop.eup %8223  ;;  %v4952_v45 = vadd.f32 1.0, %v8222_v8  ;;  %5084 = vst.msk [vmem:[#allocation2 + $0x18] sm:$0xff] %vm45_vm0, %v6825_v35 }
0x10d5   :  { %v4951_v42 = vadd.f32 1.0, %v8224_v20  ;;  %v8226_v40 = vpop.eup %8225 }
0x10d6   :  { %v8228_v43 = vpop.eup %8227  ;;  %8229 = vrcp.f32 %v4952_v45  ;;  %v4954_v31 = vadd.f32 1.0, %v8226_v40 }
0x10d7   :  { %8231 = vrcp.f32 %v4951_v42  ;;  %v4953_v2 = vadd.f32 1.0, %v8228_v43 }
0x10d8   :  { %8233 = vrcp.f32 %v4954_v31 }
0x10d9   :  { %8235 = vrcp.f32 %v4953_v2 }
0x10e3   :  { %v8230_v41 = vpop.eup %8229 }
0x10e4   :  { %v8232_v44 = vpop.eup %8231  ;;  %v4968_v49 = vmul.f32 %v8230_v41, %v9382_v38 }
0x10e5   :  { %v8234_v18 = vpop.eup %8233  ;;  %v4967_v9 = vmul.f32 %v8232_v44, %v9384_v54 }
0x10e6   :  { %v8236_v63 = vpop.eup %8235  ;;  %v4970_v7 = vmul.f32 %v8234_v18, %v9390_v6  ;;  %v6823_v6 = vld [vmem:[%s9968_s1 + $0xc8] sm:$0xff] }
0x10e7   :  { %v4969_v46 = vmul.f32 %v8236_v63, %v9392_v12  ;;  %5082 = vst.msk [vmem:[#allocation2 + $0x8] sm:$0xff] %vm45_vm0, %v6823_v6 }
0x113f   :  { %v4978_v50 = vpop.permute.xlu0 %4977 }
0x1140   :  { %v4988_v53 = vmul.f32 %v8230_v41, %v4978_v50  ;;  %v4976_v55 = vpop.permute.xlu1 %4975 }
0x1141   :  { %v4987_v62 = vmul.f32 %v8232_v44, %v4976_v55 }
0x1142   :  { %4997 = vrot.lane.b32.xlu0 %v4988_v53, %s8320_s29 }
0x1143   :  { %4995 = vrot.lane.b32.xlu1 %v4987_v62, %s8320_s29 }
0x1144   :  { %v4982_v56 = vpop.permute.xlu0 %4981 }
0x1145   :  { %v4990_v39 = vmul.f32 %v8234_v18, %v4982_v56  ;;  %v4980_v19 = vpop.permute.xlu1 %4979 }
0x1146   :  { %v4989_v51 = vmul.f32 %v8236_v63, %v4980_v19 }
0x1147   :  { %5001 = vrot.lane.b32.xlu0 %v4990_v39, %s8320_s29 }
0x1148   :  { %4999 = vrot.lane.b32.xlu1 %v4989_v51, %s8320_s29 }
0x11b4   :  { %v4998_v60 = vpop.permute.xlu0 %4997 }
0x11b5   :  { %v9569_v48 = vadd.f32 %v4998_v60, %v4968_v49  ;;  %v4996_v57 = vpop.permute.xlu1 %4995 }
0x11b6   :  { %v9571_v13 = vadd.f32 %v4996_v57, %v4967_v9 }
0x11b7   :  { %8237 = vtanh.f32 %v9569_v48 }
0x11b8   :  { %8239 = vtanh.f32 %v9571_v13 }
0x11b9   :  { %v5002_v0 = vpop.permute.xlu0 %5001 }
0x11ba   :  { %v9577_v14 = vadd.f32 %v5002_v0, %v4970_v7  ;;  %v5000_v38 = vpop.permute.xlu1 %4999 }
0x11bb   :  { %v9579_v36 = vadd.f32 %v5000_v38, %v4969_v46 }
0x11bc   :  { %8241 = vtanh.f32 %v9577_v14 }
0x11bd   :  { %8243 = vtanh.f32 %v9579_v36 }
0x11c4   :  { %v8238_v54 = vpop.eup %8237 }
0x11c5   :  { %v8240_v29 = vpop.eup %8239  ;;  %5021 = vrot.lane.b32.xlu0 %v8238_v54, %s8320_s29 }
0x11c6   :  { %5019 = vrot.lane.b32.xlu1 %v8240_v29, %s8320_s29 }
0x11c9   :  { %v8242_v12 = vpop.eup %8241 }
0x11ca   :  { %v8244_v58 = vpop.eup %8243  ;;  %5025 = vrot.lane.b32.xlu0 %v8242_v12, %s8320_s29 }
0x11cb   :  { %5023 = vrot.lane.b32.xlu1 %v8244_v58, %s8320_s29 }
0x1237   :  { %v5022_v59 = vpop.permute.xlu0 %5021 }
0x1238   :  { %v5032_v28 = vmul.f32 %v8230_v41, %v5022_v59  ;;  %v5020_v52 = vpop.permute.xlu1 %5019 }
0x1239   :  { %v5031_v8 = vmul.f32 %v8232_v44, %v5020_v52 }
0x123a   :  { %5091 = vrot.lane.b32.xlu0 %v5032_v28, %s8321_s15  ;;  %v5036_v43 = vmul.f32 %v5032_v28, %v8658_v1 }
0x123b   :  { %5089 = vrot.lane.b32.xlu1 %v5031_v8, %s8321_s15  ;;  %v5035_v31 = vmul.f32 %v5031_v8, %v8658_v1 }
0x123c   :  { %v5026_v20 = vpop.permute.xlu0 %5025 }
0x123d   :  { %v5034_v45 = vmul.f32 %v8234_v18, %v5026_v20  ;;  %v5024_v42 = vpop.permute.xlu1 %5023 }
0x123e   :  { %v5033_v40 = vmul.f32 %v8236_v63, %v5024_v42 }
0x123f   :  { %5095 = vrot.lane.b32.xlu0 %v5034_v45, %s8321_s15  ;;  %v5038_v2 = vmul.f32 %v5034_v45, %v8658_v1 }
0x1240   :  { %5093 = vrot.lane.b32.xlu1 %v5033_v40, %s8321_s15  ;;  %v5037_v41 = vmul.f32 %v5033_v40, %v8658_v1 }
0x1243   :  { %5045 = vrot.lane.b32.xlu0 %v5036_v43, %s8322_s17 }
0x1244   :  { %5043 = vrot.lane.b32.xlu1 %v5035_v31, %s8322_s17 }
0x1247   :  { %5049 = vrot.lane.b32.xlu0 %v5038_v2, %s8322_s17 }
0x1248   :  { %5047 = vrot.lane.b32.xlu1 %v5037_v41, %s8322_s17 }
0x12ac   :  { %v5092_v50 = vpop.permute.xlu0 %5091 }
0x12ad   :  { %5102 = vst.msk [vmem:[#allocation2 + $0x8] sm:$0xff] %vm50_vm1, %v5092_v50  ;;  %v5090_v44 = vpop.permute.xlu1 %5089 }
0x12ae   :  { %5101 = vst.msk [vmem:[#allocation2] sm:$0xff] %vm50_vm1, %v5090_v44 }
0x12b1   :  { %v5096_v53 = vpop.permute.xlu0 %5095 }
0x12b2   :  { %5104 = vst.msk [vmem:[#allocation2 + $0x18] sm:$0xff] %vm50_vm1, %v5096_v53  ;;  %v5094_v55 = vpop.permute.xlu1 %5093 }
0x12b3   :  { %5103 = vst.msk [vmem:[#allocation2 + $0x10] sm:$0xff] %vm50_vm1, %v5094_v55 }
0x12b4   :  { %v5106_v62 = vld [vmem:[#allocation2 + $0x8] sm:$0xff] }
0x12b5   :  { %v5046_v18 = vpop.permute.xlu0 %5045  ;;  %v5105_v56 = vld [vmem:[#allocation2] sm:$0xff]  ;;  %v5137_v63 = vsel %vm89_vm2, %v5106_v62, 0 }
0x12b6   :  { %v5058_v39 = vsel %vm863_vm3, %v5046_v18, 0.0  ;;  %v5044_v19 = vpop.permute.xlu1 %5043  ;;  %v5134_v51 = vsel %vm89_vm2, %v5105_v56, 0  ;;  %v9622_v49 = vand.u32 4294901760, %v5137_v63 }
0x12b7   :  { %v5055_v60 = vsel %vm863_vm3, %v5044_v19, 0.0  ;;  %5059 = vadd.xlane.f32.xlu0 %v5058_v39  ;;  %v9625_v9 = vand.u32 4294901760, %v5134_v51 }
0x12b8   :  { %5056 = vadd.xlane.f32.xlu1 %v5055_v60  ;;  %v9628_v57 = vsub.f32 %v5137_v63, %v9622_v49 }
0x12b9   :  { %v5050_v7 = vpop.permute.xlu0 %5049  ;;  %7880 = vmatprep.mubr.f32.mxu1 %v9625_v9  ;;  %v5108_v0 = vld [vmem:[#allocation2 + $0x18] sm:$0xff]  ;;  %v5216_v46 = vsub.f32 %v5134_v51, %v9625_v9 }
0x12ba   :  { %v5064_v38 = vsel %vm863_vm3, %v5050_v7, 0.0  ;;  %v5048_v54 = vpop.permute.xlu1 %5047  ;;  %7881 = vmatmul.mubr.f32.vlgmr.msra.gmra.mxu1 %v9622_v49  ;;  %v5107_v29 = vld [vmem:[#allocation2 + $0x10] sm:$0xff]  ;;  %v5143_v6 = vsel %vm89_vm2, %v5108_v0, 0  ;;  %v5227_v12 = vand.u32 4294901760, %v9628_v57 }
0x12bb   :  { %v5061_v58 = vsel %vm863_vm3, %v5048_v54, 0.0  ;;  %7903 = vmatpush3.msra.mxu1 %v8372_v3  ;;  %v5140_v61 = vsel %vm89_vm2, %v5107_v29, 0  ;;  %v9639_v35 = vand.u32 4294901760, %v5143_v6  ;;  %v5217_v30 = vand.u32 4294901760, %v5216_v46 }
0x12bc   :  { %7904 = vmatprep.subr.mxu1 %v8374_v4  ;;  %5065 = vadd.xlane.f32.xlu1 %v5064_v38  ;;  %v9642_v59 = vand.u32 4294901760, %v5140_v61  ;;  %v5228_v28 = vsub.f32 %v9628_v57, %v5227_v12 }
0x12bd   :  { %5062 = vadd.xlane.f32.xlu0 %v5061_v58  ;;  %7905 = vmatpush3.msra.mxu1 %v8374_v4  ;;  %v5218_v52 = vsub.f32 %v5216_v46, %v5217_v30  ;;  %v5246_v8 = vsub.f32 %v5143_v6, %v9639_v35  ;;  %v9739_v6 = vld [vmem:[%s9970_s2] ss:$0 sm:$0xff] }
0x12be   :  { %7883 = vmatprep.mubr.f32.mxu1 %v9642_v59  ;;  %7906 = vmatprep.subr.mxu1 %v8376_v5  ;;  %v5229_v20 = vand.u32 4294901760, %v5228_v28  ;;  %v5236_v45 = vsub.f32 %v5140_v61, %v9642_v59 }
0x12bf   :  { %7884 = vmatmul.mubr.f32.gmra.mxu1 %v9639_v35  ;;  %v5219_v42 = vand.u32 4294901760, %v5218_v52  ;;  %v5247_v40 = vand.u32 4294901760, %v5246_v8 }
0x12c0   :  { %7907 = vmatpush3.msra.mxu1 %v8376_v5  ;;  %7912 = vmatprep.mubr.f32.mxu1 %v5217_v30  ;;  %v5237_v43 = vand.u32 4294901760, %v5236_v45 }
0x12c1   :  { %7908 = vmatprep.subr.mxu1 %v8387_v10  ;;  %7864 = vmatprep.mubr.f32.mxu0 %v5219_v42  ;;  %v5248_v31 = vsub.f32 %v5246_v8, %v5247_v40 }
0x12c2   :  { %7909 = vmatpush3.msra.mxu1 %v8387_v10  ;;  %7865 = vmatmul.mubr.f32.vlgmr.msra.gmra.mxu0 %v5229_v20  ;;  %v5238_v2 = vsub.f32 %v5236_v45, %v5237_v43 }
0x12c3   :  { %7910 = vmatprep.subr.mxu1 %v8389_v11  ;;  %7887 = vmatpush3.msra.mxu0 %v8403_v15  ;;  %v5249_v50 = vand.u32 4294901760, %v5248_v31 }
0x12c4   :  { %7911 = vmatpush3.msra.mxu1 %v8389_v11  ;;  %7888 = vmatprep.subr.mxu0 %v8406_v16  ;;  %v5239_v41 = vand.u32 4294901760, %v5238_v2 }
0x12c5   :  { %7913 = vmatmul.mubr.f32.vlgmr.msra.gmra.mxu1 %v5227_v12  ;;  %7934 = vmatprep.subr.mxu1 %v8372_v3 }
0x12c6   :  { %7889 = vmatpush3.msra.mxu0 %v8406_v16  ;;  %7915 = vmatprep.mubr.f32.mxu1 %v5237_v43 }
0x12c7   :  { %7935 = vmatpush3.msra.mxu1 %v8372_v3  ;;  %7867 = vmatprep.mubr.f32.mxu0 %v5239_v41 }
0x12c8   :  { %7890 = vmatprep.subr.mxu0 %v8409_v17  ;;  %7936 = vmatprep.subr.mxu1 %v8374_v4 }
0x12c9   :  { %7868 = vmatmul.mubr.f32.gmra.mxu0 %v5249_v50  ;;  %7937 = vmatpush3.msra.mxu1 %v8374_v4 }
0x12ca   :  { %7891 = vmatpush3.msra.mxu0 %v8409_v17  ;;  %7896 = vmatprep.mubr.f32.mxu0 %v5216_v46 }
0x12cb   :  { %7892 = vmatprep.subr.mxu0 %v8423_v21  ;;  %7916 = vmatmul.mubr.f32.gmra.mxu1 %v5247_v40 }
0x12cc   :  { %7938 = vmatprep.subr.mxu1 %v8376_v5  ;;  %7893 = vmatpush3.msra.mxu0 %v8423_v21 }
0x12cd   :  { %7939 = vmatpush3.msra.mxu1 %v8376_v5  ;;  %7944 = vmatprep.mubr.f32.mxu1 %v9625_v9 }
0x12ce   :  { %7894 = vmatprep.subr.mxu0 %v8426_v22  ;;  %7940 = vmatprep.subr.mxu1 %v8387_v10 }
0x12cf   :  { %7895 = vmatpush3.msra.mxu0 %v8426_v22  ;;  %7941 = vmatpush3.msra.mxu1 %v8387_v10 }
0x12d0   :  { %7897 = vmatmul.mubr.f32.vlgmr.msra.gmra.mxu0 %v9628_v57  ;;  %7918 = vmatprep.subr.mxu0 %v8432_v23 }
0x12d1   :  { %7942 = vmatprep.subr.mxu1 %v8389_v11  ;;  %7899 = vmatprep.mubr.f32.mxu0 %v5236_v45 }
0x12d2   :  { %7919 = vmatpush3.msra.mxu0 %v8432_v23  ;;  %7943 = vmatpush3.msra.mxu1 %v8389_v11 }
0x12d3   :  { %7920 = vmatprep.subr.mxu0 %v8436_v24  ;;  %7945 = vmatmul.mubr.f32.vlgmr.msra.gmra.mxu1 %v9622_v49 }
0x12d4   :  { %7921 = vmatpush3.msra.mxu0 %v8436_v24  ;;  %7947 = vmatprep.mubr.f32.mxu1 %v9642_v59 }
0x12d5   :  { %7900 = vmatmul.mubr.f32.gmra.mxu0 %v5246_v8  ;;  %7922 = vmatprep.subr.mxu0 %v8439_v25 }
0x12d6   :  { %7923 = vmatpush3.msra.mxu0 %v8439_v25  ;;  %7928 = vmatprep.mubr.f32.mxu0 %v9625_v9 }
0x12d7   :  { %7924 = vmatprep.subr.mxu0 %v8446_v27  ;;  %7948 = vmatmul.mubr.f32.gmra.mxu1 %v9639_v35 }
0x12d8   :  { %7925 = vmatpush3.msra.mxu0 %v8446_v27  ;;  %7966 = vmatprep.subr.mxu1 %v8462_v33 }
0x12d9   :  { %7926 = vmatprep.subr.mxu0 %v8459_v32  ;;  %7967 = vmatpush3.msra.mxu1 %v8462_v33 }
0x12da   :  { %7927 = vmatpush3.msra.mxu0 %v8459_v32  ;;  %7968 = vmatprep.subr.mxu1 %v8464_v34 }
0x12db   :  { %7929 = vmatmul.mubr.f32.vlgmr.msra.gmra.mxu0 %v9622_v49  ;;  %7969 = vmatpush3.msra.mxu1 %v8464_v34  ;;  %v9994_v34 = vld [vmem:[#allocation4_spill] sm:$0xff] }
0x12dc   :  { %7931 = vmatprep.mubr.f32.mxu0 %v9642_v59  ;;  %7970 = vmatprep.subr.mxu1 %v8471_v37 }
0x12dd   :  { %7971 = vmatpush3.msra.mxu1 %v8471_v37  ;;  %7950 = vmatprep.subr.mxu0 %v8372_v3 }
0x12de   :  { %7972 = vmatprep.subr.mxu1 %v8485_v47  ;;  %7951 = vmatpush3.msra.mxu0 %v8372_v3 }
0x12df   :  { %7932 = vmatmul.mubr.f32.gmra.mxu0 %v9639_v35  ;;  %7973 = vmatpush3.msra.mxu1 %v8485_v47 }
0x12e0   :  { %7974 = vmatprep.subr.mxu1 %v9987_v26  ;;  %7952 = vmatprep.subr.mxu0 %v8374_v4 }
0x12e1   :  { %7975 = vmatpush3.msra.mxu1 %v9987_v26  ;;  %7953 = vmatpush3.msra.mxu0 %v8374_v4 }
0x12e2   :  { %7998 = vmatprep.subr.mxu1 %v8372_v3  ;;  %7954 = vmatprep.subr.mxu0 %v8376_v5 }
0x12e3   :  { %7955 = vmatpush3.msra.mxu0 %v8376_v5 }
0x12e4   :  { %7956 = vmatprep.subr.mxu0 %v8387_v10 }
0x12e5   :  { %7957 = vmatpush3.msra.mxu0 %v8387_v10 }
0x12e6   :  { %7958 = vmatprep.subr.mxu0 %v8389_v11 }
0x12e7   :  { %7959 = vmatpush3.msra.mxu0 %v8389_v11 }
0x12e8   :  { %7982 = vmatprep.subr.mxu0 %v8403_v15 }
0x1340   :  { %v5060_v33 = vpop.xlane.xlu0 %5059 }
0x1341   :  { %v5068_v37 = vadd.f32 %v9994_v34, %v5060_v33  ;;  %v5057_v47 = vpop.xlane.xlu1 %5056 }
0x1342   :  { %v5067_v26 = vadd.f32 %v9994_v34, %v5057_v47 }
0x1343   :  { %6819 = vst.msk [vmem:[%s9974_s7 + $0xa8] sm:$0xff] %vm886_vm4, %v5068_v37  ;;  %5116 = vperm.xlu1 %8052, %v5068_v37  }
0x1344   :  { %6818 = vst.msk [vmem:[%s9974_s7 + $0xa0] sm:$0xff] %vm886_vm4, %v5067_v26  ;;  %5111 = vperm.xlu0 %8051, %v5067_v26  }
0x1345   :  { %v5066_v44 = vpop.xlane.xlu1 %5065 }
0x1346   :  { %v5063_v53 = vpop.xlane.xlu0 %5062  ;;  %v5070_v55 = vadd.f32 %v9994_v34, %v5066_v44 }
0x1347   :  { %v5069_v62 = vadd.f32 %v9994_v34, %v5063_v53 }
0x1348   :  { %6821 = vst.msk [vmem:[%s9974_s7 + $0xb8] sm:$0xff] %vm886_vm4, %v5070_v55  ;;  %5126 = vperm.xlu0 %8051, %v5070_v55  }
0x1349   :  { %6820 = vst.msk [vmem:[%s9974_s7 + $0xb0] sm:$0xff] %vm886_vm4, %v5069_v62  ;;  %5121 = vperm.xlu1 %8052, %v5069_v62  }
0x137a   :  { %v7882_v56 = vpop.f32.mrf.mxu1 }
0x137c   :  { %v5347_v39 = vpop.f32.mrf.mxu1 }
0x137f   :  { %v7885_v51 = vpop.f32.mrf.mxu1 }
0x1381   :  { %v5359_v60 = vpop.f32.mrf.mxu1 }
0x1382   :  { %v7866_v18 = vpop.f32.mrf.mxu0 }
0x1384   :  { %v5221_v63 = vpop.f32.mrf.mxu0 }
0x1385   :  { %v7914_v57 = vpop.f32.mrf.mxu1 }
0x1387   :  { %v5546_v0 = vpop.f32.mrf.mxu1 }
0x1389   :  { %v7869_v19 = vpop.f32.mrf.mxu0 }
0x138b   :  { %v5241_v49 = vpop.f32.mrf.mxu0  ;;  %v7917_v38 = vpop.f32.mrf.mxu1 }
0x138d   :  { %v5562_v30 = vpop.f32.mrf.mxu1 }
0x1390   :  { %v7898_v9 = vpop.f32.mrf.mxu0 }
0x1392   :  { %v5447_v7 = vpop.f32.mrf.mxu0 }
0x1393   :  { %v7946_v20 = vpop.f32.mrf.mxu1 }
0x1395   :  { %v7901_v46 = vpop.f32.mrf.mxu0  ;;  %v5750_v37 = vpop.f32.mrf.mxu1 }
0x1397   :  { %v5461_v58 = vpop.f32.mrf.mxu0 }
0x139b   :  { %v7930_v59 = vpop.f32.mrf.mxu0 }
0x139d   :  { %v5656_v2 = vpop.f32.mrf.mxu0 }
0x139f   :  { %v7933_v55 = vpop.f32.mrf.mxu0 }
0x13be   :  { %v5117_v54 = vpop.permute.xlu1 %5116 }
0x13bf   :  { %v5112_v29 = vpop.permute.xlu0 %5111  ;;  %v5130_v12 = vmul.f32 %v9739_v6, %v5117_v54 }
0x13c0   :  { %v5129_v61 = vmul.f32 %v9739_v6, %v5112_v29 }
0x13c1   :  { %v5232_v35 = vadd.f32 %v7866_v18, %v5130_v12 }
0x13c2   :  { %v5222_v28 = vadd.f32 %v5221_v63, %v5129_v61 }
0x13c3   :  { %v5354_v52 = vadd.f32 %v7882_v56, %v5232_v35  ;;  %v5127_v8 = vpop.permute.xlu0 %5126 }
0x13c4   :  { %v5348_v45 = vadd.f32 %v5347_v39, %v5222_v28  ;;  %v5132_v42 = vmul.f32 %v9739_v6, %v5127_v8  ;;  %v5122_v40 = vpop.permute.xlu1 %5121  ;;  %v7949_v39 = vpop.f32.mrf.mxu1 }
0x13c5   :  { %v5455_v43 = vadd.f32 %v7898_v9, %v5354_v52  ;;  %v5131_v31 = vmul.f32 %v9739_v6, %v5122_v40 }
0x13c6   :  { %v5448_v41 = vadd.f32 %v5447_v7, %v5348_v45  ;;  %v5252_v50 = vadd.f32 %v7869_v19, %v5132_v42  ;;  %v9748_v7 = vld [vmem:[%s9971_s4] ss:$0 sm:$0xff] }
0x13c7   :  { %v5555_v33 = vadd.f32 %v7914_v57, %v5455_v43  ;;  %v5242_v34 = vadd.f32 %v5241_v49, %v5131_v31  ;;  %v5668_v57 = vpop.f32.mrf.mxu0 }
0x13c8   :  { %v5547_v47 = vadd.f32 %v5546_v0, %v5448_v41  ;;  %v5366_v26 = vadd.f32 %v7885_v51, %v5252_v50 }
0x13c9   :  { %v5663_v44 = vadd.f32 %v7930_v59, %v5555_v33  ;;  %v5360_v53 = vadd.f32 %v5359_v60, %v5242_v34 }
0x13ca   :  { %v5657_v62 = vadd.f32 %v5656_v2, %v5547_v47  ;;  %v5469_v18 = vadd.f32 %v7901_v46, %v5366_v26  ;;  %v5762_v46 = vpop.f32.mrf.mxu1 }
0x13cb   :  { %v5757_v56 = vadd.f32 %v7946_v20, %v5663_v44  ;;  %v5462_v63 = vadd.f32 %v5461_v58, %v5360_v53 }
0x13cc   :  { %v5751_v54 = vadd.f32 %v5750_v37, %v5657_v62  ;;  %v5571_v9 = vadd.f32 %v7917_v38, %v5469_v18 }
0x13cd   :  { %v5773_v19 = vadd.f32 %v9748_v7, %v5757_v56  ;;  %v5563_v49 = vadd.f32 %v5562_v30, %v5462_v63 }
0x13ce   :  { %v5772_v51 = vadd.f32 %v9748_v7, %v5751_v54  ;;  %v5675_v60 = vadd.f32 %v7933_v55, %v5571_v9 }
0x13cf   :  { %8245 = vtanh.f32 %v5773_v19  ;;  %v5669_v0 = vadd.f32 %v5668_v57, %v5563_v49  ;;  %v6827_v28 = vmul.f32 -1.442695, %v5773_v19 }
0x13d0   :  { %8247 = vtanh.f32 %v5772_v51  ;;  %v5769_v29 = vadd.f32 %v7949_v39, %v5675_v60  ;;  %v6826_v52 = vmul.f32 -1.442695, %v5772_v51 }
0x13d1   :  { %v5763_v12 = vadd.f32 %v5762_v46, %v5669_v0 }
0x13d2   :  { %v5775_v38 = vadd.f32 %v9748_v7, %v5769_v29 }
0x13d3   :  { %v5774_v58 = vadd.f32 %v9748_v7, %v5763_v12 }
0x13d4   :  { %8249 = vtanh.f32 %v5775_v38  ;;  %v6829_v8 = vmul.f32 -1.442695, %v5775_v38 }
0x13d5   :  { %8251 = vtanh.f32 %v5774_v58  ;;  %v6828_v20 = vmul.f32 -1.442695, %v5774_v58  ;;  %v6834_v58 = vld [vmem:[%s9968_s1 + $0xe0] sm:$0xff] }
0x13d6   :  { %8253 = vpow2.f32 %v6827_v28  ;;  %5918 = vst.msk [vmem:[#allocation2] sm:$0xff] %vm45_vm0, %v6834_v58 }
0x13d7   :  { %8255 = vpow2.f32 %v6826_v52 }
0x13d8   :  { %8257 = vpow2.f32 %v6829_v8 }
0x13d9   :  { %8259 = vpow2.f32 %v6828_v20 }
0x13dc   :  { %v8246_v61 = vpop.eup %8245 }
0x13dd   :  { %v8248_v35 = vpop.eup %8247  ;;  %5814 = vrot.lane.b32.xlu0 %v8246_v61, %s8320_s29  ;;  %v6837_v61 = vld [vmem:[%s9968_s1 + $0xf8] sm:$0xff] }
0x13de   :  { %5812 = vrot.lane.b32.xlu1 %v8248_v35, %s8320_s29  ;;  %5921 = vst.msk [vmem:[#allocation2 + $0x18] sm:$0xff] %vm45_vm0, %v6837_v61  ;;  %v6836_v35 = vld [vmem:[%s9968_s1 + $0xf0] sm:$0xff] }
0x13df   :  { %5920 = vst.msk [vmem:[#allocation2 + $0x10] sm:$0xff] %vm45_vm0, %v6836_v35 }
0x13e1   :  { %v8250_v30 = vpop.eup %8249 }
0x13e2   :  { %v8252_v59 = vpop.eup %8251  ;;  %5818 = vrot.lane.b32.xlu0 %v8250_v30, %s8320_s29 }
0x13e3   :  { %5816 = vrot.lane.b32.xlu1 %v8252_v59, %s8320_s29  ;;  %v8254_v45 = vpop.eup %8253 }
0x13e4   :  { %v8256_v42 = vpop.eup %8255  ;;  %v5789_v40 = vadd.f32 1.0, %v8254_v45 }
0x13e5   :  { %v5788_v43 = vadd.f32 1.0, %v8256_v42  ;;  %v8258_v31 = vpop.eup %8257 }
0x13e6   :  { %v8260_v2 = vpop.eup %8259  ;;  %8261 = vrcp.f32 %v5789_v40  ;;  %v5791_v41 = vadd.f32 1.0, %v8258_v31 }
0x13e7   :  { %8263 = vrcp.f32 %v5788_v43  ;;  %v5790_v50 = vadd.f32 1.0, %v8260_v2 }
0x13e8   :  { %8265 = vrcp.f32 %v5791_v41 }
0x13e9   :  { %8267 = vrcp.f32 %v5790_v50 }
0x13f3   :  { %v8262_v33 = vpop.eup %8261 }
0x13f4   :  { %v8264_v37 = vpop.eup %8263  ;;  %v5805_v39 = vmul.f32 %v8262_v33, %v9569_v48 }
0x13f5   :  { %v8266_v53 = vpop.eup %8265  ;;  %v5804_v9 = vmul.f32 %v8264_v37, %v9571_v13 }
0x13f6   :  { %v8268_v62 = vpop.eup %8267  ;;  %v5807_v51 = vmul.f32 %v8266_v53, %v9577_v14  ;;  %v6835_v14 = vld [vmem:[%s9968_s1 + $0xe8] sm:$0xff] }
0x13f7   :  { %v5806_v0 = vmul.f32 %v8268_v62, %v9579_v36  ;;  %5919 = vst.msk [vmem:[#allocation2 + $0x8] sm:$0xff] %vm45_vm0, %v6835_v14 }
0x144f   :  { %v5815_v34 = vpop.permute.xlu0 %5814 }
0x1450   :  { %v5825_v47 = vmul.f32 %v8262_v33, %v5815_v34  ;;  %v5813_v26 = vpop.permute.xlu1 %5812 }
0x1451   :  { %v5824_v44 = vmul.f32 %v8264_v37, %v5813_v26 }
0x1452   :  { %5834 = vrot.lane.b32.xlu0 %v5825_v47, %s8320_s29 }
0x1453   :  { %5832 = vrot.lane.b32.xlu1 %v5824_v44, %s8320_s29 }
0x1454   :  { %v5819_v55 = vpop.permute.xlu0 %5818 }
0x1455   :  { %v5827_v18 = vmul.f32 %v8266_v53, %v5819_v55  ;;  %v5817_v56 = vpop.permute.xlu1 %5816 }
0x1456   :  { %v5826_v63 = vmul.f32 %v8268_v62, %v5817_v56 }
0x1457   :  { %5838 = vrot.lane.b32.xlu0 %v5827_v18, %s8320_s29 }
0x1458   :  { %5836 = vrot.lane.b32.xlu1 %v5826_v63, %s8320_s29 }
0x14c4   :  { %v5835_v54 = vpop.permute.xlu0 %5834 }
0x14c5   :  { %v9764_v19 = vadd.f32 %v5835_v54, %v5805_v39  ;;  %v5833_v49 = vpop.permute.xlu1 %5832 }
0x14c6   :  { %v9766_v57 = vadd.f32 %v5833_v49, %v5804_v9 }
0x14c7   :  { %8269 = vtanh.f32 %v9764_v19 }
0x14c8   :  { %8271 = vtanh.f32 %v9766_v57 }
0x14c9   :  { %v5839_v60 = vpop.permute.xlu0 %5838 }
0x14ca   :  { %v9772_v46 = vadd.f32 %v5839_v60, %v5807_v51  ;;  %v5837_v48 = vpop.permute.xlu1 %5836 }
0x14cb   :  { %v9774_v29 = vadd.f32 %v5837_v48, %v5806_v0 }
0x14cc   :  { %8273 = vtanh.f32 %v9772_v46 }
0x14cd   :  { %8275 = vtanh.f32 %v9774_v29 }
0x14d4   :  { %v8270_v13 = vpop.eup %8269 }
0x14d5   :  { %v8272_v12 = vpop.eup %8271  ;;  %5858 = vrot.lane.b32.xlu0 %v8270_v13, %s8320_s29 }
0x14d6   :  { %5856 = vrot.lane.b32.xlu1 %v8272_v12, %s8320_s29 }
0x14d9   :  { %v8274_v36 = vpop.eup %8273 }
0x14da   :  { %v8276_v38 = vpop.eup %8275  ;;  %5862 = vrot.lane.b32.xlu0 %v8274_v36, %s8320_s29 }
0x14db   :  { %5860 = vrot.lane.b32.xlu1 %v8276_v38, %s8320_s29 }
0x1547   :  { %v5859_v30 = vpop.permute.xlu0 %5858 }
0x1548   :  { %v5869_v59 = vmul.f32 %v8262_v33, %v5859_v30  ;;  %v5857_v28 = vpop.permute.xlu1 %5856 }
0x1549   :  { %v5868_v52 = vmul.f32 %v8264_v37, %v5857_v28 }
0x154a   :  { %5928 = vrot.lane.b32.xlu0 %v5869_v59, %s8321_s15  ;;  %v5873_v40 = vmul.f32 %v5869_v59, %v8658_v1 }
0x154b   :  { %5926 = vrot.lane.b32.xlu1 %v5868_v52, %s8321_s15  ;;  %v5872_v43 = vmul.f32 %v5868_v52, %v8658_v1 }
0x154c   :  { %v5863_v8 = vpop.permute.xlu0 %5862 }
0x154d   :  { %v5871_v20 = vmul.f32 %v8266_v53, %v5863_v8  ;;  %v5861_v45 = vpop.permute.xlu1 %5860 }
0x154e   :  { %v5870_v42 = vmul.f32 %v8268_v62, %v5861_v45 }
0x154f   :  { %5932 = vrot.lane.b32.xlu0 %v5871_v20, %s8321_s15  ;;  %v5875_v31 = vmul.f32 %v5871_v20, %v8658_v1 }
0x1550   :  { %5930 = vrot.lane.b32.xlu1 %v5870_v42, %s8321_s15  ;;  %v5874_v2 = vmul.f32 %v5870_v42, %v8658_v1 }
0x1553   :  { %5882 = vrot.lane.b32.xlu0 %v5873_v40, %s8322_s17 }
0x1554   :  { %5880 = vrot.lane.b32.xlu1 %v5872_v43, %s8322_s17 }
0x1557   :  { %5886 = vrot.lane.b32.xlu0 %v5875_v31, %s8322_s17 }
0x1558   :  { %5884 = vrot.lane.b32.xlu1 %v5874_v2, %s8322_s17 }
0x15bc   :  { %v5929_v41 = vpop.permute.xlu0 %5928 }
0x15bd   :  { %5939 = vst.msk [vmem:[#allocation2 + $0x8] sm:$0xff] %vm50_vm1, %v5929_v41  ;;  %v5927_v50 = vpop.permute.xlu1 %5926 }
0x15be   :  { %5938 = vst.msk [vmem:[#allocation2] sm:$0xff] %vm50_vm1, %v5927_v50 }
0x15c1   :  { %v5933_v33 = vpop.permute.xlu0 %5932 }
0x15c2   :  { %5941 = vst.msk [vmem:[#allocation2 + $0x18] sm:$0xff] %vm50_vm1, %v5933_v33  ;;  %v5931_v34 = vpop.permute.xlu1 %5930 }
0x15c3   :  { %5940 = vst.msk [vmem:[#allocation2 + $0x10] sm:$0xff] %vm50_vm1, %v5931_v34 }
0x15c4   :  { %v5943_v37 = vld [vmem:[#allocation2 + $0x8] sm:$0xff] }
0x15c5   :  { %v5883_v47 = vpop.permute.xlu0 %5882  ;;  %v5942_v26 = vld [vmem:[#allocation2] sm:$0xff]  ;;  %v5974_v44 = vsel %vm89_vm2, %v5943_v37, 0 }
0x15c6   :  { %v5895_v53 = vsel %vm863_vm3, %v5883_v47, 0.0  ;;  %v5881_v55 = vpop.permute.xlu1 %5880  ;;  %v5971_v62 = vsel %vm89_vm2, %v5942_v26, 0  ;;  %v9817_v18 = vand.u32 4294901760, %v5974_v44 }
0x15c7   :  { %v5892_v56 = vsel %vm863_vm3, %v5881_v55, 0.0  ;;  %5896 = vadd.xlane.f32.xlu0 %v5895_v53  ;;  %v9820_v63 = vand.u32 4294901760, %v5971_v62 }
0x15c8   :  { %5893 = vadd.xlane.f32.xlu1 %v5892_v56  ;;  %v9823_v39 = vsub.f32 %v5974_v44, %v9817_v18 }
0x15c9   :  { %v5887_v54 = vpop.permute.xlu0 %5886  ;;  %7976 = vmatprep.mubr.f32.mxu1 %v9820_v63  ;;  %v5945_v9 = vld [vmem:[#allocation2 + $0x18] sm:$0xff]  ;;  %v6053_v49 = vsub.f32 %v5971_v62, %v9820_v63 }
0x15ca   :  { %v5901_v51 = vsel %vm863_vm3, %v5887_v54, 0.0  ;;  %v5885_v60 = vpop.permute.xlu1 %5884  ;;  %7977 = vmatmul.mubr.f32.vlgmr.msra.gmra.mxu1 %v9817_v18  ;;  %v5944_v0 = vld [vmem:[#allocation2 + $0x10] sm:$0xff]  ;;  %v5980_v48 = vsel %vm89_vm2, %v5945_v9, 0  ;;  %v6064_v13 = vand.u32 4294901760, %v9823_v39 }
0x15cb   :  { %v5898_v12 = vsel %vm863_vm3, %v5885_v60, 0.0  ;;  %7999 = vmatpush3.msra.mxu1 %v8372_v3  ;;  %v5977_v14 = vsel %vm89_vm2, %v5944_v0, 0  ;;  %v9834_v36 = vand.u32 4294901760, %v5980_v48  ;;  %v6054_v38 = vand.u32 4294901760, %v6053_v49 }
0x15cc   :  { %8000 = vmatprep.subr.mxu1 %v8374_v4  ;;  %5902 = vadd.xlane.f32.xlu1 %v5901_v51  ;;  %v9837_v58 = vand.u32 4294901760, %v5977_v14  ;;  %v6065_v61 = vsub.f32 %v9823_v39, %v6064_v13 }
0x15cd   :  { %5899 = vadd.xlane.f32.xlu0 %v5898_v12  ;;  %8001 = vmatpush3.msra.mxu1 %v8374_v4  ;;  %v6055_v35 = vsub.f32 %v6053_v49, %v6054_v38  ;;  %v6083_v30 = vsub.f32 %v5980_v48, %v9834_v36 }
0x15ce   :  { %7979 = vmatprep.mubr.f32.mxu1 %v9837_v58  ;;  %8002 = vmatprep.subr.mxu1 %v8376_v5  ;;  %v6066_v59 = vand.u32 4294901760, %v6065_v61  ;;  %v6073_v28 = vsub.f32 %v5977_v14, %v9837_v58 }
0x15cf   :  { %7980 = vmatmul.mubr.f32.gmra.mxu1 %v9834_v36  ;;  %v6056_v52 = vand.u32 4294901760, %v6055_v35  ;;  %v6084_v8 = vand.u32 4294901760, %v6083_v30 }
0x15d0   :  { %8003 = vmatpush3.msra.mxu1 %v8376_v5  ;;  %8008 = vmatprep.mubr.f32.mxu1 %v6054_v38  ;;  %v6074_v20 = vand.u32 4294901760, %v6073_v28 }
0x15d1   :  { %8004 = vmatprep.subr.mxu1 %v8387_v10  ;;  %7960 = vmatprep.mubr.f32.mxu0 %v6056_v52  ;;  %v6085_v45 = vsub.f32 %v6083_v30, %v6084_v8 }
0x15d2   :  { %8005 = vmatpush3.msra.mxu1 %v8387_v10  ;;  %7961 = vmatmul.mubr.f32.vlgmr.msra.gmra.mxu0 %v6066_v59  ;;  %v6075_v42 = vsub.f32 %v6073_v28, %v6074_v20 }
0x15d3   :  { %8006 = vmatprep.subr.mxu1 %v8389_v11  ;;  %7983 = vmatpush3.msra.mxu0 %v8403_v15  ;;  %v6086_v43 = vand.u32 4294901760, %v6085_v45 }
0x15d4   :  { %8007 = vmatpush3.msra.mxu1 %v8389_v11  ;;  %7984 = vmatprep.subr.mxu0 %v8406_v16  ;;  %v6076_v40 = vand.u32 4294901760, %v6075_v42 }
0x15d5   :  { %8009 = vmatmul.mubr.f32.vlgmr.msra.gmra.mxu1 %v6064_v13  ;;  %8030 = vmatprep.subr.mxu1 %v8372_v3 }
0x15d6   :  { %7985 = vmatpush3.msra.mxu0 %v8406_v16  ;;  %8011 = vmatprep.mubr.f32.mxu1 %v6074_v20 }
0x15d7   :  { %8031 = vmatpush3.msra.mxu1 %v8372_v3  ;;  %7963 = vmatprep.mubr.f32.mxu0 %v6076_v40 }
0x15d8   :  { %7986 = vmatprep.subr.mxu0 %v8409_v17  ;;  %8032 = vmatprep.subr.mxu1 %v8374_v4 }
0x15d9   :  { %7964 = vmatmul.mubr.f32.gmra.mxu0 %v6086_v43  ;;  %8033 = vmatpush3.msra.mxu1 %v8374_v4  ;;  %v9889_v4 = vld [vmem:[#allocation3] ss:$0 sm:$0xff] }
0x15da   :  { %7987 = vmatpush3.msra.mxu0 %v8409_v17  ;;  %7992 = vmatprep.mubr.f32.mxu0 %v6053_v49 }
0x15db   :  { %7988 = vmatprep.subr.mxu0 %v8423_v21  ;;  %8012 = vmatmul.mubr.f32.gmra.mxu1 %v6084_v8 }
0x15dc   :  { %8034 = vmatprep.subr.mxu1 %v8376_v5  ;;  %7989 = vmatpush3.msra.mxu0 %v8423_v21 }
0x15dd   :  { %8035 = vmatpush3.msra.mxu1 %v8376_v5  ;;  %8040 = vmatprep.mubr.f32.mxu1 %v9820_v63 }
0x15de   :  { %7990 = vmatprep.subr.mxu0 %v8426_v22  ;;  %8036 = vmatprep.subr.mxu1 %v8387_v10 }
0x15df   :  { %7991 = vmatpush3.msra.mxu0 %v8426_v22  ;;  %8037 = vmatpush3.msra.mxu1 %v8387_v10 }
0x15e0   :  { %7993 = vmatmul.mubr.f32.vlgmr.msra.gmra.mxu0 %v9823_v39  ;;  %8014 = vmatprep.subr.mxu0 %v8432_v23 }
0x15e1   :  { %8038 = vmatprep.subr.mxu1 %v8389_v11  ;;  %7995 = vmatprep.mubr.f32.mxu0 %v6073_v28 }
0x15e2   :  { %8015 = vmatpush3.msra.mxu0 %v8432_v23  ;;  %8039 = vmatpush3.msra.mxu1 %v8389_v11 }
0x15e3   :  { %8016 = vmatprep.subr.mxu0 %v8436_v24  ;;  %8041 = vmatmul.mubr.f32.vlgmr.msra.gmra.mxu1 %v9817_v18 }
0x15e4   :  { %8017 = vmatpush3.msra.mxu0 %v8436_v24  ;;  %8043 = vmatprep.mubr.f32.mxu1 %v9837_v58 }
0x15e5   :  { %7996 = vmatmul.mubr.f32.gmra.mxu0 %v6083_v30  ;;  %8018 = vmatprep.subr.mxu0 %v8439_v25 }
0x15e6   :  { %8019 = vmatpush3.msra.mxu0 %v8439_v25  ;;  %8024 = vmatprep.mubr.f32.mxu0 %v9820_v63 }
0x15e7   :  { %8020 = vmatprep.subr.mxu0 %v8446_v27  ;;  %8044 = vmatmul.mubr.f32.gmra.mxu1 %v9834_v36 }
0x15e8   :  { %8021 = vmatpush3.msra.mxu0 %v8446_v27 }
0x15e9   :  { %8022 = vmatprep.subr.mxu0 %v8459_v32 }
0x15ea   :  { %8023 = vmatpush3.msra.mxu0 %v8459_v32 }
0x15eb   :  { %8025 = vmatmul.mubr.f32.vlgmr.msra.gmra.mxu0 %v9817_v18 }
0x15ec   :  { %8027 = vmatprep.mubr.f32.mxu0 %v9837_v58 }
0x15ef   :  { %8028 = vmatmul.mubr.f32.gmra.mxu0 %v9834_v36 }
0x1650   :  { %v5897_v3 = vpop.xlane.xlu0 %5896 }
0x1651   :  { %v5905_v5 = vadd.f32 %v9889_v4, %v5897_v3  ;;  %v5894_v10 = vpop.xlane.xlu1 %5893 }
0x1652   :  { %v5904_v11 = vadd.f32 %v9889_v4, %v5894_v10 }
0x1653   :  { %6831 = vst.msk [vmem:[%s9974_s7 + $0xc8] sm:$0xff] %vm886_vm4, %v5905_v5  ;;  %5953 = vperm.xlu1 %8052, %v5905_v5  }
0x1654   :  { %6830 = vst.msk [vmem:[%s9974_s7 + $0xc0] sm:$0xff] %vm886_vm4, %v5904_v11  ;;  %5948 = vperm.xlu0 %8051, %v5904_v11  }
0x1655   :  { %v5903_v15 = vpop.xlane.xlu1 %5902 }
0x1656   :  { %v5900_v16 = vpop.xlane.xlu0 %5899  ;;  %v5907_v17 = vadd.f32 %v9889_v4, %v5903_v15 }
0x1657   :  { %v5906_v21 = vadd.f32 %v9889_v4, %v5900_v16 }
0x1658   :  { %6833 = vst.msk [vmem:[%s9974_s7 + $0xd8] sm:$0xff] %vm886_vm4, %v5907_v17  ;;  %5963 = vperm.xlu0 %8051, %v5907_v17  }
0x1659   :  { %6832 = vst.msk [vmem:[%s9974_s7 + $0xd0] sm:$0xff] %vm886_vm4, %v5906_v21  ;;  %5958 = vperm.xlu1 %8052, %v5906_v21  }
0x168a   :  { %v7978_v23 = vpop.f32.mrf.mxu1 }
0x168c   :  { %v6184_v25 = vpop.f32.mrf.mxu1 }
0x168f   :  { %v7981_v32 = vpop.f32.mrf.mxu1 }
0x1691   :  { %v6196_v2 = vpop.f32.mrf.mxu1 }
0x1692   :  { %v7962_v22 = vpop.f32.mrf.mxu0 }
0x1694   :  { %v6058_v24 = vpop.f32.mrf.mxu0 }
0x1695   :  { %v8010_v50 = vpop.f32.mrf.mxu1 }
0x1697   :  { %v6383_v34 = vpop.f32.mrf.mxu1 }
0x1699   :  { %v7965_v27 = vpop.f32.mrf.mxu0 }
0x169b   :  { %v6078_v31 = vpop.f32.mrf.mxu0  ;;  %v8013_v47 = vpop.f32.mrf.mxu1 }
0x169d   :  { %v6399_v56 = vpop.f32.mrf.mxu1 }
0x16a0   :  { %v7994_v41 = vpop.f32.mrf.mxu0 }
0x16a2   :  { %v6284_v33 = vpop.f32.mrf.mxu0 }
0x16a3   :  { %v8042_v49 = vpop.f32.mrf.mxu1 }
0x16a5   :  { %v7997_v37 = vpop.f32.mrf.mxu0  ;;  %v6587_v61 = vpop.f32.mrf.mxu1 }
0x16a7   :  { %v6298_v55 = vpop.f32.mrf.mxu0  ;;  %v8045_v40 = vpop.f32.mrf.mxu1 }
0x16a9   :  { %v6599_v17 = vpop.f32.mrf.mxu1 }
0x16ab   :  { %v8026_v63 = vpop.f32.mrf.mxu0 }
0x16ad   :  { %v6493_v12 = vpop.f32.mrf.mxu0 }
0x16af   :  { %v8029_v52 = vpop.f32.mrf.mxu0 }
0x16b1   :  { %v6505_v10 = vpop.f32.mrf.mxu0 }
0x16ce   :  { %v5954_v26 = vpop.permute.xlu1 %5953 }
0x16cf   :  { %v5949_v44 = vpop.permute.xlu0 %5948  ;;  %v5967_v53 = vmul.f32 %v9739_v6, %v5954_v26 }
0x16d0   :  { %v5966_v62 = vmul.f32 %v9739_v6, %v5949_v44 }
0x16d1   :  { %v6069_v18 = vadd.f32 %v7962_v22, %v5967_v53 }
0x16d2   :  { %v6059_v39 = vadd.f32 %v6058_v24, %v5966_v62 }
0x16d3   :  { %v6191_v54 = vadd.f32 %v7978_v23, %v6069_v18  ;;  %v5964_v9 = vpop.permute.xlu0 %5963 }
0x16d4   :  { %v6185_v51 = vadd.f32 %v6184_v25, %v6059_v39  ;;  %v5969_v60 = vmul.f32 %v9739_v6, %v5964_v9  ;;  %v5959_v0 = vpop.permute.xlu1 %5958 }
0x16d5   :  { %v6292_v48 = vadd.f32 %v7994_v41, %v6191_v54  ;;  %v5968_v13 = vmul.f32 %v9739_v6, %v5959_v0 }
0x16d6   :  { %v6285_v14 = vadd.f32 %v6284_v33, %v6185_v51  ;;  %v6089_v36 = vadd.f32 %v7965_v27, %v5969_v60 }
0x16d7   :  { %v6392_v38 = vadd.f32 %v8010_v50, %v6292_v48  ;;  %v6079_v58 = vadd.f32 %v6078_v31, %v5968_v13 }
0x16d8   :  { %v6384_v35 = vadd.f32 %v6383_v34, %v6285_v14  ;;  %v6203_v30 = vadd.f32 %v7981_v32, %v6089_v36 }
0x16d9   :  { %v6500_v59 = vadd.f32 %v8026_v63, %v6392_v38  ;;  %v6197_v28 = vadd.f32 %v6196_v2, %v6079_v58 }
0x16da   :  { %v6494_v8 = vadd.f32 %v6493_v12, %v6384_v35  ;;  %v6306_v20 = vadd.f32 %v7997_v37, %v6203_v30 }
0x16db   :  { %v6594_v45 = vadd.f32 %v8042_v49, %v6500_v59  ;;  %v6299_v42 = vadd.f32 %v6298_v55, %v6197_v28 }
0x16dc   :  { %v6588_v43 = vadd.f32 %v6587_v61, %v6494_v8  ;;  %v6408_v3 = vadd.f32 %v8013_v47, %v6306_v20 }
0x16dd   :  { %v6610_v6 = vadd.f32 %v9748_v7, %v6594_v45  ;;  %v6400_v5 = vadd.f32 %v6399_v56, %v6299_v42 }
0x16de   :  { %v6609_v11 = vadd.f32 %v9748_v7, %v6588_v43  ;;  %v6512_v15 = vadd.f32 %v8029_v52, %v6408_v3 }
0x16df   :  { %8277 = vtanh.f32 %v6610_v6  ;;  %v6506_v16 = vadd.f32 %v6505_v10, %v6400_v5  ;;  %v6839_v2 = vmul.f32 -1.442695, %v6610_v6 }
0x16e0   :  { %8279 = vtanh.f32 %v6609_v11  ;;  %v6606_v21 = vadd.f32 %v8045_v40, %v6512_v15  ;;  %v6838_v41 = vmul.f32 -1.442695, %v6609_v11 }
0x16e1   :  { %v6600_v22 = vadd.f32 %v6599_v17, %v6506_v16 }
0x16e2   :  { %v6612_v23 = vadd.f32 %v9748_v7, %v6606_v21 }
0x16e3   :  { %v6611_v24 = vadd.f32 %v9748_v7, %v6600_v22 }
0x16e4   :  { %8281 = vtanh.f32 %v6612_v23  ;;  %v6841_v50 = vmul.f32 -1.442695, %v6612_v23 }
0x16e5   :  { %8283 = vtanh.f32 %v6611_v24  ;;  %v6840_v7 = vmul.f32 -1.442695, %v6611_v24 }
0x16e6   :  { %8285 = vpow2.f32 %v6839_v2 }
0x16e7   :  { %8287 = vpow2.f32 %v6838_v41 }
0x16e8   :  { %8289 = vpow2.f32 %v6841_v50 }
0x16e9   :  { %8291 = vpow2.f32 %v6840_v7 }
0x16ec   :  { %v8278_v25 = vpop.eup %8277 }
0x16ed   :  { %v8280_v27 = vpop.eup %8279  ;;  %6651 = vrot.lane.b32.xlu0 %v8278_v25, %s8320_s29 }
0x16ee   :  { %6649 = vrot.lane.b32.xlu1 %v8280_v27, %s8320_s29 }
0x16f1   :  { %v8282_v32 = vpop.eup %8281 }
0x16f2   :  { %v8284_v31 = vpop.eup %8283  ;;  %6655 = vrot.lane.b32.xlu0 %v8282_v32, %s8320_s29 }
0x16f3   :  { %6653 = vrot.lane.b32.xlu1 %v8284_v31, %s8320_s29  ;;  %v8286_v33 = vpop.eup %8285 }
0x16f4   :  { %v8288_v34 = vpop.eup %8287  ;;  %v6626_v37 = vadd.f32 1.0, %v8286_v33 }
0x16f5   :  { %v6625_v47 = vadd.f32 1.0, %v8288_v34  ;;  %v8290_v26 = vpop.eup %8289 }
0x16f6   :  { %v8292_v44 = vpop.eup %8291  ;;  %8293 = vrcp.f32 %v6626_v37  ;;  %v6628_v53 = vadd.f32 1.0, %v8290_v26 }
0x16f7   :  { %8295 = vrcp.f32 %v6625_v47  ;;  %v6627_v55 = vadd.f32 1.0, %v8292_v44 }
0x16f8   :  { %8297 = vrcp.f32 %v6628_v53 }
0x16f9   :  { %8299 = vrcp.f32 %v6627_v55 }
0x1703   :  { %v8294_v62 = vpop.eup %8293 }
0x1704   :  { %v8296_v56 = vpop.eup %8295  ;;  %v6642_v13 = vmul.f32 %v8294_v62, %v9764_v19 }
0x1705   :  { %v8298_v9 = vpop.eup %8297  ;;  %v6641_v14 = vmul.f32 %v8296_v56, %v9766_v57 }
0x1706   :  { %v8300_v51 = vpop.eup %8299  ;;  %v6644_v61 = vmul.f32 %v8298_v9, %v9772_v46 }
0x1707   :  { %v6643_v30 = vmul.f32 %v8300_v51, %v9774_v29 }
0x175f   :  { %v6652_v18 = vpop.permute.xlu0 %6651 }
0x1760   :  { %v6662_v63 = vmul.f32 %v8294_v62, %v6652_v18  ;;  %v6650_v39 = vpop.permute.xlu1 %6649 }
0x1761   :  { %v6661_v54 = vmul.f32 %v8296_v56, %v6650_v39 }
0x1762   :  { %6671 = vrot.lane.b32.xlu0 %v6662_v63, %s8320_s29 }
0x1763   :  { %6669 = vrot.lane.b32.xlu1 %v6661_v54, %s8320_s29 }
0x1764   :  { %v6656_v49 = vpop.permute.xlu0 %6655 }
0x1765   :  { %v6664_v60 = vmul.f32 %v8298_v9, %v6656_v49  ;;  %v6654_v0 = vpop.permute.xlu1 %6653 }
0x1766   :  { %v6663_v48 = vmul.f32 %v8300_v51, %v6654_v0 }
0x1767   :  { %6675 = vrot.lane.b32.xlu0 %v6664_v60, %s8320_s29 }
0x1768   :  { %6673 = vrot.lane.b32.xlu1 %v6663_v48, %s8320_s29 }
0x17d4   :  { %v6672_v12 = vpop.permute.xlu0 %6671 }
0x17d5   :  { %v6682_v36 = vadd.f32 %v6672_v12, %v6642_v13  ;;  %v6670_v38 = vpop.permute.xlu1 %6669 }
0x17d6   :  { %v6681_v58 = vadd.f32 %v6670_v38, %v6641_v14 }
0x17d7   :  { %8301 = vtanh.f32 %v6682_v36 }
0x17d8   :  { %8303 = vtanh.f32 %v6681_v58 }
0x17d9   :  { %v6676_v35 = vpop.permute.xlu0 %6675 }
0x17da   :  { %v6684_v59 = vadd.f32 %v6676_v35, %v6644_v61  ;;  %v6674_v28 = vpop.permute.xlu1 %6673 }
0x17db   :  { %v6683_v52 = vadd.f32 %v6674_v28, %v6643_v30 }
0x17dc   :  { %8305 = vtanh.f32 %v6684_v59 }
0x17dd   :  { %8307 = vtanh.f32 %v6683_v52 }
0x17e4   :  { %v8302_v8 = vpop.eup %8301 }
0x17e5   :  { %v8304_v19 = vpop.eup %8303  ;;  %6695 = vrot.lane.b32.xlu0 %v8302_v8, %s8320_s29 }
0x17e6   :  { %6693 = vrot.lane.b32.xlu1 %v8304_v19, %s8320_s29 }
0x17e9   :  { %v8306_v57 = vpop.eup %8305 }
0x17ea   :  { %v8308_v20 = vpop.eup %8307  ;;  %6699 = vrot.lane.b32.xlu0 %v8306_v57, %s8320_s29 }
0x17eb   :  { %6697 = vrot.lane.b32.xlu1 %v8308_v20, %s8320_s29 }
0x1857   :  { %v6696_v46 = vpop.permute.xlu0 %6695 }
0x1858   :  { %v6706_v45 = vmul.f32 %v8294_v62, %v6696_v46  ;;  %v6694_v29 = vpop.permute.xlu1 %6693 }
0x1859   :  { %v6705_v42 = vmul.f32 %v8296_v56, %v6694_v29 }
0x185a   :  { %v6710_v40 = vmul.f32 %v6706_v45, %v8658_v1 }
0x185b   :  { %v6709_v43 = vmul.f32 %v6705_v42, %v8658_v1 }
0x185c   :  { %v6700_v3 = vpop.permute.xlu0 %6699  ;;  %6719 = vrot.lane.b32.xlu0 %v6710_v40, %s8322_s17 }
0x185d   :  { %v6708_v6 = vmul.f32 %v8298_v9, %v6700_v3  ;;  %v6698_v5 = vpop.permute.xlu1 %6697  ;;  %6717 = vrot.lane.b32.xlu1 %v6709_v43, %s8322_s17 }
0x185e   :  { %v6707_v10 = vmul.f32 %v8300_v51, %v6698_v5 }
0x185f   :  { %v6712_v11 = vmul.f32 %v6708_v6, %v8658_v1 }
0x1860   :  { %v6711_v15 = vmul.f32 %v6707_v10, %v8658_v1 }
0x1861   :  { %6723 = vrot.lane.b32.xlu0 %v6712_v11, %s8322_s17 }
0x1862   :  { %6721 = vrot.lane.b32.xlu1 %v6711_v15, %s8322_s17 }
0x18ce   :  { %v6720_v16 = vpop.permute.xlu0 %6719 }
0x18cf   :  { %v6732_v17 = vsel %vm863_vm3, %v6720_v16, 0.0  ;;  %v6718_v21 = vpop.permute.xlu1 %6717 }
0x18d0   :  { %v6729_v22 = vsel %vm863_vm3, %v6718_v21, 0.0  ;;  %6733 = vadd.xlane.f32.xlu0 %v6732_v17 }
0x18d1   :  { %6730 = vadd.xlane.f32.xlu1 %v6729_v22 }
0x18d3   :  { %v6724_v23 = vpop.permute.xlu0 %6723 }
0x18d4   :  { %v6738_v24 = vsel %vm863_vm3, %v6724_v23, 0.0  ;;  %v6722_v25 = vpop.permute.xlu1 %6721 }
0x18d5   :  { %v6735_v27 = vsel %vm863_vm3, %v6722_v25, 0.0  ;;  %6739 = vadd.xlane.f32.xlu1 %v6738_v24 }
0x18d6   :  { %6736 = vadd.xlane.f32.xlu0 %v6735_v27 }
0x1959   :  { %v6734_v1 = vpop.xlane.xlu0 %6733 }
0x195a   :  { %v6742_v32 = vadd.f32 %v9889_v4, %v6734_v1  ;;  %v6731_v31 = vpop.xlane.xlu1 %6730 }
0x195b   :  { %v6741_v2 = vadd.f32 %v9889_v4, %v6731_v31 }
0x195c   :  { %6843 = vst.msk [vmem:[%s9974_s7 + $0xe8] sm:$0xff] %vm886_vm4, %v6742_v32 }
0x195d   :  { %6842 = vst.msk [vmem:[%s9974_s7 + $0xe0] sm:$0xff] %vm886_vm4, %v6741_v2 }
0x195e   :  { %v6740_v41 = vpop.xlane.xlu1 %6739 }
0x195f   :  { %v6737_v50 = vpop.xlane.xlu0 %6736  ;;  %v6744_v7 = vadd.f32 %v9889_v4, %v6740_v41 }
0x1960   :  { %v6743_v33 = vadd.f32 %v9889_v4, %v6737_v50 }
0x1961   :  { %6845 = vst.msk [vmem:[%s9974_s7 + $0xf8] sm:$0xff] %vm886_vm4, %v6744_v7 }
0x1962   :  { %6844 = vst.msk [vmem:[%s9974_s7 + $0xf0] sm:$0xff] %vm886_vm4, %v6743_v33 }

</bundles_post_ra>
